<compile_context>
chip_gen: v7x
topology: tpu7x:2x2x1
jax: 0.10.0
libtpu: 0.0.40
codegen_flags: <defaults>
</compile_context>

<pallas_src>
import math
import functools

import jax
import jax.numpy as jnp
from jax.experimental import pallas as pl
from jax.experimental.pallas import tpu as pltpu


def _pick_vmem_limit():
    """Per-generation scoped-VMEM limit: half of physical capacity, capped.

    Leaves headroom for Mosaic internal scratch / double-buffers (the old
    hard-coded 64 MiB equals the entire physical VMEM on v7x).  All blocks
    here are KB-scale, so falling back to the Mosaic default is also fine.
    """
    try:
        cap = pltpu.get_tpu_info().vmem_capacity_bytes
        return int(min(cap // 2, 96 * 1024 * 1024))
    except Exception:
        return None


_VMEM_LIMIT = _pick_vmem_limit()


def _compiler_params(dim_sem):
    kwargs = dict(dimension_semantics=dim_sem)
    if _VMEM_LIMIT is not None:
        kwargs["vmem_limit_bytes"] = _VMEM_LIMIT
    return pltpu.CompilerParams(**kwargs)


def _pick_tile(dim, target, align):
    """Largest multiple of `align` that divides `dim` and is <= target."""
    if dim <= target:
        return dim
    t = (target // align) * align
    while t >= align:
        if dim % t == 0:
            return t
        t -= align
    return dim


def _layernorm_f32(x, gamma, beta, eps):
    mean = jnp.mean(x, axis=-1, keepdims=True)
    var = jnp.mean(jnp.square(x - mean), axis=-1, keepdims=True)
    return (x - mean) * jax.lax.rsqrt(var + eps) * gamma + beta


# ----------------------------- Pallas kernels ------------------------------

def _encoder_layer_kernel(x_ref, wqkv_ref, bqkv_ref, wo_ref, bo_ref,
                          ln1_g_ref, ln1_b_ref, w1_ref, fb1_ref,
                          w2_ref, fb2_ref, ln2_g_ref, ln2_b_ref,
                          o_ref, *, heads, eps):
    """One full post-norm transformer encoder block for one batch element."""
    S, E = x_ref.shape[1], x_ref.shape[2]
    Dh = E // heads
    scale = 1.0 / math.sqrt(Dh)

    xb = x_ref[0]                                   # [S, E] bf16
    x32 = xb.astype(jnp.float32)

    # ---- fused QKV projection (single MXU matmul), f32 accumulation ----
    qkv = jnp.dot(xb, wqkv_ref[...], preferred_element_type=jnp.float32)
    qkv = qkv + bqkv_ref[...]                       # [S, 3E] f32

    # ---- multi-head self-attention; small head count unrolled, head
    #      outputs assembled lane-dense with one concatenate ----
    # TODO(synk): for long sequences (S >= 512) switch to an online-softmax
    # KV-tiled (flash-style) formulation instead of full [S, S] scores.
    head_outs = []
    for h in range(heads):
        # softmax scale folded into q (S*Dh mults instead of S*S).
        q = (qkv[:, h * Dh:(h + 1) * Dh] * scale).astype(jnp.bfloat16)
        k = qkv[:, E + h * Dh:E + (h + 1) * Dh].astype(jnp.bfloat16)
        v = qkv[:, 2 * E + h * Dh:2 * E + (h + 1) * Dh].astype(jnp.bfloat16)
        # contract last dims of q and k (no explicit transpose).
        s = jax.lax.dot_general(q, k, (((1,), (1,)), ((), ())),
                                preferred_element_type=jnp.float32)
        m = jnp.max(s, axis=-1, keepdims=True)
        p = jnp.exp(s - m)
        p = p * pl.reciprocal(jnp.sum(p, axis=-1, keepdims=True), approx=True)
        head_outs.append(jnp.dot(p.astype(jnp.bfloat16), v,
                                 preferred_element_type=jnp.float32))
    attn = jnp.concatenate(head_outs, axis=-1)      # [S, E] f32, lane-dense

    # ---- output projection + residual + LayerNorm1 (f32 math) ----
    attn = jnp.dot(attn.astype(jnp.bfloat16), wo_ref[...],
                   preferred_element_type=jnp.float32) + bo_ref[...]
    h1 = _layernorm_f32(attn + x32, ln1_g_ref[...], ln1_b_ref[...], eps)

    # ---- FFN: Linear -> GELU -> Linear, + residual + LayerNorm2 ----
    # TODO(synk): tanh-approx GELU; PyTorch nn.GELU default is exact erf.
    f = jnp.dot(h1.astype(jnp.bfloat16), w1_ref[...],
                preferred_element_type=jnp.float32) + fb1_ref[...]
    f = jax.nn.gelu(f, approximate=True)
    f = jnp.dot(f.astype(jnp.bfloat16), w2_ref[...],
                preferred_element_type=jnp.float32) + fb2_ref[...]
    out = _layernorm_f32(f + h1, ln2_g_ref[...], ln2_b_ref[...], eps)

    o_ref[0] = out.astype(o_ref.dtype)              # bf16 activations out


def encoder_layer_pallas(x, p, heads, eps=1e-5):
    """x: [B, S, E] bf16 -> [B, S, E] bf16.  Whole encoder block in one call."""
    B, S, E = x.shape
    F = p["w1"].shape[1]

    def rep(r, c):  # grid-invariant full block (DMA'd once, reused per step)
        return pl.BlockSpec((r, c), lambda b: (0, 0))

    tok_spec = pl.BlockSpec((1, S, E), lambda b: (b, 0, 0))

    return pl.pallas_call(
        functools.partial(_encoder_layer_kernel, heads=heads, eps=eps),
        out_shape=jax.ShapeDtypeStruct((B, S, E), jnp.bfloat16),
        grid=(B,),
        in_specs=[
            tok_spec,
            rep(E, 3 * E), rep(1, 3 * E),           # wqkv, bqkv
            rep(E, E), rep(1, E),                   # wo, bo
            rep(1, E), rep(1, E),                   # ln1 gamma / beta
            rep(E, F), rep(1, F),                   # w1, b1
            rep(F, E), rep(1, E),                   # w2, b2
            rep(1, E), rep(1, E),                   # ln2 gamma / beta
        ],
        out_specs=tok_spec,
        compiler_params=_compiler_params(("parallel",)),
    )(x, p["wqkv"], p["bqkv"], p["wo"], p["bo"],
      p["ln1_g"], p["ln1_b"], p["w1"], p["b1"], p["w2"], p["b2"],
      p["ln2_g"], p["ln2_b"])


def _final_head_kernel(x_ref, g_ref, b_ref, w_ref, o_ref, *, eps):
    x = x_ref[...].astype(jnp.float32)              # [tm, E]
    y = _layernorm_f32(x, g_ref[...], b_ref[...], eps)
    o_ref[...] = jnp.dot(y.astype(jnp.bfloat16), w_ref[...],
                         preferred_element_type=jnp.float32
                         ).astype(o_ref.dtype)


def final_head_pallas(x2, gamma, beta, w, eps=1e-5):
    """Final LayerNorm + vocab projection (bias=False): [M, E] -> [M, V] f32."""
    M, E = x2.shape
    V = w.shape[1]
    # Prefer >=2 row blocks so both v7x TensorCores get work.
    tm = _pick_tile(M, min(256, max(8, M // 2)), 8)
    return pl.pallas_call(
        functools.partial(_final_head_kernel, eps=eps),
        out_shape=jax.ShapeDtypeStruct((M, V), jnp.float32),
        grid=(M // tm,),
        in_specs=[
            pl.BlockSpec((tm, E), lambda i: (i, 0)),
            pl.BlockSpec((1, E), lambda i: (0, 0)),
            pl.BlockSpec((1, E), lambda i: (0, 0)),
            pl.BlockSpec((E, V), lambda i: (0, 0)),
        ],
        out_specs=pl.BlockSpec((tm, V), lambda i: (i, 0)),
        compiler_params=_compiler_params(("parallel",)),
    )(x2, gamma, beta, w)


# ------------------------------ Model (glue) -------------------------------

def sinusoidal_pe(seq_len, embed_size):
    pos = jnp.arange(seq_len, dtype=jnp.float32)[:, None]
    div = jnp.exp(jnp.arange(0, embed_size, 2, dtype=jnp.float32)
                  * (-math.log(10000.0) / embed_size))
    pe = jnp.zeros((seq_len, embed_size), dtype=jnp.float32)
    pe = pe.at[:, 0::2].set(jnp.sin(pos * div))
    pe = pe.at[:, 1::2].set(jnp.cos(pos * div))
    return pe


def init_params(key, encoder_count, heads, embed_size, feedforward_size,
                embeddings, seq_len):
    def dense(k, shape):  # weights stored bf16 (MXU operands, HBM savings)
        return (0.02 * jax.random.normal(k, shape, jnp.float32)
                ).astype(jnp.bfloat16)

    def bias(k, n):       # biases / LN params stay f32, stored row-shaped
        return (0.01 * jax.random.normal(k, (n,), jnp.float32)).reshape(1, n)

    keys = jax.random.split(key, 2 + encoder_count)
    E, F, V = embed_size, feedforward_size, embeddings
    params = {
        "emb": 0.02 * jax.random.normal(keys[0], (V, E), jnp.float32),
        "pe": sinusoidal_pe(seq_len, E),
        "norm_g": jnp.ones((1, E), jnp.float32),
        "norm_b": jnp.zeros((1, E), jnp.float32),
        "out_w": dense(keys[1], (E, V)),            # nn.Linear(..., bias=False)
        "layers": [],
    }
    for li in range(encoder_count):
        lk = jax.random.split(keys[2 + li], 12)
        wq = dense(lk[0], (E, E))
        wk = dense(lk[1], (E, E))
        wv = dense(lk[2], (E, E))
        params["layers"].append({
            "wqkv": jnp.concatenate([wq, wk, wv], axis=1),          # [E, 3E]
            "bqkv": jnp.concatenate([bias(lk[3], E), bias(lk[4], E),
                                     bias(lk[5], E)], axis=1),      # [1, 3E]
            "wo": dense(lk[6], (E, E)), "bo": bias(lk[7], E),
            "w1": dense(lk[8], (E, F)), "b1": bias(lk[9], F),
            "w2": dense(lk[10], (F, E)), "b2": bias(lk[11], E),
            "ln1_g": jnp.ones((1, E), jnp.float32),
            "ln1_b": jnp.zeros((1, E), jnp.float32),
            "ln2_g": jnp.ones((1, E), jnp.float32),
            "ln2_b": jnp.zeros((1, E), jnp.float32),
        })
    return params


def bert_forward(params, token_ids, heads):
    B, S = token_ids.shape
    E = params["emb"].shape[1]
    V = params["out_w"].shape[1]

    # TODO(synk): embedding gather + positional add kept in plain JAX
    # (data-dependent gather; no pipelined-Pallas win at this scale).
    x = jnp.take(params["emb"], token_ids, axis=0) + params["pe"][None, :S, :]
    x = x.astype(jnp.bfloat16)                      # bf16 activations end-to-end

    for layer_params in params["layers"]:
        x = encoder_layer_pallas(x, layer_params, heads)

    logits = final_head_pallas(x.reshape(B * S, E),
                               params["norm_g"], params["norm_b"],
                               params["out_w"])
    return logits.reshape(B, S, V)


# ---------------------------------- main ------------------------------------

if __name__ == "__main__":
    # small, lane-aligned, forward-consistent sizes
    encoder_count = 2
    heads = 4
    embed_size = 128
    feedforward_size = 256
    embeddings = 256      # vocab size
    seq_len = 16
    batch = 2

    key = jax.random.PRNGKey(0)
    pkey, dkey = jax.random.split(key)

    params = init_params(pkey, encoder_count, heads, embed_size,
                         feedforward_size, embeddings, seq_len)
    token_ids = jax.random.randint(dkey, (batch, seq_len), 0, embeddings,
                                   dtype=jnp.int32)

    fwd = jax.jit(bert_forward, static_argnums=2)
    out = fwd(params, token_ids, heads)
    out = jax.block_until_ready(out)
    assert out.shape == (batch, seq_len, embeddings)
    assert bool(jnp.all(jnp.isfinite(out)))
    print("KERNEL_OK")
</pallas_src>

<mosaic_0001>
module attributes {stable_mosaic.version = 11 : i64} {
  func.func @_encoder_layer_kernel(%arg0: i32, %arg1: memref<1x16x128xbf16, #tpu.memory_space<vmem>>, %arg2: memref<128x384xbf16, #tpu.memory_space<vmem>>, %arg3: memref<1x384xf32, #tpu.memory_space<vmem>>, %arg4: memref<128x128xbf16, #tpu.memory_space<vmem>>, %arg5: memref<1x128xf32, #tpu.memory_space<vmem>>, %arg6: memref<1x128xf32, #tpu.memory_space<vmem>>, %arg7: memref<1x128xf32, #tpu.memory_space<vmem>>, %arg8: memref<128x256xbf16, #tpu.memory_space<vmem>>, %arg9: memref<1x256xf32, #tpu.memory_space<vmem>>, %arg10: memref<256x128xbf16, #tpu.memory_space<vmem>>, %arg11: memref<1x128xf32, #tpu.memory_space<vmem>>, %arg12: memref<1x128xf32, #tpu.memory_space<vmem>>, %arg13: memref<1x128xf32, #tpu.memory_space<vmem>>, %arg14: memref<1x16x128xbf16, #tpu.memory_space<vmem>>) attributes {dimension_semantics = [#tpu.dimension_semantics<parallel>], iteration_bounds = array<i64: 2>, scalar_prefetch = 0 : i64, scratch_operands = 0 : i64, tpu.core_type = #tpu.core_type<tc>, window_params = [{transform_indices = @transform_0, window_bounds = array<i64: 1, 16, 128>}, {pipeline_mode = #tpu.pipeline_mode<synchronous>, transform_indices = @transform_1, window_bounds = array<i64: 128, 384>}, {pipeline_mode = #tpu.pipeline_mode<synchronous>, transform_indices = @transform_2, window_bounds = array<i64: 1, 384>}, {pipeline_mode = #tpu.pipeline_mode<synchronous>, transform_indices = @transform_3, window_bounds = array<i64: 128, 128>}, {pipeline_mode = #tpu.pipeline_mode<synchronous>, transform_indices = @transform_4, window_bounds = array<i64: 1, 128>}, {pipeline_mode = #tpu.pipeline_mode<synchronous>, transform_indices = @transform_5, window_bounds = array<i64: 1, 128>}, {pipeline_mode = #tpu.pipeline_mode<synchronous>, transform_indices = @transform_6, window_bounds = array<i64: 1, 128>}, {pipeline_mode = #tpu.pipeline_mode<synchronous>, transform_indices = @transform_7, window_bounds = array<i64: 128, 256>}, {pipeline_mode = #tpu.pipeline_mode<synchronous>, transform_indices = @transform_8, window_bounds = array<i64: 1, 256>}, {pipeline_mode = #tpu.pipeline_mode<synchronous>, transform_indices = @transform_9, window_bounds = array<i64: 256, 128>}, {pipeline_mode = #tpu.pipeline_mode<synchronous>, transform_indices = @transform_10, window_bounds = array<i64: 1, 128>}, {pipeline_mode = #tpu.pipeline_mode<synchronous>, transform_indices = @transform_11, window_bounds = array<i64: 1, 128>}, {pipeline_mode = #tpu.pipeline_mode<synchronous>, transform_indices = @transform_12, window_bounds = array<i64: 1, 128>}, {transform_indices = @transform_13, window_bounds = array<i64: 1, 16, 128>}]} {
    %c0 = arith.constant 0 : index
    %c0_0 = arith.constant 0 : index
    %c0_1 = arith.constant 0 : index
    %0 = vector.load %arg1[%c0, %c0_0, %c0_1] : memref<1x16x128xbf16, #tpu.memory_space<vmem>>, vector<1x16x128xbf16>
    %1 = vector.shape_cast %0 : vector<1x16x128xbf16> to vector<16x128xbf16>
    %2 = arith.extf %1 : vector<16x128xbf16> to vector<16x128xf32>
    %c0_2 = arith.constant 0 : index
    %c0_3 = arith.constant 0 : index
    %3 = vector.load %arg2[%c0_2, %c0_3] : memref<128x384xbf16, #tpu.memory_space<vmem>>, vector<128x384xbf16>
    %cst = arith.constant dense<0.000000e+00> : vector<16x384xf32>
    %4 = tpu.matmul %1, %3, %cst {dimension_numbers = #tpu.dot_dimension_numbers<[1], [0], [0], [1], [0, 0, 1, 1], [], []>} : vector<16x128xbf16>, vector<128x384xbf16>, vector<16x384xf32> -> vector<16x384xf32>
    %c0_4 = arith.constant 0 : index
    %c0_5 = arith.constant 0 : index
    %5 = vector.load %arg3[%c0_4, %c0_5] : memref<1x384xf32, #tpu.memory_space<vmem>>, vector<1x384xf32>
    %6 = vector.broadcast %5 : vector<1x384xf32> to vector<16x384xf32>
    %7 = arith.addf %4, %6 : vector<16x384xf32>
    %8 = vector.extract_strided_slice %7 {offsets = [0, 0], sizes = [16, 32], strides = [1, 1]} : vector<16x384xf32> to vector<16x32xf32>
    %cst_6 = arith.constant 0.176776692 : f32
    %9 = vector.broadcast %cst_6 : f32 to vector<16x32xf32>
    %10 = arith.mulf %8, %9 : vector<16x32xf32>
    %11 = arith.truncf %10 : vector<16x32xf32> to vector<16x32xbf16>
    %12 = vector.extract_strided_slice %7 {offsets = [0, 128], sizes = [16, 32], strides = [1, 1]} : vector<16x384xf32> to vector<16x32xf32>
    %13 = arith.truncf %12 : vector<16x32xf32> to vector<16x32xbf16>
    %14 = vector.extract_strided_slice %7 {offsets = [0, 256], sizes = [16, 32], strides = [1, 1]} : vector<16x384xf32> to vector<16x32xf32>
    %15 = arith.truncf %14 : vector<16x32xf32> to vector<16x32xbf16>
    %cst_7 = arith.constant dense<0.000000e+00> : vector<16x16xf32>
    %16 = tpu.matmul %11, %13, %cst_7 {dimension_numbers = #tpu.dot_dimension_numbers<[1], [1], [0], [0], [0, 0, 1, 0], [], []>} : vector<16x32xbf16>, vector<16x32xbf16>, vector<16x16xf32> -> vector<16x16xf32>
    %cst_8 = arith.constant dense<0xFF800000> : vector<16xf32>
    %17 = vector.multi_reduction <maximumf>, %16, %cst_8 [1] : vector<16x16xf32> to vector<16xf32>
    %18 = vector.shape_cast %17 : vector<16xf32> to vector<16x1xf32>
    %19 = vector.broadcast %18 : vector<16x1xf32> to vector<16x16xf32>
    %20 = arith.subf %16, %19 : vector<16x16xf32>
    %21 = math.exp %20 : vector<16x16xf32>
    %cst_9 = arith.constant dense<0.000000e+00> : vector<16xf32>
    %22 = vector.multi_reduction <add>, %21, %cst_9 [1] : vector<16x16xf32> to vector<16xf32>
    %23 = vector.shape_cast %22 : vector<16xf32> to vector<16x1xf32>
    %24 = tpu.reciprocal %23 {approx = true} : vector<16x1xf32> -> vector<16x1xf32>
    %25 = vector.broadcast %24 : vector<16x1xf32> to vector<16x16xf32>
    %26 = arith.mulf %21, %25 : vector<16x16xf32>
    %27 = arith.truncf %26 : vector<16x16xf32> to vector<16x16xbf16>
    %cst_10 = arith.constant dense<0.000000e+00> : vector<16x32xf32>
    %28 = tpu.matmul %27, %15, %cst_10 {dimension_numbers = #tpu.dot_dimension_numbers<[1], [0], [0], [1], [0, 0, 1, 1], [], []>} : vector<16x16xbf16>, vector<16x32xbf16>, vector<16x32xf32> -> vector<16x32xf32>
    %29 = vector.extract_strided_slice %7 {offsets = [0, 32], sizes = [16, 32], strides = [1, 1]} : vector<16x384xf32> to vector<16x32xf32>
    %cst_11 = arith.constant 0.176776692 : f32
    %30 = vector.broadcast %cst_11 : f32 to vector<16x32xf32>
    %31 = arith.mulf %29, %30 : vector<16x32xf32>
    %32 = arith.truncf %31 : vector<16x32xf32> to vector<16x32xbf16>
    %33 = vector.extract_strided_slice %7 {offsets = [0, 160], sizes = [16, 32], strides = [1, 1]} : vector<16x384xf32> to vector<16x32xf32>
    %34 = arith.truncf %33 : vector<16x32xf32> to vector<16x32xbf16>
    %35 = vector.extract_strided_slice %7 {offsets = [0, 288], sizes = [16, 32], strides = [1, 1]} : vector<16x384xf32> to vector<16x32xf32>
    %36 = arith.truncf %35 : vector<16x32xf32> to vector<16x32xbf16>
    %cst_12 = arith.constant dense<0.000000e+00> : vector<16x16xf32>
    %37 = tpu.matmul %32, %34, %cst_12 {dimension_numbers = #tpu.dot_dimension_numbers<[1], [1], [0], [0], [0, 0, 1, 0], [], []>} : vector<16x32xbf16>, vector<16x32xbf16>, vector<16x16xf32> -> vector<16x16xf32>
    %cst_13 = arith.constant dense<0xFF800000> : vector<16xf32>
    %38 = vector.multi_reduction <maximumf>, %37, %cst_13 [1] : vector<16x16xf32> to vector<16xf32>
    %39 = vector.shape_cast %38 : vector<16xf32> to vector<16x1xf32>
    %40 = vector.broadcast %39 : vector<16x1xf32> to vector<16x16xf32>
    %41 = arith.subf %37, %40 : vector<16x16xf32>
    %42 = math.exp %41 : vector<16x16xf32>
    %cst_14 = arith.constant dense<0.000000e+00> : vector<16xf32>
    %43 = vector.multi_reduction <add>, %42, %cst_14 [1] : vector<16x16xf32> to vector<16xf32>
    %44 = vector.shape_cast %43 : vector<16xf32> to vector<16x1xf32>
    %45 = tpu.reciprocal %44 {approx = true} : vector<16x1xf32> -> vector<16x1xf32>
    %46 = vector.broadcast %45 : vector<16x1xf32> to vector<16x16xf32>
    %47 = arith.mulf %42, %46 : vector<16x16xf32>
    %48 = arith.truncf %47 : vector<16x16xf32> to vector<16x16xbf16>
    %cst_15 = arith.constant dense<0.000000e+00> : vector<16x32xf32>
    %49 = tpu.matmul %48, %36, %cst_15 {dimension_numbers = #tpu.dot_dimension_numbers<[1], [0], [0], [1], [0, 0, 1, 1], [], []>} : vector<16x16xbf16>, vector<16x32xbf16>, vector<16x32xf32> -> vector<16x32xf32>
    %50 = vector.extract_strided_slice %7 {offsets = [0, 64], sizes = [16, 32], strides = [1, 1]} : vector<16x384xf32> to vector<16x32xf32>
    %cst_16 = arith.constant 0.176776692 : f32
    %51 = vector.broadcast %cst_16 : f32 to vector<16x32xf32>
    %52 = arith.mulf %50, %51 : vector<16x32xf32>
    %53 = arith.truncf %52 : vector<16x32xf32> to vector<16x32xbf16>
    %54 = vector.extract_strided_slice %7 {offsets = [0, 192], sizes = [16, 32], strides = [1, 1]} : vector<16x384xf32> to vector<16x32xf32>
    %55 = arith.truncf %54 : vector<16x32xf32> to vector<16x32xbf16>
    %56 = vector.extract_strided_slice %7 {offsets = [0, 320], sizes = [16, 32], strides = [1, 1]} : vector<16x384xf32> to vector<16x32xf32>
    %57 = arith.truncf %56 : vector<16x32xf32> to vector<16x32xbf16>
    %cst_17 = arith.constant dense<0.000000e+00> : vector<16x16xf32>
    %58 = tpu.matmul %53, %55, %cst_17 {dimension_numbers = #tpu.dot_dimension_numbers<[1], [1], [0], [0], [0, 0, 1, 0], [], []>} : vector<16x32xbf16>, vector<16x32xbf16>, vector<16x16xf32> -> vector<16x16xf32>
    %cst_18 = arith.constant dense<0xFF800000> : vector<16xf32>
    %59 = vector.multi_reduction <maximumf>, %58, %cst_18 [1] : vector<16x16xf32> to vector<16xf32>
    %60 = vector.shape_cast %59 : vector<16xf32> to vector<16x1xf32>
    %61 = vector.broadcast %60 : vector<16x1xf32> to vector<16x16xf32>
    %62 = arith.subf %58, %61 : vector<16x16xf32>
    %63 = math.exp %62 : vector<16x16xf32>
    %cst_19 = arith.constant dense<0.000000e+00> : vector<16xf32>
    %64 = vector.multi_reduction <add>, %63, %cst_19 [1] : vector<16x16xf32> to vector<16xf32>
    %65 = vector.shape_cast %64 : vector<16xf32> to vector<16x1xf32>
    %66 = tpu.reciprocal %65 {approx = true} : vector<16x1xf32> -> vector<16x1xf32>
    %67 = vector.broadcast %66 : vector<16x1xf32> to vector<16x16xf32>
    %68 = arith.mulf %63, %67 : vector<16x16xf32>
    %69 = arith.truncf %68 : vector<16x16xf32> to vector<16x16xbf16>
    %cst_20 = arith.constant dense<0.000000e+00> : vector<16x32xf32>
    %70 = tpu.matmul %69, %57, %cst_20 {dimension_numbers = #tpu.dot_dimension_numbers<[1], [0], [0], [1], [0, 0, 1, 1], [], []>} : vector<16x16xbf16>, vector<16x32xbf16>, vector<16x32xf32> -> vector<16x32xf32>
    %71 = vector.extract_strided_slice %7 {offsets = [0, 96], sizes = [16, 32], strides = [1, 1]} : vector<16x384xf32> to vector<16x32xf32>
    %cst_21 = arith.constant 0.176776692 : f32
    %72 = vector.broadcast %cst_21 : f32 to vector<16x32xf32>
    %73 = arith.mulf %71, %72 : vector<16x32xf32>
    %74 = arith.truncf %73 : vector<16x32xf32> to vector<16x32xbf16>
    %75 = vector.extract_strided_slice %7 {offsets = [0, 224], sizes = [16, 32], strides = [1, 1]} : vector<16x384xf32> to vector<16x32xf32>
    %76 = arith.truncf %75 : vector<16x32xf32> to vector<16x32xbf16>
    %77 = vector.extract_strided_slice %7 {offsets = [0, 352], sizes = [16, 32], strides = [1, 1]} : vector<16x384xf32> to vector<16x32xf32>
    %78 = arith.truncf %77 : vector<16x32xf32> to vector<16x32xbf16>
    %cst_22 = arith.constant dense<0.000000e+00> : vector<16x16xf32>
    %79 = tpu.matmul %74, %76, %cst_22 {dimension_numbers = #tpu.dot_dimension_numbers<[1], [1], [0], [0], [0, 0, 1, 0], [], []>} : vector<16x32xbf16>, vector<16x32xbf16>, vector<16x16xf32> -> vector<16x16xf32>
    %cst_23 = arith.constant dense<0xFF800000> : vector<16xf32>
    %80 = vector.multi_reduction <maximumf>, %79, %cst_23 [1] : vector<16x16xf32> to vector<16xf32>
    %81 = vector.shape_cast %80 : vector<16xf32> to vector<16x1xf32>
    %82 = vector.broadcast %81 : vector<16x1xf32> to vector<16x16xf32>
    %83 = arith.subf %79, %82 : vector<16x16xf32>
    %84 = math.exp %83 : vector<16x16xf32>
    %cst_24 = arith.constant dense<0.000000e+00> : vector<16xf32>
    %85 = vector.multi_reduction <add>, %84, %cst_24 [1] : vector<16x16xf32> to vector<16xf32>
    %86 = vector.shape_cast %85 : vector<16xf32> to vector<16x1xf32>
    %87 = tpu.reciprocal %86 {approx = true} : vector<16x1xf32> -> vector<16x1xf32>
    %88 = vector.broadcast %87 : vector<16x1xf32> to vector<16x16xf32>
    %89 = arith.mulf %84, %88 : vector<16x16xf32>
    %90 = arith.truncf %89 : vector<16x16xf32> to vector<16x16xbf16>
    %cst_25 = arith.constant dense<0.000000e+00> : vector<16x32xf32>
    %91 = tpu.matmul %90, %78, %cst_25 {dimension_numbers = #tpu.dot_dimension_numbers<[1], [0], [0], [1], [0, 0, 1, 1], [], []>} : vector<16x16xbf16>, vector<16x32xbf16>, vector<16x32xf32> -> vector<16x32xf32>
    %92 = tpu.concatenate %28, %49, %70, %91 in 1 : vector<16x32xf32>, vector<16x32xf32>, vector<16x32xf32>, vector<16x32xf32> -> vector<16x128xf32>
    %93 = arith.truncf %92 : vector<16x128xf32> to vector<16x128xbf16>
    %c0_26 = arith.constant 0 : index
    %c0_27 = arith.constant 0 : index
    %94 = vector.load %arg4[%c0_26, %c0_27] : memref<128x128xbf16, #tpu.memory_space<vmem>>, vector<128x128xbf16>
    %cst_28 = arith.constant dense<0.000000e+00> : vector<16x128xf32>
    %95 = tpu.matmul %93, %94, %cst_28 {dimension_numbers = #tpu.dot_dimension_numbers<[1], [0], [0], [1], [0, 0, 1, 1], [], []>} : vector<16x128xbf16>, vector<128x128xbf16>, vector<16x128xf32> -> vector<16x128xf32>
    %c0_29 = arith.constant 0 : index
    %c0_30 = arith.constant 0 : index
    %96 = vector.load %arg5[%c0_29, %c0_30] : memref<1x128xf32, #tpu.memory_space<vmem>>, vector<1x128xf32>
    %97 = vector.broadcast %96 : vector<1x128xf32> to vector<16x128xf32>
    %98 = arith.addf %95, %97 : vector<16x128xf32>
    %99 = arith.addf %98, %2 : vector<16x128xf32>
    %c0_31 = arith.constant 0 : index
    %c0_32 = arith.constant 0 : index
    %100 = vector.load %arg6[%c0_31, %c0_32] : memref<1x128xf32, #tpu.memory_space<vmem>>, vector<1x128xf32>
    %c0_33 = arith.constant 0 : index
    %c0_34 = arith.constant 0 : index
    %101 = vector.load %arg7[%c0_33, %c0_34] : memref<1x128xf32, #tpu.memory_space<vmem>>, vector<1x128xf32>
    %cst_35 = arith.constant dense<0.000000e+00> : vector<16xf32>
    %102 = vector.multi_reduction <add>, %99, %cst_35 [1] : vector<16x128xf32> to vector<16xf32>
    %103 = vector.shape_cast %102 : vector<16xf32> to vector<16x1xf32>
    %cst_36 = arith.constant 1.280000e+02 : f32
    %104 = vector.broadcast %cst_36 : f32 to vector<16x1xf32>
    %105 = arith.divf %103, %104 : vector<16x1xf32>
    %106 = vector.broadcast %105 : vector<16x1xf32> to vector<16x128xf32>
    %107 = arith.subf %99, %106 : vector<16x128xf32>
    %108 = arith.mulf %107, %107 : vector<16x128xf32>
    %cst_37 = arith.constant dense<0.000000e+00> : vector<16xf32>
    %109 = vector.multi_reduction <add>, %108, %cst_37 [1] : vector<16x128xf32> to vector<16xf32>
    %110 = vector.shape_cast %109 : vector<16xf32> to vector<16x1xf32>
    %cst_38 = arith.constant 1.280000e+02 : f32
    %111 = vector.broadcast %cst_38 : f32 to vector<16x1xf32>
    %112 = arith.divf %110, %111 : vector<16x1xf32>
    %113 = vector.broadcast %105 : vector<16x1xf32> to vector<16x128xf32>
    %114 = arith.subf %99, %113 : vector<16x128xf32>
    %cst_39 = arith.constant 9.99999974E-6 : f32
    %115 = vector.broadcast %cst_39 : f32 to vector<16x1xf32>
    %116 = arith.addf %112, %115 : vector<16x1xf32>
    %117 = math.rsqrt %116 : vector<16x1xf32>
    %118 = vector.broadcast %117 : vector<16x1xf32> to vector<16x128xf32>
    %119 = arith.mulf %114, %118 : vector<16x128xf32>
    %120 = vector.broadcast %100 : vector<1x128xf32> to vector<16x128xf32>
    %121 = arith.mulf %119, %120 : vector<16x128xf32>
    %122 = vector.broadcast %101 : vector<1x128xf32> to vector<16x128xf32>
    %123 = arith.addf %121, %122 : vector<16x128xf32>
    %124 = arith.truncf %123 : vector<16x128xf32> to vector<16x128xbf16>
    %c0_40 = arith.constant 0 : index
    %c0_41 = arith.constant 0 : index
    %125 = vector.load %arg8[%c0_40, %c0_41] : memref<128x256xbf16, #tpu.memory_space<vmem>>, vector<128x256xbf16>
    %cst_42 = arith.constant dense<0.000000e+00> : vector<16x256xf32>
    %126 = tpu.matmul %124, %125, %cst_42 {dimension_numbers = #tpu.dot_dimension_numbers<[1], [0], [0], [1], [0, 0, 1, 1], [], []>} : vector<16x128xbf16>, vector<128x256xbf16>, vector<16x256xf32> -> vector<16x256xf32>
    %c0_43 = arith.constant 0 : index
    %c0_44 = arith.constant 0 : index
    %127 = vector.load %arg9[%c0_43, %c0_44] : memref<1x256xf32, #tpu.memory_space<vmem>>, vector<1x256xf32>
    %128 = vector.broadcast %127 : vector<1x256xf32> to vector<16x256xf32>
    %129 = arith.addf %126, %128 : vector<16x256xf32>
    %130 = arith.mulf %129, %129 : vector<16x256xf32>
    %131 = arith.mulf %129, %130 : vector<16x256xf32>
    %cst_45 = arith.constant 4.471500e-02 : f32
    %132 = vector.broadcast %cst_45 : f32 to vector<16x256xf32>
    %133 = arith.mulf %132, %131 : vector<16x256xf32>
    %134 = arith.addf %129, %133 : vector<16x256xf32>
    %cst_46 = arith.constant 0.797884583 : f32
    %135 = vector.broadcast %cst_46 : f32 to vector<16x256xf32>
    %136 = arith.mulf %135, %134 : vector<16x256xf32>
    %137 = math.tanh %136 : vector<16x256xf32>
    %cst_47 = arith.constant 1.000000e+00 : f32
    %138 = vector.broadcast %cst_47 : f32 to vector<16x256xf32>
    %139 = arith.addf %138, %137 : vector<16x256xf32>
    %cst_48 = arith.constant 5.000000e-01 : f32
    %140 = vector.broadcast %cst_48 : f32 to vector<16x256xf32>
    %141 = arith.mulf %140, %139 : vector<16x256xf32>
    %142 = arith.mulf %129, %141 : vector<16x256xf32>
    %143 = arith.truncf %142 : vector<16x256xf32> to vector<16x256xbf16>
    %c0_49 = arith.constant 0 : index
    %c0_50 = arith.constant 0 : index
    %144 = vector.load %arg10[%c0_49, %c0_50] : memref<256x128xbf16, #tpu.memory_space<vmem>>, vector<256x128xbf16>
    %cst_51 = arith.constant dense<0.000000e+00> : vector<16x128xf32>
    %145 = tpu.matmul %143, %144, %cst_51 {dimension_numbers = #tpu.dot_dimension_numbers<[1], [0], [0], [1], [0, 0, 1, 1], [], []>} : vector<16x256xbf16>, vector<256x128xbf16>, vector<16x128xf32> -> vector<16x128xf32>
    %c0_52 = arith.constant 0 : index
    %c0_53 = arith.constant 0 : index
    %146 = vector.load %arg11[%c0_52, %c0_53] : memref<1x128xf32, #tpu.memory_space<vmem>>, vector<1x128xf32>
    %147 = vector.broadcast %146 : vector<1x128xf32> to vector<16x128xf32>
    %148 = arith.addf %145, %147 : vector<16x128xf32>
    %149 = arith.addf %148, %123 : vector<16x128xf32>
    %c0_54 = arith.constant 0 : index
    %c0_55 = arith.constant 0 : index
    %150 = vector.load %arg12[%c0_54, %c0_55] : memref<1x128xf32, #tpu.memory_space<vmem>>, vector<1x128xf32>
    %c0_56 = arith.constant 0 : index
    %c0_57 = arith.constant 0 : index
    %151 = vector.load %arg13[%c0_56, %c0_57] : memref<1x128xf32, #tpu.memory_space<vmem>>, vector<1x128xf32>
    %cst_58 = arith.constant dense<0.000000e+00> : vector<16xf32>
    %152 = vector.multi_reduction <add>, %149, %cst_58 [1] : vector<16x128xf32> to vector<16xf32>
    %153 = vector.shape_cast %152 : vector<16xf32> to vector<16x1xf32>
    %cst_59 = arith.constant 1.280000e+02 : f32
    %154 = vector.broadcast %cst_59 : f32 to vector<16x1xf32>
    %155 = arith.divf %153, %154 : vector<16x1xf32>
    %156 = vector.broadcast %155 : vector<16x1xf32> to vector<16x128xf32>
    %157 = arith.subf %149, %156 : vector<16x128xf32>
    %158 = arith.mulf %157, %157 : vector<16x128xf32>
    %cst_60 = arith.constant dense<0.000000e+00> : vector<16xf32>
    %159 = vector.multi_reduction <add>, %158, %cst_60 [1] : vector<16x128xf32> to vector<16xf32>
    %160 = vector.shape_cast %159 : vector<16xf32> to vector<16x1xf32>
    %cst_61 = arith.constant 1.280000e+02 : f32
    %161 = vector.broadcast %cst_61 : f32 to vector<16x1xf32>
    %162 = arith.divf %160, %161 : vector<16x1xf32>
    %163 = vector.broadcast %155 : vector<16x1xf32> to vector<16x128xf32>
    %164 = arith.subf %149, %163 : vector<16x128xf32>
    %cst_62 = arith.constant 9.99999974E-6 : f32
    %165 = vector.broadcast %cst_62 : f32 to vector<16x1xf32>
    %166 = arith.addf %162, %165 : vector<16x1xf32>
    %167 = math.rsqrt %166 : vector<16x1xf32>
    %168 = vector.broadcast %167 : vector<16x1xf32> to vector<16x128xf32>
    %169 = arith.mulf %164, %168 : vector<16x128xf32>
    %170 = vector.broadcast %150 : vector<1x128xf32> to vector<16x128xf32>
    %171 = arith.mulf %169, %170 : vector<16x128xf32>
    %172 = vector.broadcast %151 : vector<1x128xf32> to vector<16x128xf32>
    %173 = arith.addf %171, %172 : vector<16x128xf32>
    %174 = arith.truncf %173 : vector<16x128xf32> to vector<16x128xbf16>
    %c0_63 = arith.constant 0 : index
    %c0_64 = arith.constant 0 : index
    %c0_65 = arith.constant 0 : index
    %175 = vector.load %arg14[%c0_63, %c0_64, %c0_65] : memref<1x16x128xbf16, #tpu.memory_space<vmem>>, vector<1x16x128xbf16>
    %176 = vector.shape_cast %175 : vector<1x16x128xbf16> to vector<16x128xbf16>
    %177 = vector.shape_cast %174 : vector<16x128xbf16> to vector<1x16x128xbf16>
    tpu.vector_store %arg14[%c0_63, %c0_64, %c0_65], %177 {strides = array<i32>} : memref<1x16x128xbf16, #tpu.memory_space<vmem>>, vector<1x16x128xbf16>,
    return
  }
  func.func @transform_0(%arg0: i32) -> (i32, i32, i32) {
    %c0_i32 = arith.constant 0 : i32
    %c0_i32_0 = arith.constant 0 : i32
    %c0_i32_1 = arith.constant 0 : i32
    return %arg0, %c0_i32, %c0_i32_0 : i32, i32, i32
  }
  func.func @transform_1(%arg0: i32) -> (i32, i32) {
    %c0_i32 = arith.constant 0 : i32
    %c0_i32_0 = arith.constant 0 : i32
    %c0_i32_1 = arith.constant 0 : i32
    return %c0_i32, %c0_i32_0 : i32, i32
  }
  func.func @transform_2(%arg0: i32) -> (i32, i32) {
    %c0_i32 = arith.constant 0 : i32
    %c0_i32_0 = arith.constant 0 : i32
    %c0_i32_1 = arith.constant 0 : i32
    return %c0_i32, %c0_i32_0 : i32, i32
  }
  func.func @transform_3(%arg0: i32) -> (i32, i32) {
    %c0_i32 = arith.constant 0 : i32
    %c0_i32_0 = arith.constant 0 : i32
    %c0_i32_1 = arith.constant 0 : i32
    return %c0_i32, %c0_i32_0 : i32, i32
  }
  func.func @transform_4(%arg0: i32) -> (i32, i32) {
    %c0_i32 = arith.constant 0 : i32
    %c0_i32_0 = arith.constant 0 : i32
    %c0_i32_1 = arith.constant 0 : i32
    return %c0_i32, %c0_i32_0 : i32, i32
  }
  func.func @transform_5(%arg0: i32) -> (i32, i32) {
    %c0_i32 = arith.constant 0 : i32
    %c0_i32_0 = arith.constant 0 : i32
    %c0_i32_1 = arith.constant 0 : i32
    return %c0_i32, %c0_i32_0 : i32, i32
  }
  func.func @transform_6(%arg0: i32) -> (i32, i32) {
    %c0_i32 = arith.constant 0 : i32
    %c0_i32_0 = arith.constant 0 : i32
    %c0_i32_1 = arith.constant 0 : i32
    return %c0_i32, %c0_i32_0 : i32, i32
  }
  func.func @transform_7(%arg0: i32) -> (i32, i32) {
    %c0_i32 = arith.constant 0 : i32
    %c0_i32_0 = arith.constant 0 : i32
    %c0_i32_1 = arith.constant 0 : i32
    return %c0_i32, %c0_i32_0 : i32, i32
  }
  func.func @transform_8(%arg0: i32) -> (i32, i32) {
    %c0_i32 = arith.constant 0 : i32
    %c0_i32_0 = arith.constant 0 : i32
    %c0_i32_1 = arith.constant 0 : i32
    return %c0_i32, %c0_i32_0 : i32, i32
  }
  func.func @transform_9(%arg0: i32) -> (i32, i32) {
    %c0_i32 = arith.constant 0 : i32
    %c0_i32_0 = arith.constant 0 : i32
    %c0_i32_1 = arith.constant 0 : i32
    return %c0_i32, %c0_i32_0 : i32, i32
  }
  func.func @transform_10(%arg0: i32) -> (i32, i32) {
    %c0_i32 = arith.constant 0 : i32
    %c0_i32_0 = arith.constant 0 : i32
    %c0_i32_1 = arith.constant 0 : i32
    return %c0_i32, %c0_i32_0 : i32, i32
  }
  func.func @transform_11(%arg0: i32) -> (i32, i32) {
    %c0_i32 = arith.constant 0 : i32
    %c0_i32_0 = arith.constant 0 : i32
    %c0_i32_1 = arith.constant 0 : i32
    return %c0_i32, %c0_i32_0 : i32, i32
  }
  func.func @transform_12(%arg0: i32) -> (i32, i32) {
    %c0_i32 = arith.constant 0 : i32
    %c0_i32_0 = arith.constant 0 : i32
    %c0_i32_1 = arith.constant 0 : i32
    return %c0_i32, %c0_i32_0 : i32, i32
  }
  func.func @transform_13(%arg0: i32) -> (i32, i32, i32) {
    %c0_i32 = arith.constant 0 : i32
    %c0_i32_0 = arith.constant 0 : i32
    %c0_i32_1 = arith.constant 0 : i32
    return %arg0, %c0_i32, %c0_i32_0 : i32, i32, i32
  }
}

module attributes {stable_mosaic.version = 11 : i64} {
  func.func @_final_head_kernel(%arg0: i32, %arg1: memref<16x128xbf16, #tpu.memory_space<vmem>>, %arg2: memref<1x128xf32, #tpu.memory_space<vmem>>, %arg3: memref<1x128xf32, #tpu.memory_space<vmem>>, %arg4: memref<128x256xbf16, #tpu.memory_space<vmem>>, %arg5: memref<16x256xf32, #tpu.memory_space<vmem>>) attributes {dimension_semantics = [#tpu.dimension_semantics<parallel>], iteration_bounds = array<i64: 2>, scalar_prefetch = 0 : i64, scratch_operands = 0 : i64, tpu.core_type = #tpu.core_type<tc>, window_params = [{transform_indices = @transform_0, window_bounds = array<i64: 16, 128>}, {pipeline_mode = #tpu.pipeline_mode<synchronous>, transform_indices = @transform_1, window_bounds = array<i64: 1, 128>}, {pipeline_mode = #tpu.pipeline_mode<synchronous>, transform_indices = @transform_2, window_bounds = array<i64: 1, 128>}, {pipeline_mode = #tpu.pipeline_mode<synchronous>, transform_indices = @transform_3, window_bounds = array<i64: 128, 256>}, {transform_indices = @transform_4, window_bounds = array<i64: 16, 256>}]} {
    %c0 = arith.constant 0 : index
    %c0_0 = arith.constant 0 : index
    %0 = vector.load %arg1[%c0, %c0_0] : memref<16x128xbf16, #tpu.memory_space<vmem>>, vector<16x128xbf16>
    %1 = arith.extf %0 : vector<16x128xbf16> to vector<16x128xf32>
    %c0_1 = arith.constant 0 : index
    %c0_2 = arith.constant 0 : index
    %2 = vector.load %arg2[%c0_1, %c0_2] : memref<1x128xf32, #tpu.memory_space<vmem>>, vector<1x128xf32>
    %c0_3 = arith.constant 0 : index
    %c0_4 = arith.constant 0 : index
    %3 = vector.load %arg3[%c0_3, %c0_4] : memref<1x128xf32, #tpu.memory_space<vmem>>, vector<1x128xf32>
    %cst = arith.constant dense<0.000000e+00> : vector<16xf32>
    %4 = vector.multi_reduction <add>, %1, %cst [1] : vector<16x128xf32> to vector<16xf32>
    %5 = vector.shape_cast %4 : vector<16xf32> to vector<16x1xf32>
    %cst_5 = arith.constant 1.280000e+02 : f32
    %6 = vector.broadcast %cst_5 : f32 to vector<16x1xf32>
    %7 = arith.divf %5, %6 : vector<16x1xf32>
    %8 = vector.broadcast %7 : vector<16x1xf32> to vector<16x128xf32>
    %9 = arith.subf %1, %8 : vector<16x128xf32>
    %10 = arith.mulf %9, %9 : vector<16x128xf32>
    %cst_6 = arith.constant dense<0.000000e+00> : vector<16xf32>
    %11 = vector.multi_reduction <add>, %10, %cst_6 [1] : vector<16x128xf32> to vector<16xf32>
    %12 = vector.shape_cast %11 : vector<16xf32> to vector<16x1xf32>
    %cst_7 = arith.constant 1.280000e+02 : f32
    %13 = vector.broadcast %cst_7 : f32 to vector<16x1xf32>
    %14 = arith.divf %12, %13 : vector<16x1xf32>
    %15 = vector.broadcast %7 : vector<16x1xf32> to vector<16x128xf32>
    %16 = arith.subf %1, %15 : vector<16x128xf32>
    %cst_8 = arith.constant 9.99999974E-6 : f32
    %17 = vector.broadcast %cst_8 : f32 to vector<16x1xf32>
    %18 = arith.addf %14, %17 : vector<16x1xf32>
    %19 = math.rsqrt %18 : vector<16x1xf32>
    %20 = vector.broadcast %19 : vector<16x1xf32> to vector<16x128xf32>
    %21 = arith.mulf %16, %20 : vector<16x128xf32>
    %22 = vector.broadcast %2 : vector<1x128xf32> to vector<16x128xf32>
    %23 = arith.mulf %21, %22 : vector<16x128xf32>
    %24 = vector.broadcast %3 : vector<1x128xf32> to vector<16x128xf32>
    %25 = arith.addf %23, %24 : vector<16x128xf32>
    %26 = arith.truncf %25 : vector<16x128xf32> to vector<16x128xbf16>
    %c0_9 = arith.constant 0 : index
    %c0_10 = arith.constant 0 : index
    %27 = vector.load %arg4[%c0_9, %c0_10] : memref<128x256xbf16, #tpu.memory_space<vmem>>, vector<128x256xbf16>
    %cst_11 = arith.constant dense<0.000000e+00> : vector<16x256xf32>
    %28 = tpu.matmul %26, %27, %cst_11 {dimension_numbers = #tpu.dot_dimension_numbers<[1], [0], [0], [1], [0, 0, 1, 1], [], []>} : vector<16x128xbf16>, vector<128x256xbf16>, vector<16x256xf32> -> vector<16x256xf32>
    %c0_12 = arith.constant 0 : index
    %c0_13 = arith.constant 0 : index
    %29 = vector.load %arg5[%c0_12, %c0_13] : memref<16x256xf32, #tpu.memory_space<vmem>>, vector<16x256xf32>
    tpu.vector_store %arg5[%c0_12, %c0_13], %28 {strides = array<i32>} : memref<16x256xf32, #tpu.memory_space<vmem>>, vector<16x256xf32>,
    return
  }
  func.func @transform_0(%arg0: i32) -> (i32, i32) {
    %c0_i32 = arith.constant 0 : i32
    %c0_i32_0 = arith.constant 0 : i32
    return %arg0, %c0_i32 : i32, i32
  }
  func.func @transform_1(%arg0: i32) -> (i32, i32) {
    %c0_i32 = arith.constant 0 : i32
    %c0_i32_0 = arith.constant 0 : i32
    %c0_i32_1 = arith.constant 0 : i32
    return %c0_i32, %c0_i32_0 : i32, i32
  }
  func.func @transform_2(%arg0: i32) -> (i32, i32) {
    %c0_i32 = arith.constant 0 : i32
    %c0_i32_0 = arith.constant 0 : i32
    %c0_i32_1 = arith.constant 0 : i32
    return %c0_i32, %c0_i32_0 : i32, i32
  }
  func.func @transform_3(%arg0: i32) -> (i32, i32) {
    %c0_i32 = arith.constant 0 : i32
    %c0_i32_0 = arith.constant 0 : i32
    %c0_i32_1 = arith.constant 0 : i32
    return %c0_i32, %c0_i32_0 : i32, i32
  }
  func.func @transform_4(%arg0: i32) -> (i32, i32) {
    %c0_i32 = arith.constant 0 : i32
    %c0_i32_0 = arith.constant 0 : i32
    return %arg0, %c0_i32 : i32, i32
  }
}

module attributes {stable_mosaic.version = 11 : i64} {
  func.func @_encoder_layer_kernel(%arg0: i32, %arg1: memref<1x16x128xbf16, #tpu.memory_space<vmem>>, %arg2: memref<128x384xbf16, #tpu.memory_space<vmem>>, %arg3: memref<1x384xf32, #tpu.memory_space<vmem>>, %arg4: memref<128x128xbf16, #tpu.memory_space<vmem>>, %arg5: memref<1x128xf32, #tpu.memory_space<vmem>>, %arg6: memref<1x128xf32, #tpu.memory_space<vmem>>, %arg7: memref<1x128xf32, #tpu.memory_space<vmem>>, %arg8: memref<128x256xbf16, #tpu.memory_space<vmem>>, %arg9: memref<1x256xf32, #tpu.memory_space<vmem>>, %arg10: memref<256x128xbf16, #tpu.memory_space<vmem>>, %arg11: memref<1x128xf32, #tpu.memory_space<vmem>>, %arg12: memref<1x128xf32, #tpu.memory_space<vmem>>, %arg13: memref<1x128xf32, #tpu.memory_space<vmem>>, %arg14: memref<1x16x128xbf16, #tpu.memory_space<vmem>>) attributes {dimension_semantics = [#tpu.dimension_semantics<parallel>], iteration_bounds = array<i64: 2>, scalar_prefetch = 0 : i64, scratch_operands = 0 : i64, tpu.core_type = #tpu.core_type<tc>, window_params = [{transform_indices = @transform_0, window_bounds = array<i64: 1, 16, 128>}, {pipeline_mode = #tpu.pipeline_mode<synchronous>, transform_indices = @transform_1, window_bounds = array<i64: 128, 384>}, {pipeline_mode = #tpu.pipeline_mode<synchronous>, transform_indices = @transform_2, window_bounds = array<i64: 1, 384>}, {pipeline_mode = #tpu.pipeline_mode<synchronous>, transform_indices = @transform_3, window_bounds = array<i64: 128, 128>}, {pipeline_mode = #tpu.pipeline_mode<synchronous>, transform_indices = @transform_4, window_bounds = array<i64: 1, 128>}, {pipeline_mode = #tpu.pipeline_mode<synchronous>, transform_indices = @transform_5, window_bounds = array<i64: 1, 128>}, {pipeline_mode = #tpu.pipeline_mode<synchronous>, transform_indices = @transform_6, window_bounds = array<i64: 1, 128>}, {pipeline_mode = #tpu.pipeline_mode<synchronous>, transform_indices = @transform_7, window_bounds = array<i64: 128, 256>}, {pipeline_mode = #tpu.pipeline_mode<synchronous>, transform_indices = @transform_8, window_bounds = array<i64: 1, 256>}, {pipeline_mode = #tpu.pipeline_mode<synchronous>, transform_indices = @transform_9, window_bounds = array<i64: 256, 128>}, {pipeline_mode = #tpu.pipeline_mode<synchronous>, transform_indices = @transform_10, window_bounds = array<i64: 1, 128>}, {pipeline_mode = #tpu.pipeline_mode<synchronous>, transform_indices = @transform_11, window_bounds = array<i64: 1, 128>}, {pipeline_mode = #tpu.pipeline_mode<synchronous>, transform_indices = @transform_12, window_bounds = array<i64: 1, 128>}, {transform_indices = @transform_13, window_bounds = array<i64: 1, 16, 128>}]} {
    %c0 = arith.constant 0 : index
    %c0_0 = arith.constant 0 : index
    %c0_1 = arith.constant 0 : index
    %0 = vector.load %arg1[%c0, %c0_0, %c0_1] : memref<1x16x128xbf16, #tpu.memory_space<vmem>>, vector<1x16x128xbf16>
    %1 = vector.shape_cast %0 : vector<1x16x128xbf16> to vector<16x128xbf16>
    %2 = arith.extf %1 : vector<16x128xbf16> to vector<16x128xf32>
    %c0_2 = arith.constant 0 : index
    %c0_3 = arith.constant 0 : index
    %3 = vector.load %arg2[%c0_2, %c0_3] : memref<128x384xbf16, #tpu.memory_space<vmem>>, vector<128x384xbf16>
    %cst = arith.constant dense<0.000000e+00> : vector<16x384xf32>
    %4 = tpu.matmul %1, %3, %cst {dimension_numbers = #tpu.dot_dimension_numbers<[1], [0], [0], [1], [0, 0, 1, 1], [], []>} : vector<16x128xbf16>, vector<128x384xbf16>, vector<16x384xf32> -> vector<16x384xf32>
    %c0_4 = arith.constant 0 : index
    %c0_5 = arith.constant 0 : index
    %5 = vector.load %arg3[%c0_4, %c0_5] : memref<1x384xf32, #tpu.memory_space<vmem>>, vector<1x384xf32>
    %6 = vector.broadcast %5 : vector<1x384xf32> to vector<16x384xf32>
    %7 = arith.addf %4, %6 : vector<16x384xf32>
    %8 = vector.extract_strided_slice %7 {offsets = [0, 0], sizes = [16, 32], strides = [1, 1]} : vector<16x384xf32> to vector<16x32xf32>
    %cst_6 = arith.constant 0.176776692 : f32
    %9 = vector.broadcast %cst_6 : f32 to vector<16x32xf32>
    %10 = arith.mulf %8, %9 : vector<16x32xf32>
    %11 = arith.truncf %10 : vector<16x32xf32> to vector<16x32xbf16>
    %12 = vector.extract_strided_slice %7 {offsets = [0, 128], sizes = [16, 32], strides = [1, 1]} : vector<16x384xf32> to vector<16x32xf32>
    %13 = arith.truncf %12 : vector<16x32xf32> to vector<16x32xbf16>
    %14 = vector.extract_strided_slice %7 {offsets = [0, 256], sizes = [16, 32], strides = [1, 1]} : vector<16x384xf32> to vector<16x32xf32>
    %15 = arith.truncf %14 : vector<16x32xf32> to vector<16x32xbf16>
    %cst_7 = arith.constant dense<0.000000e+00> : vector<16x16xf32>
    %16 = tpu.matmul %11, %13, %cst_7 {dimension_numbers = #tpu.dot_dimension_numbers<[1], [1], [0], [0], [0, 0, 1, 0], [], []>} : vector<16x32xbf16>, vector<16x32xbf16>, vector<16x16xf32> -> vector<16x16xf32>
    %cst_8 = arith.constant dense<0xFF800000> : vector<16xf32>
    %17 = vector.multi_reduction <maximumf>, %16, %cst_8 [1] : vector<16x16xf32> to vector<16xf32>
    %18 = vector.shape_cast %17 : vector<16xf32> to vector<16x1xf32>
    %19 = vector.broadcast %18 : vector<16x1xf32> to vector<16x16xf32>
    %20 = arith.subf %16, %19 : vector<16x16xf32>
    %21 = math.exp %20 : vector<16x16xf32>
    %cst_9 = arith.constant dense<0.000000e+00> : vector<16xf32>
    %22 = vector.multi_reduction <add>, %21, %cst_9 [1] : vector<16x16xf32> to vector<16xf32>
    %23 = vector.shape_cast %22 : vector<16xf32> to vector<16x1xf32>
    %24 = tpu.reciprocal %23 {approx = true} : vector<16x1xf32> -> vector<16x1xf32>
    %25 = vector.broadcast %24 : vector<16x1xf32> to vector<16x16xf32>
    %26 = arith.mulf %21, %25 : vector<16x16xf32>
    %27 = arith.truncf %26 : vector<16x16xf32> to vector<16x16xbf16>
    %cst_10 = arith.constant dense<0.000000e+00> : vector<16x32xf32>
    %28 = tpu.matmul %27, %15, %cst_10 {dimension_numbers = #tpu.dot_dimension_numbers<[1], [0], [0], [1], [0, 0, 1, 1], [], []>} : vector<16x16xbf16>, vector<16x32xbf16>, vector<16x32xf32> -> vector<16x32xf32>
    %29 = vector.extract_strided_slice %7 {offsets = [0, 32], sizes = [16, 32], strides = [1, 1]} : vector<16x384xf32> to vector<16x32xf32>
    %cst_11 = arith.constant 0.176776692 : f32
    %30 = vector.broadcast %cst_11 : f32 to vector<16x32xf32>
    %31 = arith.mulf %29, %30 : vector<16x32xf32>
    %32 = arith.truncf %31 : vector<16x32xf32> to vector<16x32xbf16>
    %33 = vector.extract_strided_slice %7 {offsets = [0, 160], sizes = [16, 32], strides = [1, 1]} : vector<16x384xf32> to vector<16x32xf32>
    %34 = arith.truncf %33 : vector<16x32xf32> to vector<16x32xbf16>
    %35 = vector.extract_strided_slice %7 {offsets = [0, 288], sizes = [16, 32], strides = [1, 1]} : vector<16x384xf32> to vector<16x32xf32>
    %36 = arith.truncf %35 : vector<16x32xf32> to vector<16x32xbf16>
    %cst_12 = arith.constant dense<0.000000e+00> : vector<16x16xf32>
    %37 = tpu.matmul %32, %34, %cst_12 {dimension_numbers = #tpu.dot_dimension_numbers<[1], [1], [0], [0], [0, 0, 1, 0], [], []>} : vector<16x32xbf16>, vector<16x32xbf16>, vector<16x16xf32> -> vector<16x16xf32>
    %cst_13 = arith.constant dense<0xFF800000> : vector<16xf32>
    %38 = vector.multi_reduction <maximumf>, %37, %cst_13 [1] : vector<16x16xf32> to vector<16xf32>
    %39 = vector.shape_cast %38 : vector<16xf32> to vector<16x1xf32>
    %40 = vector.broadcast %39 : vector<16x1xf32> to vector<16x16xf32>
    %41 = arith.subf %37, %40 : vector<16x16xf32>
    %42 = math.exp %41 : vector<16x16xf32>
    %cst_14 = arith.constant dense<0.000000e+00> : vector<16xf32>
    %43 = vector.multi_reduction <add>, %42, %cst_14 [1] : vector<16x16xf32> to vector<16xf32>
    %44 = vector.shape_cast %43 : vector<16xf32> to vector<16x1xf32>
    %45 = tpu.reciprocal %44 {approx = true} : vector<16x1xf32> -> vector<16x1xf32>
    %46 = vector.broadcast %45 : vector<16x1xf32> to vector<16x16xf32>
    %47 = arith.mulf %42, %46 : vector<16x16xf32>
    %48 = arith.truncf %47 : vector<16x16xf32> to vector<16x16xbf16>
    %cst_15 = arith.constant dense<0.000000e+00> : vector<16x32xf32>
    %49 = tpu.matmul %48, %36, %cst_15 {dimension_numbers = #tpu.dot_dimension_numbers<[1], [0], [0], [1], [0, 0, 1, 1], [], []>} : vector<16x16xbf16>, vector<16x32xbf16>, vector<16x32xf32> -> vector<16x32xf32>
    %50 = vector.extract_strided_slice %7 {offsets = [0, 64], sizes = [16, 32], strides = [1, 1]} : vector<16x384xf32> to vector<16x32xf32>
    %cst_16 = arith.constant 0.176776692 : f32
    %51 = vector.broadcast %cst_16 : f32 to vector<16x32xf32>
    %52 = arith.mulf %50, %51 : vector<16x32xf32>
    %53 = arith.truncf %52 : vector<16x32xf32> to vector<16x32xbf16>
    %54 = vector.extract_strided_slice %7 {offsets = [0, 192], sizes = [16, 32], strides = [1, 1]} : vector<16x384xf32> to vector<16x32xf32>
    %55 = arith.truncf %54 : vector<16x32xf32> to vector<16x32xbf16>
    %56 = vector.extract_strided_slice %7 {offsets = [0, 320], sizes = [16, 32], strides = [1, 1]} : vector<16x384xf32> to vector<16x32xf32>
    %57 = arith.truncf %56 : vector<16x32xf32> to vector<16x32xbf16>
    %cst_17 = arith.constant dense<0.000000e+00> : vector<16x16xf32>
    %58 = tpu.matmul %53, %55, %cst_17 {dimension_numbers = #tpu.dot_dimension_numbers<[1], [1], [0], [0], [0, 0, 1, 0], [], []>} : vector<16x32xbf16>, vector<16x32xbf16>, vector<16x16xf32> -> vector<16x16xf32>
    %cst_18 = arith.constant dense<0xFF800000> : vector<16xf32>
    %59 = vector.multi_reduction <maximumf>, %58, %cst_18 [1] : vector<16x16xf32> to vector<16xf32>
    %60 = vector.shape_cast %59 : vector<16xf32> to vector<16x1xf32>
    %61 = vector.broadcast %60 : vector<16x1xf32> to vector<16x16xf32>
    %62 = arith.subf %58, %61 : vector<16x16xf32>
    %63 = math.exp %62 : vector<16x16xf32>
    %cst_19 = arith.constant dense<0.000000e+00> : vector<16xf32>
    %64 = vector.multi_reduction <add>, %63, %cst_19 [1] : vector<16x16xf32> to vector<16xf32>
    %65 = vector.shape_cast %64 : vector<16xf32> to vector<16x1xf32>
    %66 = tpu.reciprocal %65 {approx = true} : vector<16x1xf32> -> vector<16x1xf32>
    %67 = vector.broadcast %66 : vector<16x1xf32> to vector<16x16xf32>
    %68 = arith.mulf %63, %67 : vector<16x16xf32>
    %69 = arith.truncf %68 : vector<16x16xf32> to vector<16x16xbf16>
    %cst_20 = arith.constant dense<0.000000e+00> : vector<16x32xf32>
    %70 = tpu.matmul %69, %57, %cst_20 {dimension_numbers = #tpu.dot_dimension_numbers<[1], [0], [0], [1], [0, 0, 1, 1], [], []>} : vector<16x16xbf16>, vector<16x32xbf16>, vector<16x32xf32> -> vector<16x32xf32>
    %71 = vector.extract_strided_slice %7 {offsets = [0, 96], sizes = [16, 32], strides = [1, 1]} : vector<16x384xf32> to vector<16x32xf32>
    %cst_21 = arith.constant 0.176776692 : f32
    %72 = vector.broadcast %cst_21 : f32 to vector<16x32xf32>
    %73 = arith.mulf %71, %72 : vector<16x32xf32>
    %74 = arith.truncf %73 : vector<16x32xf32> to vector<16x32xbf16>
    %75 = vector.extract_strided_slice %7 {offsets = [0, 224], sizes = [16, 32], strides = [1, 1]} : vector<16x384xf32> to vector<16x32xf32>
    %76 = arith.truncf %75 : vector<16x32xf32> to vector<16x32xbf16>
    %77 = vector.extract_strided_slice %7 {offsets = [0, 352], sizes = [16, 32], strides = [1, 1]} : vector<16x384xf32> to vector<16x32xf32>
    %78 = arith.truncf %77 : vector<16x32xf32> to vector<16x32xbf16>
    %cst_22 = arith.constant dense<0.000000e+00> : vector<16x16xf32>
    %79 = tpu.matmul %74, %76, %cst_22 {dimension_numbers = #tpu.dot_dimension_numbers<[1], [1], [0], [0], [0, 0, 1, 0], [], []>} : vector<16x32xbf16>, vector<16x32xbf16>, vector<16x16xf32> -> vector<16x16xf32>
    %cst_23 = arith.constant dense<0xFF800000> : vector<16xf32>
    %80 = vector.multi_reduction <maximumf>, %79, %cst_23 [1] : vector<16x16xf32> to vector<16xf32>
    %81 = vector.shape_cast %80 : vector<16xf32> to vector<16x1xf32>
    %82 = vector.broadcast %81 : vector<16x1xf32> to vector<16x16xf32>
    %83 = arith.subf %79, %82 : vector<16x16xf32>
    %84 = math.exp %83 : vector<16x16xf32>
    %cst_24 = arith.constant dense<0.000000e+00> : vector<16xf32>
    %85 = vector.multi_reduction <add>, %84, %cst_24 [1] : vector<16x16xf32> to vector<16xf32>
    %86 = vector.shape_cast %85 : vector<16xf32> to vector<16x1xf32>
    %87 = tpu.reciprocal %86 {approx = true} : vector<16x1xf32> -> vector<16x1xf32>
    %88 = vector.broadcast %87 : vector<16x1xf32> to vector<16x16xf32>
    %89 = arith.mulf %84, %88 : vector<16x16xf32>
    %90 = arith.truncf %89 : vector<16x16xf32> to vector<16x16xbf16>
    %cst_25 = arith.constant dense<0.000000e+00> : vector<16x32xf32>
    %91 = tpu.matmul %90, %78, %cst_25 {dimension_numbers = #tpu.dot_dimension_numbers<[1], [0], [0], [1], [0, 0, 1, 1], [], []>} : vector<16x16xbf16>, vector<16x32xbf16>, vector<16x32xf32> -> vector<16x32xf32>
    %92 = tpu.concatenate %28, %49, %70, %91 in 1 : vector<16x32xf32>, vector<16x32xf32>, vector<16x32xf32>, vector<16x32xf32> -> vector<16x128xf32>
    %93 = arith.truncf %92 : vector<16x128xf32> to vector<16x128xbf16>
    %c0_26 = arith.constant 0 : index
    %c0_27 = arith.constant 0 : index
    %94 = vector.load %arg4[%c0_26, %c0_27] : memref<128x128xbf16, #tpu.memory_space<vmem>>, vector<128x128xbf16>
    %cst_28 = arith.constant dense<0.000000e+00> : vector<16x128xf32>
    %95 = tpu.matmul %93, %94, %cst_28 {dimension_numbers = #tpu.dot_dimension_numbers<[1], [0], [0], [1], [0, 0, 1, 1], [], []>} : vector<16x128xbf16>, vector<128x128xbf16>, vector<16x128xf32> -> vector<16x128xf32>
    %c0_29 = arith.constant 0 : index
    %c0_30 = arith.constant 0 : index
    %96 = vector.load %arg5[%c0_29, %c0_30] : memref<1x128xf32, #tpu.memory_space<vmem>>, vector<1x128xf32>
    %97 = vector.broadcast %96 : vector<1x128xf32> to vector<16x128xf32>
    %98 = arith.addf %95, %97 : vector<16x128xf32>
    %99 = arith.addf %98, %2 : vector<16x128xf32>
    %c0_31 = arith.constant 0 : index
    %c0_32 = arith.constant 0 : index
    %100 = vector.load %arg6[%c0_31, %c0_32] : memref<1x128xf32, #tpu.memory_space<vmem>>, vector<1x128xf32>
    %c0_33 = arith.constant 0 : index
    %c0_34 = arith.constant 0 : index
    %101 = vector.load %arg7[%c0_33, %c0_34] : memref<1x128xf32, #tpu.memory_space<vmem>>, vector<1x128xf32>
    %cst_35 = arith.constant dense<0.000000e+00> : vector<16xf32>
    %102 = vector.multi_reduction <add>, %99, %cst_35 [1] : vector<16x128xf32> to vector<16xf32>
    %103 = vector.shape_cast %102 : vector<16xf32> to vector<16x1xf32>
    %cst_36 = arith.constant 1.280000e+02 : f32
    %104 = vector.broadcast %cst_36 : f32 to vector<16x1xf32>
    %105 = arith.divf %103, %104 : vector<16x1xf32>
    %106 = vector.broadcast %105 : vector<16x1xf32> to vector<16x128xf32>
    %107 = arith.subf %99, %106 : vector<16x128xf32>
    %108 = arith.mulf %107, %107 : vector<16x128xf32>
    %cst_37 = arith.constant dense<0.000000e+00> : vector<16xf32>
    %109 = vector.multi_reduction <add>, %108, %cst_37 [1] : vector<16x128xf32> to vector<16xf32>
    %110 = vector.shape_cast %109 : vector<16xf32> to vector<16x1xf32>
    %cst_38 = arith.constant 1.280000e+02 : f32
    %111 = vector.broadcast %cst_38 : f32 to vector<16x1xf32>
    %112 = arith.divf %110, %111 : vector<16x1xf32>
    %113 = vector.broadcast %105 : vector<16x1xf32> to vector<16x128xf32>
    %114 = arith.subf %99, %113 : vector<16x128xf32>
    %cst_39 = arith.constant 9.99999974E-6 : f32
    %115 = vector.broadcast %cst_39 : f32 to vector<16x1xf32>
    %116 = arith.addf %112, %115 : vector<16x1xf32>
    %117 = math.rsqrt %116 : vector<16x1xf32>
    %118 = vector.broadcast %117 : vector<16x1xf32> to vector<16x128xf32>
    %119 = arith.mulf %114, %118 : vector<16x128xf32>
    %120 = vector.broadcast %100 : vector<1x128xf32> to vector<16x128xf32>
    %121 = arith.mulf %119, %120 : vector<16x128xf32>
    %122 = vector.broadcast %101 : vector<1x128xf32> to vector<16x128xf32>
    %123 = arith.addf %121, %122 : vector<16x128xf32>
    %124 = arith.truncf %123 : vector<16x128xf32> to vector<16x128xbf16>
    %c0_40 = arith.constant 0 : index
    %c0_41 = arith.constant 0 : index
    %125 = vector.load %arg8[%c0_40, %c0_41] : memref<128x256xbf16, #tpu.memory_space<vmem>>, vector<128x256xbf16>
    %cst_42 = arith.constant dense<0.000000e+00> : vector<16x256xf32>
    %126 = tpu.matmul %124, %125, %cst_42 {dimension_numbers = #tpu.dot_dimension_numbers<[1], [0], [0], [1], [0, 0, 1, 1], [], []>} : vector<16x128xbf16>, vector<128x256xbf16>, vector<16x256xf32> -> vector<16x256xf32>
    %c0_43 = arith.constant 0 : index
    %c0_44 = arith.constant 0 : index
    %127 = vector.load %arg9[%c0_43, %c0_44] : memref<1x256xf32, #tpu.memory_space<vmem>>, vector<1x256xf32>
    %128 = vector.broadcast %127 : vector<1x256xf32> to vector<16x256xf32>
    %129 = arith.addf %126, %128 : vector<16x256xf32>
    %130 = arith.mulf %129, %129 : vector<16x256xf32>
    %131 = arith.mulf %129, %130 : vector<16x256xf32>
    %cst_45 = arith.constant 4.471500e-02 : f32
    %132 = vector.broadcast %cst_45 : f32 to vector<16x256xf32>
    %133 = arith.mulf %132, %131 : vector<16x256xf32>
    %134 = arith.addf %129, %133 : vector<16x256xf32>
    %cst_46 = arith.constant 0.797884583 : f32
    %135 = vector.broadcast %cst_46 : f32 to vector<16x256xf32>
    %136 = arith.mulf %135, %134 : vector<16x256xf32>
    %137 = math.tanh %136 : vector<16x256xf32>
    %cst_47 = arith.constant 1.000000e+00 : f32
    %138 = vector.broadcast %cst_47 : f32 to vector<16x256xf32>
    %139 = arith.addf %138, %137 : vector<16x256xf32>
    %cst_48 = arith.constant 5.000000e-01 : f32
    %140 = vector.broadcast %cst_48 : f32 to vector<16x256xf32>
    %141 = arith.mulf %140, %139 : vector<16x256xf32>
    %142 = arith.mulf %129, %141 : vector<16x256xf32>
    %143 = arith.truncf %142 : vector<16x256xf32> to vector<16x256xbf16>
    %c0_49 = arith.constant 0 : index
    %c0_50 = arith.constant 0 : index
    %144 = vector.load %arg10[%c0_49, %c0_50] : memref<256x128xbf16, #tpu.memory_space<vmem>>, vector<256x128xbf16>
    %cst_51 = arith.constant dense<0.000000e+00> : vector<16x128xf32>
    %145 = tpu.matmul %143, %144, %cst_51 {dimension_numbers = #tpu.dot_dimension_numbers<[1], [0], [0], [1], [0, 0, 1, 1], [], []>} : vector<16x256xbf16>, vector<256x128xbf16>, vector<16x128xf32> -> vector<16x128xf32>
    %c0_52 = arith.constant 0 : index
    %c0_53 = arith.constant 0 : index
    %146 = vector.load %arg11[%c0_52, %c0_53] : memref<1x128xf32, #tpu.memory_space<vmem>>, vector<1x128xf32>
    %147 = vector.broadcast %146 : vector<1x128xf32> to vector<16x128xf32>
    %148 = arith.addf %145, %147 : vector<16x128xf32>
    %149 = arith.addf %148, %123 : vector<16x128xf32>
    %c0_54 = arith.constant 0 : index
    %c0_55 = arith.constant 0 : index
    %150 = vector.load %arg12[%c0_54, %c0_55] : memref<1x128xf32, #tpu.memory_space<vmem>>, vector<1x128xf32>
    %c0_56 = arith.constant 0 : index
    %c0_57 = arith.constant 0 : index
    %151 = vector.load %arg13[%c0_56, %c0_57] : memref<1x128xf32, #tpu.memory_space<vmem>>, vector<1x128xf32>
    %cst_58 = arith.constant dense<0.000000e+00> : vector<16xf32>
    %152 = vector.multi_reduction <add>, %149, %cst_58 [1] : vector<16x128xf32> to vector<16xf32>
    %153 = vector.shape_cast %152 : vector<16xf32> to vector<16x1xf32>
    %cst_59 = arith.constant 1.280000e+02 : f32
    %154 = vector.broadcast %cst_59 : f32 to vector<16x1xf32>
    %155 = arith.divf %153, %154 : vector<16x1xf32>
    %156 = vector.broadcast %155 : vector<16x1xf32> to vector<16x128xf32>
    %157 = arith.subf %149, %156 : vector<16x128xf32>
    %158 = arith.mulf %157, %157 : vector<16x128xf32>
    %cst_60 = arith.constant dense<0.000000e+00> : vector<16xf32>
    %159 = vector.multi_reduction <add>, %158, %cst_60 [1] : vector<16x128xf32> to vector<16xf32>
    %160 = vector.shape_cast %159 : vector<16xf32> to vector<16x1xf32>
    %cst_61 = arith.constant 1.280000e+02 : f32
    %161 = vector.broadcast %cst_61 : f32 to vector<16x1xf32>
    %162 = arith.divf %160, %161 : vector<16x1xf32>
    %163 = vector.broadcast %155 : vector<16x1xf32> to vector<16x128xf32>
    %164 = arith.subf %149, %163 : vector<16x128xf32>
    %cst_62 = arith.constant 9.99999974E-6 : f32
    %165 = vector.broadcast %cst_62 : f32 to vector<16x1xf32>
    %166 = arith.addf %162, %165 : vector<16x1xf32>
    %167 = math.rsqrt %166 : vector<16x1xf32>
    %168 = vector.broadcast %167 : vector<16x1xf32> to vector<16x128xf32>
    %169 = arith.mulf %164, %168 : vector<16x128xf32>
    %170 = vector.broadcast %150 : vector<1x128xf32> to vector<16x128xf32>
    %171 = arith.mulf %169, %170 : vector<16x128xf32>
    %172 = vector.broadcast %151 : vector<1x128xf32> to vector<16x128xf32>
    %173 = arith.addf %171, %172 : vector<16x128xf32>
    %174 = arith.truncf %173 : vector<16x128xf32> to vector<16x128xbf16>
    %c0_63 = arith.constant 0 : index
    %c0_64 = arith.constant 0 : index
    %c0_65 = arith.constant 0 : index
    %175 = vector.load %arg14[%c0_63, %c0_64, %c0_65] : memref<1x16x128xbf16, #tpu.memory_space<vmem>>, vector<1x16x128xbf16>
    %176 = vector.shape_cast %175 : vector<1x16x128xbf16> to vector<16x128xbf16>
    %177 = vector.shape_cast %174 : vector<16x128xbf16> to vector<1x16x128xbf16>
    tpu.vector_store %arg14[%c0_63, %c0_64, %c0_65], %177 {strides = array<i32>} : memref<1x16x128xbf16, #tpu.memory_space<vmem>>, vector<1x16x128xbf16>,
    return
  }
  func.func @transform_0(%arg0: i32) -> (i32, i32, i32) {
    %c0_i32 = arith.constant 0 : i32
    %c0_i32_0 = arith.constant 0 : i32
    %c0_i32_1 = arith.constant 0 : i32
    return %arg0, %c0_i32, %c0_i32_0 : i32, i32, i32
  }
  func.func @transform_1(%arg0: i32) -> (i32, i32) {
    %c0_i32 = arith.constant 0 : i32
    %c0_i32_0 = arith.constant 0 : i32
    %c0_i32_1 = arith.constant 0 : i32
    return %c0_i32, %c0_i32_0 : i32, i32
  }
  func.func @transform_2(%arg0: i32) -> (i32, i32) {
    %c0_i32 = arith.constant 0 : i32
    %c0_i32_0 = arith.constant 0 : i32
    %c0_i32_1 = arith.constant 0 : i32
    return %c0_i32, %c0_i32_0 : i32, i32
  }
  func.func @transform_3(%arg0: i32) -> (i32, i32) {
    %c0_i32 = arith.constant 0 : i32
    %c0_i32_0 = arith.constant 0 : i32
    %c0_i32_1 = arith.constant 0 : i32
    return %c0_i32, %c0_i32_0 : i32, i32
  }
  func.func @transform_4(%arg0: i32) -> (i32, i32) {
    %c0_i32 = arith.constant 0 : i32
    %c0_i32_0 = arith.constant 0 : i32
    %c0_i32_1 = arith.constant 0 : i32
    return %c0_i32, %c0_i32_0 : i32, i32
  }
  func.func @transform_5(%arg0: i32) -> (i32, i32) {
    %c0_i32 = arith.constant 0 : i32
    %c0_i32_0 = arith.constant 0 : i32
    %c0_i32_1 = arith.constant 0 : i32
    return %c0_i32, %c0_i32_0 : i32, i32
  }
  func.func @transform_6(%arg0: i32) -> (i32, i32) {
    %c0_i32 = arith.constant 0 : i32
    %c0_i32_0 = arith.constant 0 : i32
    %c0_i32_1 = arith.constant 0 : i32
    return %c0_i32, %c0_i32_0 : i32, i32
  }
  func.func @transform_7(%arg0: i32) -> (i32, i32) {
    %c0_i32 = arith.constant 0 : i32
    %c0_i32_0 = arith.constant 0 : i32
    %c0_i32_1 = arith.constant 0 : i32
    return %c0_i32, %c0_i32_0 : i32, i32
  }
  func.func @transform_8(%arg0: i32) -> (i32, i32) {
    %c0_i32 = arith.constant 0 : i32
    %c0_i32_0 = arith.constant 0 : i32
    %c0_i32_1 = arith.constant 0 : i32
    return %c0_i32, %c0_i32_0 : i32, i32
  }
  func.func @transform_9(%arg0: i32) -> (i32, i32) {
    %c0_i32 = arith.constant 0 : i32
    %c0_i32_0 = arith.constant 0 : i32
    %c0_i32_1 = arith.constant 0 : i32
    return %c0_i32, %c0_i32_0 : i32, i32
  }
  func.func @transform_10(%arg0: i32) -> (i32, i32) {
    %c0_i32 = arith.constant 0 : i32
    %c0_i32_0 = arith.constant 0 : i32
    %c0_i32_1 = arith.constant 0 : i32
    return %c0_i32, %c0_i32_0 : i32, i32
  }
  func.func @transform_11(%arg0: i32) -> (i32, i32) {
    %c0_i32 = arith.constant 0 : i32
    %c0_i32_0 = arith.constant 0 : i32
    %c0_i32_1 = arith.constant 0 : i32
    return %c0_i32, %c0_i32_0 : i32, i32
  }
  func.func @transform_12(%arg0: i32) -> (i32, i32) {
    %c0_i32 = arith.constant 0 : i32
    %c0_i32_0 = arith.constant 0 : i32
    %c0_i32_1 = arith.constant 0 : i32
    return %c0_i32, %c0_i32_0 : i32, i32
  }
  func.func @transform_13(%arg0: i32) -> (i32, i32, i32) {
    %c0_i32 = arith.constant 0 : i32
    %c0_i32_0 = arith.constant 0 : i32
    %c0_i32_1 = arith.constant 0 : i32
    return %arg0, %c0_i32, %c0_i32_0 : i32, i32, i32
  }
}

</mosaic_0001>

<bundles_post_ra>
// kernel: bert_forward.5
= control target key start
LH: loop header
LB: loop body
LE: loop exit
PB: predicated region body
PF: predicated region fallthrough
CT: control target
= control target key end

     0   :  { %9 = vsyncpa [#allocation3], 0  ;;  %s822_s0 = inlined_call_operand.vmem [shape: bf16[32,128], index: 0, kind: input, shape index: {}]   ;;  %s823_s1 = inlined_call_operand.vmem [shape: f32[1,128], index: 1, kind: input, shape index: {}]   ;;  %s824_s2 = inlined_call_operand.vmem [shape: f32[1,128], index: 2, kind: input, shape index: {}]   ;;  %s825_s3 = inlined_call_operand.vmem [shape: bf16[128,256], index: 3, kind: input, shape index: {}]   ;;  %s826_s4 = inlined_call_operand.hbm [shape: f32[32,256], index: 4, kind: output, shape index: {}]  }
   0x1   :  { %11 = vsyncpa [#allocation3 + $0x1], 0  ;;  %s666_s15 = smov 0   ;;  %s668_s16 = smov 0  }
   0x2   :  { %s670_s17 = smov 0   ;;  %s672_s18 = smov 0  }
   0x3 LB: > { %s687_s19 = sadd.s32 4294967295, %s635_s18   ;;  %s466_s20 = sadd.s32 4294967294, %s635_s18   ;;  %s635_s18 = sphi %s672_s18, %s832_s18   ;;  %s631_s17 = sphi %s670_s17, %s831_s17   ;;  %s627_s16 = sphi %s668_s16, %s830_s16   ;;  %s623_s15 = sphi %s666_s15, %s829_s15  }
   0x4   : > { %s691_s21 = sadd.s32 1, %s635_s18   ;;  %s113_s22 = sadd.s32 1, %s631_s17 }
   0x5   : > { %s110_s23 = ssub.s32 %s635_s18, %s691_s21  ;;  %p123_p0 = scmp.ne.s32.totalorder %s631_s17, %s627_s16 }
   0x6   : > { %p111_p1 = scmp.eq.s32.totalorder %s110_s23, 0  ;;  %p124_p2 = scmp.eq.s32.totalorder %s687_s19, 1 }
   0x7   : > { %p129_p3 = scmp.ne.s32.totalorder %s627_s16, %s623_s15  ;;  %p130_p4 = scmp.eq.s32.totalorder %s466_s20, 1 }
   0x8   : > { %s702_s24 = scalar_select %p111_p1, %s631_s17, %s113_s22  }
   0x9   : > { %p704_p5 = por %p124_p2, %p123_p0  ;;  %p708_p6 = por %p130_p4, %p129_p3 }
   0xa   : > { %p469_p7 = scmp.ge.s32.totalorder %s635_s18, 1  ;;  %p166_p8 = scmp.lt.s32.totalorder %s635_s18, 3 }
   0xc   : > { %p167_p9 = pnand %p469_p7, %p166_p8 }
   0xd   : > { %s471_s27 = sshll.u32 (!%p167_p9), %s687_s19, 1  ;;  %v545_v3 = vld [vmem:[%s825_s3 + $0x4] ss:$8 sps:$4 sm:$0xff] (!%p167_p9)   ;;  %v547_v4 = vld [vmem:[%s825_s3] ss:$8 sps:$4 sm:$0xff] (!%p167_p9)   ;;  %v637_v22 = vmov (!%p167_p9), 0  }
   0xe   : > { %170 = sbr.rel (%p167_p9) target bundleno = 574 (0x23e), region = 36  ;;  %p193_p10 = scmp.lt.s32.totalorder (!%p167_p9), %s471_s27, 3  ;;  %v548_v5 = vld [vmem:[%s825_s3 + $0x14] ss:$8 sps:$4 sm:$0xff] (!%p167_p9)   ;;  %342 = vmatprep.subr.bf16.mxu0 (!%p167_p9), %v545_v3  ;;  %v550_v14 = vld [vmem:[%s825_s3 + $0x10] ss:$8 sps:$4 sm:$0xff] (!%p167_p9)   ;;  %374 = vmatprep.mubr.bf16.mxu0 (!%p167_p9), %v637_v22 }
   0xf   : > { %343 = vmatpush1.bf16.msra.mxu0 (!%p167_p9), %v547_v4  ;;  %v551_v15 = vld [vmem:[%s825_s3 + $0x24] ss:$8 sps:$4 sm:$0xff] (!%p167_p9)   ;;  %v553_v16 = vld [vmem:[%s825_s3 + $0x20] ss:$8 sps:$4 sm:$0xff] (!%p167_p9)   ;;  %v554_v17 = vld [vmem:[%s825_s3 + $0x34] ss:$8 sps:$4 sm:$0xff] (!%p167_p9)  }
  0x10   : > { %344 = vmatprep.subr.bf16.mxu0 (!%p167_p9), %v548_v5  ;;  %v556_v18 = vld [vmem:[%s825_s3 + $0x30] ss:$8 sps:$4 sm:$0xff] (!%p167_p9)   ;;  %v557_v19 = vld [vmem:[%s825_s3 + $0x44] ss:$8 sps:$4 sm:$0xff] (!%p167_p9)   ;;  %v559_v20 = vld [vmem:[%s825_s3 + $0x40] ss:$8 sps:$4 sm:$0xff] (!%p167_p9)  }
  0x11   : > { %v560_v21 = vld [vmem:[%s825_s3 + $0x54] ss:$8 sps:$4 sm:$0xff] (!%p167_p9)   ;;  %v562_v23 = vld [vmem:[%s825_s3 + $0x50] ss:$8 sps:$4 sm:$0xff] (!%p167_p9)   ;;  %v563_v24 = vld [vmem:[%s825_s3 + $0x64] ss:$8 sps:$4 sm:$0xff] (!%p167_p9)  }
  0x12   : > { %v565_v25 = vld [vmem:[%s825_s3 + $0x60] ss:$8 sps:$4 sm:$0xff] (!%p167_p9)   ;;  %v566_v26 = vld [vmem:[%s825_s3 + $0x74] ss:$8 sps:$4 sm:$0xff] (!%p167_p9)   ;;  %v568_v27 = vld [vmem:[%s825_s3 + $0x70] ss:$8 sps:$4 sm:$0xff] (!%p167_p9)  }
  0x13   : > { %345 = vmatpush1.bf16.msra.mxu0 (!%p167_p9), %v550_v14  ;;  %v473_v36 = vld [vmem:[%s823_s1] ss:$0 sm:$0xff] (!%p167_p9)  ;;  %s189_s8 = sand.u32 (!%p167_p9), 1, %s627_s16   ;;  %s498_s12 = sshll.u32 (!%p167_p9), %s687_s19, 9 }
  0x14   : > { %346 = vmatprep.subr.bf16.mxu0 (!%p167_p9), %v551_v15  ;;  %v474_v40 = vld [vmem:[%s824_s2] ss:$0 sm:$0xff] (!%p167_p9)  ;;  %s470_s9 = sshll.u32 (!%p167_p9), %s189_s8, 5  ;;  %s779_s20 = scalar_lea.hbm (!%p167_p9), %s826_s4, %s498_s12 }
  0x15   : > { %s834_s27 = smov (!%p193_p10, %s471_s27), 3  ;;  %s191_s10 = scalar_lea.vmem [#allocation2], %s470_s9 }
  0x16   : > { %s472_s28 = sshll.u32 %s834_s27, 2  ;;  %s404_s11 = sshll.u32 %s191_s10, 4  ;;  %s774_s11 = int_to_ptr.vmem [resolvable:$true] %s404_s11 }
  0x17   : > { %s196_s5 = scalar_lea.vmem %s822_s0, %s472_s28  ;;  %347 = vmatpush1.bf16.msra.mxu0 %v553_v16  ;;  %s781_s22 = scalar_lea.sflag [#allocation3], %s189_s8 }
  0x18   : > { %v500_v0 = vld [vmem:[%s196_s5] sm:$0xff]   ;;  %348 = vmatprep.subr.bf16.mxu0 %v554_v17  ;;  %s573_s19 = scalar_lea.vmem %s774_s11, 512  ;;  %s638_s23 = smov [#allocation2]  }
  0x19   : > { %v501_v1 = vunpack.c.l.bf16 %v500_v0  ;;  %v502_v2 = vunpack.c.h.bf16 %v500_v0  ;;  %p574_p11 = scmp.ne.s32.totalorder %s774_s11, %s573_s19  ;;  %s577_s27 = sshll.u32 %s638_s23, 4  ;;  %s578_s27 = int_to_ptr.vmem [resolvable:$false] %s577_s27 }
  0x1a   : > { %s579_s28 = scalar_lea.vmem %s578_s27, 1024  ;;  %p580_p0 = scmp.lt.s32.totalorder %s774_s11, %s578_s27 }
  0x1b   : > { %206 = vadd.xlane.f32.xlu0 %v501_v1  ;;  %349 = vmatpush1.bf16.msra.mxu0 %v556_v18  ;;  %p575_p12 = pnand %p574_p11, %p704_p5  ;;  %p581_p1 = scmp.lt.s32.totalorder %s579_s28, %s573_s19 }
  0x1c   : > { %350 = vmatprep.subr.bf16.mxu0 %v557_v19 }
  0x1d   : > { %p576_p13 = pneg %p575_p12  ;;  %p582_p2 = por %p581_p1, %p580_p0 }
  0x1f   : > { %208 = vadd.xlane.f32.xlu0 %v502_v2  ;;  %351 = vmatpush1.bf16.msra.mxu0 %v559_v20  ;;  %p583_p3 = pnand %p582_p2, %p576_p13 }
  0x20   : > { %352 = vmatprep.subr.bf16.mxu0 %v560_v21 }
  0x23   : > { %353 = vmatpush1.bf16.msra.mxu0 %v562_v23 }
  0x24   : > { %354 = vmatprep.subr.bf16.mxu0 %v563_v24 }
  0x27   : > { %355 = vmatpush1.bf16.msra.mxu0 %v565_v25 }
  0x28   : > { %356 = vmatprep.subr.bf16.mxu0 %v566_v26 }
  0x2b   : > { %357 = vmatpush1.bf16.msra.mxu0 %v568_v27 }
  0xa8   : > { %v207_v6 = vpop.xlane.xlu0 %206 }
  0xa9   : > { %v211_v7 = vmul.f32 0.0078125, %v207_v6 }
  0xab   : > { %v213_v8 = vsub.f32 %v501_v1, %v211_v7 }
  0xac   : > { %v209_v9 = vpop.xlane.xlu0 %208 }
  0xad   : > { %v212_v10 = vmul.f32 0.0078125, %v209_v9  ;;  %v215_v11 = vmul.f32 %v213_v8, %v213_v8 }
  0xaf   : > { %v214_v12 = vsub.f32 %v502_v2, %v212_v10  ;;  %217 = vadd.xlane.f32.xlu1 %v215_v11 }
  0xb1   : > { %v216_v13 = vmul.f32 %v214_v12, %v214_v12 }
  0xb3   : > { %219 = vadd.xlane.f32.xlu1 %v216_v13 }
 0x13c   : > { %v218_v28 = vpop.xlane.xlu1 %217 }
 0x13d   : > { %v221_v29 = vmul.f32 0.0078125, %v218_v28 }
 0x13f   : > { %v223_v30 = vadd.f32 1e-05, %v221_v29 }
 0x140   : > { %v220_v31 = vpop.xlane.xlu1 %219 }
 0x141   : > { %569 = vrsqrt.f32 %v223_v30  ;;  %v222_v32 = vmul.f32 0.0078125, %v220_v31 }
 0x143   : > { %v224_v33 = vadd.f32 1e-05, %v222_v32 }
 0x145   : > { %571 = vrsqrt.f32 %v224_v33 }
 0x14b   : > { %v570_v34 = vpop.eup %569 }
 0x14c   : > { %v227_v35 = vmul.f32 %v570_v34, %v213_v8 }
 0x14e   : > { %v235_v39 = vmul.f32 %v473_v36, %v227_v35 }
 0x14f   : > { %v572_v37 = vpop.eup %571 }
 0x150   : > { %v228_v38 = vmul.f32 %v572_v37, %v214_v12  ;;  %v243_v42 = vadd.f32 %v474_v40, %v235_v39 }
 0x152   : > { %v236_v41 = vmul.f32 %v473_v36, %v228_v38 }
 0x154   : > { %v244_v43 = vadd.f32 %v474_v40, %v236_v41 }
 0x156   : > { %v245_v44 = vpack.c.bf16 %v244_v43, %v243_v42 }
 0x158   : > { %375 = vmatmul.mubr.bf16.vlgmr.msra.gmra.mrb[0].mxu0 %v245_v44 }
 0x22b   : > { %v376_v45 = vpop.f32.mrb[0].mxu0 }
 0x22c   : > { %385 = vst [vmem:[%s191_s10] sm:$0xff] %v376_v45  ;;  %v378_v46 = vpop.f32.mrb[1].mxu0 }
 0x22d   : > { %386 = vst [vmem:[%s191_s10 + $0x8] sm:$0xff] %v378_v46  ;;  %v380_v47 = vpop.f32.mrb[2].mxu0 }
 0x22e   : > { %387 = vst [vmem:[%s191_s10 + $0x10] sm:$0xff] %v380_v47  ;;  %v382_v48 = vpop.f32.mrb[3].mxu0 }
 0x22f   : > { %388 = vst [vmem:[%s191_s10 + $0x18] sm:$0xff] %v382_v48 }
 0x230   : > { %586 = shalt.err (!%p583_p3)
}
 0x231   : > { %s587_s29 = scalar_lea.hbm %s779_s20, 512  ;;  %s591_s6 = scalar_lea.hbm %s826_s4, 1024 }
 0x232   : > { %p588_p4 = scmp.ne.s32.totalorder %s779_s20, %s587_s29  ;;  %p592_p9 = scmp.lt.u32.totalorder %s779_s20, %s826_s4 }
 0x233   : > { %p593_p10 = scmp.lt.u32.totalorder %s591_s6, %s587_s29  ;;  %p595_p12 = scmp.lt.u32.totalorder %s587_s29, %s779_s20 }
 0x234   : > { %p589_p7 = pnand %p588_p4, %p704_p5 }
 0x235   : > { %p594_p11 = por %p593_p10, %p592_p9 }
 0x236   : > { %p590_p8 = pneg %p589_p7 }
 0x237   : > { %p596_p13 = por %p595_p12, %p594_p11 }
 0x239   : > { %p597_p0 = pnand %p596_p13, %p590_p8 }
 0x23b   : > { %600 = shalt.err (!%p597_p0)
}
 0x23c   : > { %s639_s9 = smov 256   ;;  %s640_s10 = smov 16  }
 0x23d   : > { %503 = dma.vmem_to_hbm [thread:$0]  (%p704_p5), %s774_s11, 512, %s779_s20, %s781_s22, %s639_s9, %s639_s9, %s640_s10  }
 0x23e PF: > { %p509_p1 = scmp.ge.s32.totalorder %s635_s18, 2  ;;  %s419_s12 = sand.u32 1, %s623_s15  }
 0x23f   : > { %s420_s13 = scalar_lea.sflag [#allocation3], %s419_s12 }
 0x240   : > { %p506_p2 = pnand %p509_p1, %p708_p6 }
 0x242   : > { %618 = dma.done.wait (!%p506_p2), %s420_s13, 512  }
 0x243   : > { %620 = vsyncadd (!%p506_p2), %s420_s13, 4294966784  ;;  %p14_p3 = scmp.ge.s32.totalorder %s691_s21, 4   ;;  %s829_s15 = smov %s627_s16 }
 0x244   : > { %s830_s16 = smov %s631_s17  ;;  %s831_s17 = smov %s702_s24 }
 0x245   : > { %s832_s18 = smov %s691_s21  ;;  %16 = sbr.rel (!%p14_p3) target bundleno = 3 (0x3), region = 71 }
 0x24c   :  { %425 = vsyncpa [#allocation3], 1 }
 0x24d   :  { %427 = vsyncpa [#allocation3 + $0x1], 1 }

// kernel: bert_forward.3
= control target key start
LH: loop header
LB: loop body
LE: loop exit
PB: predicated region body
PF: predicated region fallthrough
CT: control target
= control target key end

     0   :  { %s3310_s0 = inlined_call_operand.vmem [shape: bf16[2,16,128], index: 0, kind: input, shape index: {}]   ;;  %s3311_s1 = inlined_call_operand.vmem [shape: bf16[128,384], index: 1, kind: input, shape index: {}]   ;;  %s3312_s2 = inlined_call_operand.vmem [shape: f32[1,384], index: 2, kind: input, shape index: {}]   ;;  %s3313_s3 = inlined_call_operand.vmem [shape: bf16[128,128], index: 3, kind: input, shape index: {}]   ;;  %s3314_s4 = inlined_call_operand.hbm [shape: f32[1,128], index: 4, kind: input, shape index: {}]   ;;  %s3315_s5 = inlined_call_operand.hbm [shape: f32[1,128], index: 5, kind: input, shape index: {}]   ;;  %s3316_s6 = inlined_call_operand.hbm [shape: f32[1,128], index: 6, kind: input, shape index: {}]   ;;  %s3317_s7 = inlined_call_operand.vmem [shape: bf16[128,256], index: 7, kind: input, shape index: {}]   ;;  %s3318_s8 = inlined_call_operand.vmem [shape: f32[1,256], index: 8, kind: input, shape index: {}]   ;;  %s3319_s9 = inlined_call_operand.hbm [shape: bf16[256,128], index: 9, kind: input, shape index: {}]   ;;  %s3320_s10 = inlined_call_operand.hbm [shape: f32[1,128], index: 10, kind: input, shape index: {}]   ;;  %s3321_s11 = inlined_call_operand.hbm [shape: f32[1,128], index: 11, kind: input, shape index: {}]   ;;  %s3322_s12 = inlined_call_operand.hbm [shape: f32[1,128], index: 12, kind: input, shape index: {}]   ;;  %s3323_s13 = inlined_call_operand.vmem [shape: bf16[2,16,128], index: 13, kind: output, shape index: {}]  }
   0x1   :  { %3327 = sst [smem:[#allocation18_spill]] %s3315_s5 }
   0x2   :  { %18 = vsyncpa [#allocation3], 0 }
   0x3   :  { %19 = vsyncpa [#allocation5], 0 }
   0x4   :  { %20 = vsyncpa [#allocation8], 0 }
   0x5   :  { %21 = vsyncpa [#allocation11], 0  ;;  %s2816_s25 = smov 0  }
   0x6 LB: > { %3328 = sst [smem:[#allocation17_spill]] %s2729_s25  ;;  %s2731_s26 = smov [#allocation4]   ;;  %s2729_s25 = sphi %s2816_s25, %s27_s25  }
   0x7   : > { %s369_s27 = sshll.u32 %s2731_s26, 4  ;;  %s2822_s28 = sadd.s32 4294967295, %s2729_s25   ;;  %s2827_s27 = int_to_ptr.vmem [resolvable:$true] %s369_s27 }
   0x8   : > { %p2022_p0 = scmp.ge.s32.totalorder %s2729_s25, 1  ;;  %p336_p1 = scmp.lt.s32.totalorder %s2729_s25, 3 }
   0x9   : > { %p3325_p2 = scmp.eq.s32.totalorder %s2822_s28, 0  ;;  %s2732_s30 = smov [#allocation7]  }
   0xa   : > { %p2829_p3 = pnand %p2022_p0, %p336_p1  ;;  %s396_s14 = sshll.u32 %s2732_s30, 4  ;;  %s2835_s14 = int_to_ptr.vmem [resolvable:$true] %s396_s14 }
   0xb   : > { %s2733_s16 = smov [#allocation10]   ;;  %s2734_s18 = smov [#allocation2]  }
   0xc   : > { %s3329_s29 = scalar_select %p2829_p3, 1, 0 }
   0xd   : > { %p2307_p4 = pneg %p2829_p3  ;;  %s421_s17 = sshll.u32 %s2733_s16, 4  ;;  %s2843_s17 = int_to_ptr.vmem [resolvable:$true] %s421_s17 }
   0xe   : > { %s2845_s19 = sshll.u32 %s2734_s18, 4  ;;  %s3331_s5 = sld [smem:[#allocation18_spill]]  ;;  %s359_s19 = int_to_ptr.vmem [resolvable:$true] %s2845_s19 }
   0xf   : > { %p2839_p5 = pnand %p3325_p2, %p2307_p4 }
  0x11   : > { %p2855_p7 = pneg %p2839_p5 }
  0x14   : > { %s2511_s22 = scalar_lea.hbm %s3331_s5, 16 }
  0x15   : > { %p2512_p6 = scmp.ne.s32.totalorder %s3331_s5, %s2511_s22  ;;  %p2518_p10 = scmp.lt.u32.totalorder %s2511_s22, %s3331_s5 }
  0x17   : > { %p2514_p8 = pnand %p2855_p7, %p2512_p6 }
  0x19   : > { %p2515_p9 = pneg %p2514_p8 }
  0x1b   : > { %p2520_p11 = pnand %p2518_p10, %p2515_p9 }
  0x1d   : > { %2523 = shalt.err (!%p2520_p11)
}
  0x1e   : > { %s2524_s18 = scalar_lea.vmem %s2827_s27, 16  ;;  %s2531_s20 = scalar_lea.vmem %s2827_s27, 32 }
  0x1f   : > { %p2525_p12 = scmp.ne.s32.totalorder %s2827_s27, %s2524_s18  ;;  %p2532_p1 = scmp.lt.s32.totalorder %s2827_s27, %s2827_s27 }
  0x20   : > { %p2533_p4 = scmp.lt.s32.totalorder %s2531_s20, %s2524_s18 }
  0x21   : > { %p2527_p13 = pnand %p2525_p12, %p2855_p7 }
  0x22   : > { %p2534_p6 = por %p2533_p4, %p2532_p1 }
  0x23   : > { %p2528_p0 = pneg %p2527_p13 }
  0x25   : > { %p2535_p8 = pnand %p2534_p6, %p2528_p0 }
  0x27   : > { %2538 = shalt.err (!%p2535_p8)
}
  0x28   : > { %2313 = dma.hbm_to_vmem [thread:$0]  (!%p2839_p5), %s3331_s5, 16, %s2827_s27, [#allocation5]  }
  0x29   : > { %s2539_s30 = scalar_lea.hbm %s3319_s9, 2048 }
  0x2a   : > { %p2540_p9 = scmp.ne.s32.totalorder %s3319_s9, %s2539_s30  ;;  %p2546_p12 = scmp.lt.u32.totalorder %s2539_s30, %s3319_s9 }
  0x2c   : > { %p2542_p10 = pnand %p2540_p9, %p2855_p7 }
  0x2e   : > { %p2543_p11 = pneg %p2542_p10 }
  0x30   : > { %p2548_p13 = pnand %p2546_p12, %p2543_p11 }
  0x32   : > { %2551 = shalt.err (!%p2548_p13)
}
  0x33   : > { %s2552_s27 = scalar_lea.vmem %s2835_s14, 2048  ;;  %p2560_p6 = scmp.lt.s32.totalorder %s2835_s14, %s2835_s14 }
  0x34   : > { %p2553_p0 = scmp.ne.s32.totalorder %s2835_s14, %s2552_s27  ;;  %p2561_p8 = scmp.lt.s32.totalorder %s2552_s27, %s2552_s27 }
  0x36   : > { %p2555_p1 = pnand %p2553_p0, %p2855_p7  ;;  %p2562_p9 = por %p2561_p8, %p2560_p6 }
  0x38   : > { %p2556_p4 = pneg %p2555_p1 }
  0x3a   : > { %p2563_p10 = pnand %p2562_p9, %p2556_p4 }
  0x3c   : > { %2566 = shalt.err (!%p2563_p10)
}
  0x3d   : > { %s2735_s25 = smov 64   ;;  %s2736_s21 = smov 4  }
  0x3e   : > { %2319 = dma.hbm_to_vmem [thread:$0]  (!%p2839_p5), %s3319_s9, 2048, %s2835_s14, [#allocation8], %s2735_s25, %s2735_s25, %s2736_s21  }
  0x3f   : > { %s2567_s16 = scalar_lea.hbm %s3321_s11, 16 }
  0x40   : > { %p2568_p11 = scmp.ne.s32.totalorder %s3321_s11, %s2567_s16  ;;  %p2574_p0 = scmp.lt.u32.totalorder %s2567_s16, %s3321_s11 }
  0x42   : > { %p2570_p12 = pnand %p2568_p11, %p2855_p7 }
  0x44   : > { %p2571_p13 = pneg %p2570_p12 }
  0x46   : > { %p2576_p1 = pnand %p2574_p0, %p2571_p13 }
  0x48   : > { %2579 = shalt.err (!%p2576_p1)
}
  0x49   : > { %s2580_s14 = scalar_lea.vmem %s2843_s17, 16  ;;  %s2587_s25 = scalar_lea.vmem %s2843_s17, 32 }
  0x4a   : > { %p2581_p4 = scmp.ne.s32.totalorder %s2843_s17, %s2580_s14  ;;  %p2588_p9 = scmp.lt.s32.totalorder %s2843_s17, %s2843_s17 }
  0x4b   : > { %p2589_p10 = scmp.lt.s32.totalorder %s2587_s25, %s2580_s14 }
  0x4c   : > { %p2583_p6 = pnand %p2581_p4, %p2855_p7 }
  0x4d   : > { %p2590_p11 = por %p2589_p10, %p2588_p9 }
  0x4e   : > { %p2584_p8 = pneg %p2583_p6 }
  0x50   : > { %p2591_p12 = pnand %p2590_p11, %p2584_p8 }
  0x52   : > { %2594 = shalt.err (!%p2591_p12)
}
  0x53   : > { %2325 = dma.hbm_to_vmem [thread:$0]  (!%p2839_p5), %s3321_s11, 16, %s2843_s17, [#allocation11]  }
  0x54   : > { %s2595_s24 = scalar_lea.hbm %s3314_s4, 16 }
  0x55   : > { %p2596_p13 = scmp.ne.s32.totalorder %s3314_s4, %s2595_s24  ;;  %p2602_p4 = scmp.lt.u32.totalorder %s2595_s24, %s3314_s4 }
  0x57   : > { %p2598_p0 = pnand %p2596_p13, %p2855_p7 }
  0x59   : > { %p2599_p1 = pneg %p2598_p0 }
  0x5b   : > { %p2604_p6 = pnand %p2602_p4, %p2599_p1 }
  0x5d   : > { %2607 = shalt.err (!%p2604_p6)
}
  0x5e   : > { %s2608_s27 = scalar_lea.vmem %s359_s19, 16  ;;  %s2615_s17 = scalar_lea.vmem %s359_s19, 32 }
  0x5f   : > { %p2609_p8 = scmp.ne.s32.totalorder %s359_s19, %s2608_s27  ;;  %p2616_p11 = scmp.lt.s32.totalorder %s359_s19, %s359_s19 }
  0x60   : > { %p2617_p12 = scmp.lt.s32.totalorder %s2615_s17, %s2608_s27 }
  0x61   : > { %p2611_p9 = pnand %p2609_p8, %p2855_p7 }
  0x62   : > { %p2618_p2 = por %p2617_p12, %p2616_p11 }
  0x63   : > { %p2612_p10 = pneg %p2611_p9 }
  0x65   : > { %p2619_p3 = pnand %p2618_p2, %p2612_p10 }
  0x67   : > { %2622 = shalt.err (!%p2619_p3)
}
  0x68   : > { %2310 = dma.hbm_to_vmem [thread:$0]  (!%p2839_p5), %s3314_s4, 16, %s359_s19, [#allocation3]  }
  0x69   : > { %s2737_s5 = smov [#allocation6]   ;;  %s2738_s22 = smov [#allocation9]  }
  0x6a   : > { %s380_s21 = sshll.u32 %s2737_s5, 4  ;;  %s410_s23 = sshll.u32 %s2738_s22, 4  ;;  %s381_s21 = int_to_ptr.vmem [resolvable:$true] %s380_s21  ;;  %s411_s23 = int_to_ptr.vmem [resolvable:$true] %s410_s23 }
  0x6b   : > { %s2623_s16 = scalar_lea.hbm %s3316_s6, 16 }
  0x6c   : > { %p2624_p2 = scmp.ne.s32.totalorder %s3316_s6, %s2623_s16  ;;  %p2630_p0 = scmp.lt.u32.totalorder %s2623_s16, %s3316_s6 }
  0x6e   : > { %p2626_p3 = pnand %p2624_p2, %p2855_p7 }
  0x70   : > { %p2627_p13 = pneg %p2626_p3 }
  0x72   : > { %p2632_p1 = pnand %p2630_p0, %p2627_p13 }
  0x74   : > { %2635 = shalt.err (!%p2632_p1)
}
  0x75   : > { %s2636_s19 = scalar_lea.vmem %s381_s21, 16  ;;  %s2643_s14 = scalar_lea.vmem %s381_s21, 32 }
  0x76   : > { %p2637_p4 = scmp.ne.s32.totalorder %s381_s21, %s2636_s19  ;;  %p2644_p9 = scmp.lt.s32.totalorder %s381_s21, %s381_s21 }
  0x77   : > { %p2645_p10 = scmp.lt.s32.totalorder %s2643_s14, %s2636_s19 }
  0x78   : > { %p2639_p6 = pnand %p2637_p4, %p2855_p7 }
  0x79   : > { %p2646_p11 = por %p2645_p10, %p2644_p9 }
  0x7a   : > { %p2640_p8 = pneg %p2639_p6 }
  0x7c   : > { %p2647_p12 = pnand %p2646_p11, %p2640_p8 }
  0x7e   : > { %2650 = shalt.err (!%p2647_p12)
}
  0x7f   : > { %2316 = dma.hbm_to_vmem [thread:$0]  (!%p2839_p5), %s3316_s6, 16, %s381_s21, [#allocation5]  }
  0x80   : > { %s2651_s30 = scalar_lea.hbm %s3320_s10, 16 }
  0x81   : > { %p2652_p2 = scmp.ne.s32.totalorder %s3320_s10, %s2651_s30  ;;  %p2658_p0 = scmp.lt.u32.totalorder %s2651_s30, %s3320_s10 }
  0x83   : > { %p2654_p3 = pnand %p2652_p2, %p2855_p7 }
  0x85   : > { %p2655_p13 = pneg %p2654_p3 }
  0x87   : > { %p2660_p1 = pnand %p2658_p0, %p2655_p13 }
  0x89   : > { %2663 = shalt.err (!%p2660_p1)
}
  0x8a   : > { %s2664_s17 = scalar_lea.vmem %s411_s23, 16  ;;  %s2671_s21 = scalar_lea.vmem %s411_s23, 32 }
  0x8b   : > { %p2665_p4 = scmp.ne.s32.totalorder %s411_s23, %s2664_s17  ;;  %p2672_p9 = scmp.lt.s32.totalorder %s411_s23, %s411_s23 }
  0x8c   : > { %p2673_p10 = scmp.lt.s32.totalorder %s2671_s21, %s2664_s17 }
  0x8d   : > { %p2667_p6 = pnand %p2665_p4, %p2855_p7 }
  0x8e   : > { %p2674_p11 = por %p2673_p10, %p2672_p9 }
  0x8f   : > { %p2668_p8 = pneg %p2667_p6 }
  0x91   : > { %p2675_p12 = pnand %p2674_p11, %p2668_p8 }
  0x93   : > { %2678 = shalt.err (!%p2675_p12)
}
  0x94   : > { %2322 = dma.hbm_to_vmem [thread:$0]  (!%p2839_p5), %s3320_s10, 16, %s411_s23, [#allocation8]  }
  0x95   : > { %s2739_s25 = smov [#allocation12]   ;;  %s2679_s30 = scalar_lea.hbm %s3322_s12, 16 }
  0x96   : > { %s432_s5 = sshll.u32 %s2739_s25, 4  ;;  %p2680_p2 = scmp.ne.s32.totalorder %s3322_s12, %s2679_s30  ;;  %s433_s5 = int_to_ptr.vmem [resolvable:$true] %s432_s5 }
  0x97   : > { %p2686_p0 = scmp.lt.u32.totalorder %s2679_s30, %s3322_s12 }
  0x98   : > { %p2682_p3 = pnand %p2680_p2, %p2855_p7 }
  0x9a   : > { %p2683_p13 = pneg %p2682_p3 }
  0x9c   : > { %p2688_p1 = pnand %p2686_p0, %p2683_p13 }
  0x9e   : > { %2691 = shalt.err (!%p2688_p1)
}
  0x9f   : > { %s2692_s23 = scalar_lea.vmem %s433_s5, 16  ;;  %s2699_s17 = scalar_lea.vmem %s433_s5, 32 }
  0xa0   : > { %p2693_p4 = scmp.ne.s32.totalorder %s433_s5, %s2692_s23  ;;  %p2700_p9 = scmp.lt.s32.totalorder %s433_s5, %s433_s5 }
  0xa1   : > { %p2701_p10 = scmp.lt.s32.totalorder %s2699_s17, %s2692_s23 }
  0xa2   : > { %p2695_p6 = pnand %p2693_p4, %p2855_p7 }
  0xa3   : > { %p2702_p11 = por %p2701_p10, %p2700_p9 }
  0xa4   : > { %p2696_p8 = pneg %p2695_p6 }
  0xa6   : > { %p2703_p12 = pnand %p2702_p11, %p2696_p8 }
  0xa8   : > { %2706 = shalt.err (!%p2703_p12)
}
  0xa9   : > { %2328 = dma.hbm_to_vmem [thread:$0]  (!%p2839_p5), %s3322_s12, 16, %s433_s5, [#allocation11]  }
  0xaa   : > { %p3333_p2 = scmp.ne.s32.totalorder %s3329_s29, 0 }
  0xab   : > { %p3334_p3 = scmp.eq.s32.totalorder (!%p3333_p2), %s2822_s28, 0 }
  0xac   : > { %453 = sbr.rel (%p3333_p2) target bundleno = 3203 (0xc83), region = 72 }
  0xb3   : > { %2712 = dma.done.wait (%p3334_p3), [#allocation3], 16   ;;  %p3335_p7 = pmov %p3334_p3 }
  0xb4   : > { %p3336_p13 = pmov %p3334_p3 }
  0xb5   : > { %2714 = vsyncadd (%p3335_p7), [#allocation3], 4294967280 }
  0xb6   : > { %2716 = dma.done.wait (%p3336_p13), [#allocation5], 32   ;;  %p3337_p0 = pmov %p3334_p3 }
  0xb8   : > { %2718 = vsyncadd (%p3337_p0), [#allocation5], 4294967264  ;;  %p3338_p1 = pmov %p3337_p0 }
  0xb9   : > { %p3339_p5 = pmov %p3337_p0 }
  0xba   : > { %2720 = dma.done.wait (%p3338_p1), [#allocation8], 2064  }
  0xbb   : > { %2722 = vsyncadd (%p3339_p5), [#allocation8], 4294965232  ;;  %p3340_p4 = pmov %p3337_p0 }
  0xbc   : > { %p3341_p6 = pmov %p3337_p0 }
  0xbd   : > { %2724 = dma.done.wait (%p3340_p4), [#allocation11], 32  }
  0xbe   : > { %2726 = vsyncadd (%p3341_p6), [#allocation11], 4294967264  ;;  %v2740_v0 = vmov 0   ;;  %v2741_v1 = vmov 0.0   ;;  %v2381_v2 = vld [vmem:[%s3311_s1 + $0x4] ss:$12 sps:$4 sm:$0xff]   ;;  %v570_v27 = vlaneseq }
  0xbf   : > { %751 = vmatprep.mubr.bf16.mxu0 %v2740_v0  ;;  %2191 = vmatprep.subr.bf16.mxu1 %v2741_v1  ;;  %v2383_v3 = vld [vmem:[%s3311_s1] ss:$12 sps:$4 sm:$0xff]   ;;  %v2384_v4 = vld [vmem:[%s3311_s1 + $0x1c] ss:$12 sps:$4 sm:$0xff]   ;;  %v2386_v5 = vld [vmem:[%s3311_s1 + $0x18] ss:$12 sps:$4 sm:$0xff]  }
  0xc0   : > { %719 = vmatprep.subr.bf16.mxu0 %v2381_v2  ;;  %v2387_v6 = vld [vmem:[%s3311_s1 + $0x34] ss:$12 sps:$4 sm:$0xff]   ;;  %p521_p8 = scmp.lt.s32.totalorder %s2822_s28, 1  ;;  %v2389_v7 = vld [vmem:[%s3311_s1 + $0x30] ss:$12 sps:$4 sm:$0xff]   ;;  %vm2742_vm0 = vmmov 0  }
  0xc1   : > { %720 = vmatpush1.bf16.msra.mxu0 %v2383_v3  ;;  %v2390_v8 = vld [vmem:[%s3311_s1 + $0x4c] ss:$12 sps:$4 sm:$0xff]   ;;  %v2392_v9 = vld [vmem:[%s3311_s1 + $0x48] ss:$12 sps:$4 sm:$0xff]   ;;  %v2393_v11 = vld [vmem:[%s3311_s1 + $0x64] ss:$12 sps:$4 sm:$0xff]   ;;  %2207 = vmatprep.mubr.msk.bf16.mxu1 %vm2742_vm0, %v2741_v1 }
  0xc2   : > { %721 = vmatprep.subr.bf16.mxu0 %v2384_v4  ;;  %s3344_s28 = smov (!%p521_p8, %s2822_s28), 1  ;;  %v2406_v10 = vld [vmem:[%s3311_s1 + $0x8] ss:$12 sps:$4 sm:$0xff]   ;;  %v2407_v12 = vld [vmem:[%s3311_s1 + $0x20] ss:$12 sps:$4 sm:$0xff]   ;;  %v3118_v28 = vshrl.u32 %v570_v27, 7 }
  0xc3   : > { %2192 = vmatpush3.bf16.msra.mxu1 %v2406_v10  ;;  %s2126_s5 = sshll.u32 %s3344_s28, 3  ;;  %v2395_v13 = vld [vmem:[%s3311_s1 + $0x60] ss:$12 sps:$4 sm:$0xff]   ;;  %v2396_v14 = vld [vmem:[%s3311_s1 + $0x7c] ss:$12 sps:$4 sm:$0xff]   ;;  %vm808_vm1 = vcmask 261120  }
  0xc4   : > { %2193 = vmatprep.subr.bf16.mxu1 %v2741_v1  ;;  %v2398_v15 = vld [vmem:[%s3311_s1 + $0x78] ss:$12 sps:$4 sm:$0xff]   ;;  %v2399_v17 = vld [vmem:[%s3311_s1 + $0x94] ss:$12 sps:$4 sm:$0xff]   ;;  %v2409_v18 = vld [vmem:[%s3311_s1 + $0x50] ss:$12 sps:$4 sm:$0xff]   ;;  %s525_s30 = scalar_lea.vmem %s3310_s0, %s2126_s5  ;;  %s530_s27 = scalar_lea.vmem %s3323_s13, %s2126_s5 }
  0xc5   : > { %722 = vmatpush1.bf16.msra.mxu0 %v2386_v5  ;;  %v2408_v16 = vld [vmem:[%s3311_s1 + $0x38] ss:$12 sps:$4 sm:$0xff]   ;;  %v2401_v19 = vld [vmem:[%s3311_s1 + $0x90] ss:$12 sps:$4 sm:$0xff]   ;;  %v2410_v21 = vld [vmem:[%s3311_s1 + $0x68] ss:$12 sps:$4 sm:$0xff]  }
  0xc6   : > { %723 = vmatprep.subr.bf16.mxu0 %v2387_v6  ;;  %v2402_v20 = vld [vmem:[%s3311_s1 + $0xac] ss:$12 sps:$4 sm:$0xff]   ;;  %v2404_v22 = vld [vmem:[%s3311_s1 + $0xa8] ss:$12 sps:$4 sm:$0xff]   ;;  %v3093_v23 = vld [vmem:[%s525_s30] sm:$0xff]   ;;  %v572_v29 = vsub.s32 0, %v3118_v28 }
  0xc7   : > { %2194 = vmatpush3.bf16.msra.mxu1 %v2407_v12  ;;  %v2411_v24 = vld [vmem:[%s3311_s1 + $0x80] ss:$12 sps:$4 sm:$0xff]   ;;  %v2412_v25 = vld [vmem:[%s3311_s1 + $0x98] ss:$12 sps:$4 sm:$0xff]   ;;  %v2413_v26 = vld [vmem:[%s3311_s1 + $0xb0] ss:$12 sps:$4 sm:$0xff]  }
  0xc8   : > { %2195 = vmatprep.subr.bf16.mxu1 %v2741_v1  ;;  %v568_v30 = vld [vmem:[%s3312_s2] sm:$0x7]  ;;  %v576_v31 = vsub.s32 1, %v3118_v28  ;;  %v580_v47 = vsub.s32 2, %v3118_v28  ;;  %vm856_vm2 = vcmask 130048   ;;  %s2743_s25 = smov 96  }
  0xc9   : > { %724 = vmatpush1.bf16.msra.mxu0 %v2389_v7  ;;  %v573_v32 = vrot.slane %v568_v30, %v572_v29  ;;  %s2744_s22 = smov 32   ;;  %s2745_s24 = smov 64   ;;  %vm1316_vm3 = vcmask 523264   ;;  %vm1319_vm4 = vcmask 785408  }
  0xca   : > { %725 = vmatprep.subr.bf16.mxu0 %v2390_v8  ;;  %v577_v34 = vrot.slane %v568_v30, %v576_v31  ;;  %v581_v48 = vrot.slane %v568_v30, %v580_v47 }
  0xcb   : > { %2196 = vmatpush3.bf16.msra.mxu1 %v2408_v16 }
  0xcc   : > { %2197 = vmatprep.subr.bf16.mxu1 %v2741_v1 }
  0xcd   : > { %726 = vmatpush1.bf16.msra.mxu0 %v2392_v9 }
  0xce   : > { %727 = vmatprep.subr.bf16.mxu0 %v2393_v11 }
  0xcf   : > { %2198 = vmatpush3.bf16.msra.mxu1 %v2409_v18 }
  0xd0   : > { %2199 = vmatprep.subr.bf16.mxu1 %v2741_v1 }
  0xd1   : > { %728 = vmatpush1.bf16.msra.mxu0 %v2395_v13 }
  0xd2   : > { %729 = vmatprep.subr.bf16.mxu0 %v2396_v14 }
  0xd3   : > { %2200 = vmatpush3.bf16.msra.mxu1 %v2410_v21 }
  0xd4   : > { %2201 = vmatprep.subr.bf16.mxu1 %v2741_v1 }
  0xd5   : > { %730 = vmatpush1.bf16.msra.mxu0 %v2398_v15 }
  0xd6   : > { %731 = vmatprep.subr.bf16.mxu0 %v2399_v17 }
  0xd7   : > { %2202 = vmatpush3.bf16.msra.mxu1 %v2411_v24 }
  0xd8   : > { %2203 = vmatprep.subr.bf16.mxu1 %v2741_v1 }
  0xd9   : > { %732 = vmatpush1.bf16.msra.mxu0 %v2401_v19 }
  0xda   : > { %733 = vmatprep.subr.bf16.mxu0 %v2402_v20 }
  0xdb   : > { %2204 = vmatpush3.bf16.msra.mxu1 %v2412_v25 }
  0xdc   : > { %2205 = vmatprep.subr.bf16.mxu1 %v2741_v1 }
  0xdd   : > { %734 = vmatpush1.bf16.msra.mxu0 %v2404_v22 }
  0xde   : > { %2235 = vmatprep.subr.bf16.mxu0 %v2741_v1 }
  0xdf   : > { %2206 = vmatpush3.bf16.msra.mxu1 %v2413_v26 }
  0xe0   : > { %752 = vmatmul.mubr.bf16.vlgmr.msra.gmra.mrb[0].mxu0 %v3093_v23  ;;  %2211 = vmatprep.subr.bf16.mxu1 %v2741_v1 }
  0xe1   : > { %2237 = vmatprep.mubr.msk.bf16.mxu0 %vm2742_vm0, %v2741_v1 }
  0xe2   : > { %2208 = vmatmul.mubr.bf16.vlgmr.msra.gmra.mrb[0].mxu1 %v3093_v23 }
  0xe3   : > { %2213 = vmatprep.mubr.msk.bf16.mxu1 %vm2742_vm0, %v2741_v1 }
 0x1b3   : > { %v753_v33 = vpop.f32.mrb[0].mxu0 }
 0x1b4   : > { %v754_v35 = vadd.f32 %v753_v33, %v573_v32  ;;  %v755_v36 = vpop.f32.mrb[1].mxu0 }
 0x1b5   : > { %v757_v37 = vpop.f32.mrb[2].mxu0  ;;  %v756_v40 = vadd.f32 %v755_v36, %v577_v34  ;;  %v796_v49 = vpop.f32.mrb[0].mxu1 }
 0x1b6   : > { %v758_v38 = vadd.f32 %v757_v37, %v573_v32  ;;  %v759_v39 = vpop.f32.mrb[3].mxu0  ;;  %v803_v42 = vmul.f32 0.17677669, %v754_v35  ;;  %v797_v50 = vadd.f32 %v796_v49, %v581_v48  ;;  %v2209_v51 = vpop.f32.mrb[1].mxu1 }
 0x1b7   : > { %v760_v41 = vadd.f32 %v759_v39, %v577_v34  ;;  %v799_v52 = vpop.f32.mrb[2].mxu1 }
 0x1b8   : > { %v804_v43 = vmul.f32 0.17677669, %v758_v38  ;;  %v800_v53 = vadd.f32 %v799_v52, %v581_v48  ;;  %v2210_v54 = vpop.f32.mrb[3].mxu1 }
 0x1b9   : > { %v806_v44 = vpack.c.bf16 %v760_v41, %v756_v40 }
 0x1ba   : > { %v805_v45 = vpack.c.bf16 %v804_v43, %v803_v42  ;;  %v3135_v55 = vpack.c.bf16 %v800_v53, %v797_v50 }
 0x1bb   : > { %v813_v46 = vsel %vm808_vm1, %v806_v44, 0 }
 0x1bc   : > { %2212 = vmatpush3.bf16.xpose.msra.mxu1 %v813_v46 }
 0x1bd   : > { %2217 = vmatprep.subr.bf16.mxu1 %v2741_v1 }
 0x1c3   : > { %2214 = vmatmul.mubr.msk.bf16.vlgmr.msra.gmra.mrb[4].mxu1 %vm808_vm1, %v805_v45 }
 0x1c4   : > { %2219 = vmatprep.mubr.msk.bf16.mxu1 %vm2742_vm0, %v2741_v1  ;;  %2218 = vmatpush3.bf16.msra.mxu1 %v3135_v55 }
 0x1c5   : > { %2223 = vmatprep.subr.bf16.mxu1 %v2741_v1 }
 0x296   : > { %v849_v56 = vpop.f32.mrb[4].mxu1 }
 0x297   : > { %v2215_v57 = vpop.f32.mrb[5].mxu1  ;;  %v857_v58 = vsel %vm856_vm2, %v849_v56, -inf }
 0x298   : > { %858 = vmax.xlane.f32.xlu0 %v857_v58  ;;  %v852_v59 = vpop.f32.mrb[6].mxu1 }
 0x299   : > { %v2216_v60 = vpop.f32.mrb[7].mxu1  ;;  %v860_v61 = vsel %vm856_vm2, %v852_v59, -inf }
 0x29c   : > { %861 = vmax.xlane.f32.xlu0 %v860_v61 }
 0x2b2   : > { %928 = vrot.lane.b32.xlu0 %v806_v44, %s2743_s25 }
 0x2b6   : > { %1171 = vrot.lane.b32.xlu0 %v806_v44, %s2744_s22 }
 0x325   : > { %v859_v62 = vpop.xlane.xlu0 %858 }
 0x326   : > { %v863_v63 = vsub.f32 %v849_v56, %v859_v62 }
 0x328   : > { %v865_v2 = vmul.f32 1.442695, %v863_v63 }
 0x329   : > { %v862_v3 = vpop.xlane.xlu0 %861 }
 0x32a   : > { %2463 = vpow2.f32 %v865_v2  ;;  %v864_v4 = vsub.f32 %v852_v59, %v862_v3 }
 0x32c   : > { %v867_v5 = vmul.f32 1.442695, %v864_v4 }
 0x32d   : > { %v929_v13 = vpop.permute.xlu0 %928 }
 0x32e   : > { %2465 = vpow2.f32 %v867_v5  ;;  %v934_v22 = vsel %vm808_vm1, %v929_v13, 0 }
 0x331   : > { %v1172_v20 = vpop.permute.xlu0 %1171 }
 0x332   : > { %v1177_v25 = vsel %vm808_vm1, %v1172_v20, 0 }
 0x334   : > { %v2464_v6 = vpop.eup %2463 }
 0x335   : > { %v869_v7 = vsel %vm856_vm2, %v2464_v6, 0.0 }
 0x336   : > { %870 = vadd.xlane.f32.xlu1 %v869_v7 }
 0x338   : > { %v2466_v8 = vpop.eup %2465 }
 0x339   : > { %v872_v9 = vsel %vm856_vm2, %v2466_v8, 0.0 }
 0x33a   : > { %873 = vadd.xlane.f32.xlu1 %v872_v9 }
 0x34b   : > { %925 = vrot.lane.b32.xlu1 %v805_v45, %s2743_s25 }
 0x34f   : > { %1050 = vrot.lane.b32.xlu1 %v806_v44, %s2745_s24 }
 0x353   : > { %1048 = vrot.lane.b32.xlu1 %v805_v45, %s2745_s24 }
 0x357   : > { %1169 = vrot.lane.b32.xlu1 %v805_v45, %s2744_s22 }
 0x3c3   : > { %v871_v10 = vpop.xlane.xlu1 %870 }
 0x3c4   : > { %2467 = vrcp.f32 %v871_v10 }
 0x3c7   : > { %v874_v11 = vpop.xlane.xlu1 %873 }
 0x3c8   : > { %2469 = vrcp.f32 %v874_v11 }
 0x3cb   : > { %v926_v12 = vpop.permute.xlu1 %925 }
 0x3ce   : > { %v2468_v15 = vpop.eup %2467 }
 0x3cf   : > { %v1051_v14 = vpop.permute.xlu1 %1050  ;;  %v877_v18 = vmul.f32 %v2468_v15, %v2464_v6 }
 0x3d0   : > { %v1056_v16 = vsel %vm808_vm1, %v1051_v14, 0 }
 0x3d1   : > { %2236 = vmatpush3.bf16.xpose.msra.mxu0 %v1056_v16 }
 0x3d2   : > { %v2470_v17 = vpop.eup %2469  ;;  %2247 = vmatprep.subr.bf16.mxu0 %v2741_v1 }
 0x3d3   : > { %v878_v19 = vmul.f32 %v2470_v17, %v2466_v8  ;;  %v1049_v24 = vpop.permute.xlu1 %1048 }
 0x3d5   : > { %v879_v21 = vpack.c.bf16 %v878_v19, %v877_v18 }
 0x3d7   : > { %2220 = vmatmul.mubr.msk.bf16.vlgmr.msra.gmra.mrb[8].mxu1 %vm856_vm2, %v879_v21  ;;  %v1170_v26 = vpop.permute.xlu1 %1169 }
 0x3d8   : > { %2224 = vmatpush3.bf16.xpose.msra.mxu1 %v934_v22  ;;  %2238 = vmatmul.mubr.msk.bf16.vlgmr.msra.gmra.mrb[4].mxu0 %vm808_vm1, %v1049_v24 }
 0x3d9   : > { %2248 = vmatpush3.bf16.xpose.msra.mxu0 %v1177_v25  ;;  %2225 = vmatprep.mubr.msk.bf16.mxu1 %vm2742_vm0, %v2741_v1 }
 0x3da   : > { %2249 = vmatprep.mubr.msk.bf16.mxu0 %vm2742_vm0, %v2741_v1  ;;  %2229 = vmatprep.subr.bf16.mxu1 %v2741_v1 }
 0x3db   : > { %2259 = vmatprep.subr.bf16.mxu0 %v2741_v1 }
 0x3df   : > { %2226 = vmatmul.mubr.msk.bf16.vlgmr.msra.gmra.mrb[12].mxu1 %vm808_vm1, %v926_v12 }
 0x3e0   : > { %2250 = vmatmul.mubr.msk.bf16.vlgmr.msra.gmra.mrb[8].mxu0 %vm808_vm1, %v1170_v26  ;;  %2231 = vmatprep.mubr.msk.bf16.mxu1 %vm2742_vm0, %v2741_v1 }
 0x3e1   : > { %2275 = vmatprep.mubr.msk.bf16.mxu0 %vm2742_vm0, %v2741_v1 }
 0x4aa   : > { %v3167_v27 = vpop.f32.mrb[8].mxu1 }
 0x4ab   : > { %v2221_v30 = vpop.f32.mrb[9].mxu1  ;;  %v1092_v32 = vpop.f32.mrb[4].mxu0 }
 0x4ac   : > { %v3169_v33 = vpop.f32.mrb[10].mxu1  ;;  %v2239_v34 = vpop.f32.mrb[5].mxu0  ;;  %v1099_v48 = vsel %vm856_vm2, %v1092_v32, -inf }
 0x4ad   : > { %v2222_v35 = vpop.f32.mrb[11].mxu1  ;;  %v1095_v36 = vpop.f32.mrb[6].mxu0 }
 0x4ae   : > { %v2240_v37 = vpop.f32.mrb[7].mxu0  ;;  %v1102_v50 = vsel %vm856_vm2, %v1095_v36, -inf }
 0x4b2   : > { %v970_v38 = vpop.f32.mrb[12].mxu1 }
 0x4b3   : > { %v2227_v39 = vpop.f32.mrb[13].mxu1  ;;  %v1213_v40 = vpop.f32.mrb[8].mxu0  ;;  %v977_v41 = vsel %vm856_vm2, %v970_v38, -inf }
 0x4b4   : > { %v2251_v42 = vpop.f32.mrb[9].mxu0  ;;  %978 = vmax.xlane.f32.xlu0 %v977_v41  ;;  %v973_v43 = vpop.f32.mrb[14].mxu1  ;;  %v1220_v51 = vsel %vm856_vm2, %v1213_v40, -inf }
 0x4b5   : > { %v2228_v44 = vpop.f32.mrb[15].mxu1  ;;  %v1216_v45 = vpop.f32.mrb[10].mxu0  ;;  %v980_v46 = vsel %vm856_vm2, %v973_v43, -inf }
 0x4b6   : > { %v2252_v47 = vpop.f32.mrb[11].mxu0  ;;  %981 = vmax.xlane.f32.xlu1 %v980_v46  ;;  %v1223_v49 = vsel %vm856_vm2, %v1216_v45, -inf }
 0x4b8   : > { %1100 = vmax.xlane.f32.xlu0 %v1099_v48 }
 0x4ba   : > { %1224 = vmax.xlane.f32.xlu1 %v1223_v49 }
 0x4bc   : > { %1103 = vmax.xlane.f32.xlu0 %v1102_v50  ;;  %v2414_v50 = vld [vmem:[%s3313_s3] sm:$0xff]  }
 0x4bd   : > { %2260 = vmatpush3.bf16.msra.mxu0 %v2414_v50 }
 0x4be   : > { %2261 = vmatprep.subr.bf16.mxu0 %v2741_v1 }
 0x4c0   : > { %1221 = vmax.xlane.f32.xlu0 %v1220_v51  ;;  %v2415_v51 = vld [vmem:[%s3313_s3 + $0x8] sm:$0xff]  }
 0x4c1   : > { %2262 = vmatpush3.bf16.msra.mxu0 %v2415_v51  ;;  %v2430_v51 = vld [vmem:[%s3317_s7 + $0x24] ss:$8 sps:$4 sm:$0xff]  }
 0x4c2   : > { %2263 = vmatprep.subr.bf16.mxu0 %v2741_v1 }
 0x541   : > { %v979_v52 = vpop.xlane.xlu0 %978 }
 0x542   : > { %v983_v62 = vsub.f32 %v970_v38, %v979_v52  ;;  %v2416_v52 = vld [vmem:[%s3313_s3 + $0x10] sm:$0xff]  }
 0x543   : > { %v982_v53 = vpop.xlane.xlu1 %981  ;;  %2264 = vmatpush3.bf16.msra.mxu0 %v2416_v52  ;;  %v2428_v52 = vld [vmem:[%s3317_s7 + $0x20] ss:$8 sps:$4 sm:$0xff]  }
 0x544   : > { %v984_v63 = vsub.f32 %v973_v43, %v982_v53  ;;  %v985_v6 = vmul.f32 1.442695, %v983_v62  ;;  %2265 = vmatprep.subr.bf16.mxu0 %v2741_v1  ;;  %v2418_v53 = vld [vmem:[%s3313_s3 + $0x20] sm:$0xff]  }
 0x545   : > { %v1101_v54 = vpop.xlane.xlu0 %1100 }
 0x546   : > { %v1105_v56 = vsub.f32 %v1092_v32, %v1101_v54  ;;  %v987_v7 = vmul.f32 1.442695, %v984_v63 }
 0x547   : > { %v1225_v57 = vpop.xlane.xlu1 %1224 }
 0x548   : > { %v1107_v58 = vmul.f32 1.442695, %v1105_v56  ;;  %v1227_v59 = vsub.f32 %v1216_v45, %v1225_v57  ;;  %v2419_v57 = vld [vmem:[%s3313_s3 + $0x28] sm:$0xff]  }
 0x549   : > { %v1104_v60 = vpop.xlane.xlu0 %1103 }
 0x54a   : > { %2471 = vpow2.f32 %v1107_v58  ;;  %v1106_v61 = vsub.f32 %v1095_v36, %v1104_v60  ;;  %v1230_v2 = vmul.f32 1.442695, %v1227_v59 }
 0x54c   : > { %v1109_v3 = vmul.f32 1.442695, %v1106_v61  ;;  %v2420_v61 = vld [vmem:[%s3313_s3 + $0x30] sm:$0xff]  }
 0x54d   : > { %v1222_v4 = vpop.xlane.xlu0 %1221 }
 0x54e   : > { %2473 = vpow2.f32 %v1109_v3  ;;  %v1226_v5 = vsub.f32 %v1213_v40, %v1222_v4 }
 0x54f   : > { %2475 = vpow2.f32 %v1230_v2  ;;  %v2421_v2 = vld [vmem:[%s3313_s3 + $0x38] sm:$0xff]  }
 0x550   : > { %v1228_v8 = vmul.f32 1.442695, %v1226_v5 }
 0x552   : > { %2477 = vpow2.f32 %v1228_v8 }
 0x553   : > { %2479 = vpow2.f32 %v985_v6 }
 0x554   : > { %v2472_v9 = vpop.eup %2471  ;;  %2481 = vpow2.f32 %v987_v7 }
 0x555   : > { %v1111_v10 = vsel %vm856_vm2, %v2472_v9, 0.0 }
 0x556   : > { %1112 = vadd.xlane.f32.xlu0 %v1111_v10 }
 0x558   : > { %v2474_v11 = vpop.eup %2473 }
 0x559   : > { %v1114_v12 = vsel %vm856_vm2, %v2474_v11, 0.0  ;;  %v2476_v13 = vpop.eup %2475 }
 0x55a   : > { %1115 = vadd.xlane.f32.xlu1 %v1114_v12  ;;  %v1235_v17 = vsel %vm856_vm2, %v2476_v13, 0.0 }
 0x55c   : > { %v2478_v14 = vpop.eup %2477 }
 0x55d   : > { %v2480_v15 = vpop.eup %2479  ;;  %v1232_v16 = vsel %vm856_vm2, %v2478_v14, 0.0 }
 0x55e   : > { %v2482_v18 = vpop.eup %2481  ;;  %1233 = vadd.xlane.f32.xlu0 %v1232_v16  ;;  %1236 = vadd.xlane.f32.xlu1 %v1235_v17  ;;  %v989_v19 = vsel %vm856_vm2, %v2480_v15, 0.0 }
 0x55f   : > { %v992_v20 = vsel %vm856_vm2, %v2482_v18, 0.0 }
 0x562   : > { %990 = vadd.xlane.f32.xlu0 %v989_v19  ;;  %993 = vadd.xlane.f32.xlu1 %v992_v20 }
 0x573   : > { %1122 = vrot.lane.b32.xlu1 %v3135_v55, %s2745_s24 }
 0x577   : > { %1243 = vrot.lane.b32.xlu1 %v3135_v55, %s2744_s22 }
 0x578   : > { %1001 = vrot.lane.b32.xlu0 %v3135_v55, %s2743_s25 }
 0x5e3   : > { %v1113_v21 = vpop.xlane.xlu0 %1112 }
 0x5e7   : > { %v1116_v22 = vpop.xlane.xlu1 %1115 }
 0x5eb   : > { %v1234_v24 = vpop.xlane.xlu0 %1233  ;;  %v1237_v25 = vpop.xlane.xlu1 %1236 }
 0x5ef   : > { %v991_v26 = vpop.xlane.xlu0 %990  ;;  %v994_v30 = vpop.xlane.xlu1 %993 }
 0x5f0   : > { %2483 = vrcp.f32 %v991_v26 }
 0x5f1   : > { %2485 = vrcp.f32 %v994_v30  ;;  %v2076_v30 = vld [vmem:[#allocation2] ss:$0 sm:$0xff] }
 0x5f2   : > { %2487 = vrcp.f32 %v1116_v22 }
 0x5f3   : > { %v1002_v32 = vpop.permute.xlu0 %1001  ;;  %2489 = vrcp.f32 %v1113_v21  ;;  %v1123_v39 = vpop.permute.xlu1 %1122 }
 0x5f4   : > { %2230 = vmatpush3.bf16.msra.mxu1 %v1002_v32  ;;  %2491 = vrcp.f32 %v1234_v24  ;;  %v534_v32 = vunpack.c.l.bf16 %v3093_v23 }
 0x5f5   : > { %2241 = vmatprep.subr.bf16.mxu1 %v2741_v1  ;;  %2493 = vrcp.f32 %v1237_v25 }
 0x5f7   : > { %v1244_v46 = vpop.permute.xlu1 %1243 }
 0x5fa   : > { %v2484_v34 = vpop.eup %2483 }
 0x5fb   : > { %v2486_v35 = vpop.eup %2485  ;;  %v997_v36 = vmul.f32 %v2484_v34, %v2480_v15 }
 0x5fc   : > { %v998_v37 = vmul.f32 %v2486_v35, %v2482_v18  ;;  %v2488_v38 = vpop.eup %2487 }
 0x5fd   : > { %v2490_v40 = vpop.eup %2489  ;;  %v1120_v41 = vmul.f32 %v2488_v38, %v2474_v11 }
 0x5fe   : > { %v999_v55 = vpack.c.bf16 %v998_v37, %v997_v36  ;;  %v1119_v42 = vmul.f32 %v2490_v40, %v2472_v9  ;;  %v2492_v43 = vpop.eup %2491  ;;  %v535_v37 = vunpack.c.h.bf16 %v3093_v23  ;;  %v2422_v40 = vld [vmem:[%s3317_s7] ss:$8 sps:$4 sm:$0xff]   ;;  %v2425_v23 = vld [vmem:[%s3317_s7 + $0x10] ss:$8 sps:$4 sm:$0xff]  }
 0x5ff   : > { %v2494_v45 = vpop.eup %2493  ;;  %v1240_v47 = vmul.f32 %v2492_v43, %v2478_v14 }
 0x600   : > { %2232 = vmatmul.mubr.msk.bf16.vlgmr.msra.gmra.mrb[16].mxu1 %vm856_vm2, %v999_v55  ;;  %v1121_v44 = vpack.c.bf16 %v1120_v41, %v1119_v42  ;;  %v1241_v48 = vmul.f32 %v2494_v45, %v2476_v13  ;;  %v2424_v41 = vld [vmem:[%s3317_s7 + $0x4] ss:$8 sps:$4 sm:$0xff]   ;;  %v2427_v42 = vld [vmem:[%s3317_s7 + $0x14] ss:$8 sps:$4 sm:$0xff]  }
 0x601   : > { %2242 = vmatpush3.bf16.msra.mxu1 %v1123_v39  ;;  %2243 = vmatprep.mubr.msk.bf16.mxu1 %vm2742_vm0, %v2741_v1 }
 0x602   : > { %2253 = vmatprep.subr.bf16.mxu1 %v2741_v1  ;;  %v1242_v49 = vpack.c.bf16 %v1241_v48, %v1240_v47 }
 0x608   : > { %2244 = vmatmul.mubr.msk.bf16.vlgmr.msra.gmra.mrb[20].mxu1 %vm856_vm2, %v1121_v44 }
 0x609   : > { %2254 = vmatpush3.bf16.msra.mxu1 %v1244_v46  ;;  %2255 = vmatprep.mubr.msk.bf16.mxu1 %vm2742_vm0, %v2741_v1 }
 0x60a   : > { %1587 = vmatprep.subr.bf16.mxu1 %v2424_v41 }
 0x610   : > { %2256 = vmatmul.mubr.msk.bf16.vlgmr.msra.gmra.mrb[24].mxu1 %vm856_vm2, %v1242_v49 }
 0x611   : > { %1619 = vmatprep.mubr.bf16.mxu1 %v2740_v0  ;;  %v2417_v0 = vld [vmem:[%s3313_s3 + $0x18] sm:$0xff]   ;;  %1588 = vmatpush1.bf16.msra.mxu1 %v2422_v40 }
 0x612   : > { %2266 = vmatpush3.bf16.msra.mxu0 %v2417_v0  ;;  %1589 = vmatprep.subr.bf16.mxu1 %v2427_v42  ;;  %v2433_v0 = vld [vmem:[%s3317_s7 + $0x34] ss:$8 sps:$4 sm:$0xff]  }
 0x613   : > { %2267 = vmatprep.subr.bf16.mxu0 %v2741_v1 }
 0x615   : > { %1590 = vmatpush1.bf16.msra.mxu1 %v2425_v23 }
 0x616   : > { %2268 = vmatpush3.bf16.msra.mxu0 %v2418_v53  ;;  %1591 = vmatprep.subr.bf16.mxu1 %v2430_v51  ;;  %v2431_v53 = vld [vmem:[%s3317_s7 + $0x30] ss:$8 sps:$4 sm:$0xff]  }
 0x617   : > { %2269 = vmatprep.subr.bf16.mxu0 %v2741_v1 }
 0x619   : > { %1592 = vmatpush1.bf16.msra.mxu1 %v2428_v52 }
 0x61a   : > { %2270 = vmatpush3.bf16.msra.mxu0 %v2419_v57  ;;  %1593 = vmatprep.subr.bf16.mxu1 %v2433_v0  ;;  %v2439_v57 = vld [vmem:[%s3317_s7 + $0x54] ss:$8 sps:$4 sm:$0xff]  }
 0x61b   : > { %2271 = vmatprep.subr.bf16.mxu0 %v2741_v1 }
 0x61d   : > { %1594 = vmatpush1.bf16.msra.mxu1 %v2431_v53 }
 0x61e   : > { %2272 = vmatpush3.bf16.msra.mxu0 %v2420_v61  ;;  %v2445_v61 = vld [vmem:[%s3317_s7 + $0x74] ss:$8 sps:$4 sm:$0xff]  }
 0x61f   : > { %2273 = vmatprep.subr.bf16.mxu0 %v2741_v1 }
 0x622   : > { %2274 = vmatpush3.bf16.msra.mxu0 %v2421_v2 }
 0x6d3   : > { %v1041_v54 = vpop.f32.mrb[16].mxu1 }
 0x6d4   : > { %v2233_v56 = vpop.f32.mrb[17].mxu1 }
 0x6d5   : > { %v1044_v58 = vpop.f32.mrb[18].mxu1  ;;  %v2434_v56 = vld [vmem:[%s3317_s7 + $0x40] ss:$8 sps:$4 sm:$0xff]  }
 0x6d6   : > { %v2366_v59 = vpack.i.bf16 %v1044_v58, %v1041_v54  ;;  %v2234_v60 = vpop.f32.mrb[19].mxu1  ;;  %v2436_v54 = vld [vmem:[%s3317_s7 + $0x44] ss:$8 sps:$4 sm:$0xff]   ;;  %v2437_v58 = vld [vmem:[%s3317_s7 + $0x50] ss:$8 sps:$4 sm:$0xff]  }
 0x6d7   : > { %1595 = vmatprep.subr.bf16.mxu1 %v2436_v54  ;;  %v2440_v60 = vld [vmem:[%s3317_s7 + $0x60] ss:$8 sps:$4 sm:$0xff]  }
 0x6d8   : > { %2367 = vrot.lane.b32.xlu1 %v2366_v59, %s2744_s22  ;;  %1596 = vmatpush1.bf16.msra.mxu1 %v2434_v56  ;;  %v2442_v59 = vld [vmem:[%s3317_s7 + $0x64] ss:$8 sps:$4 sm:$0xff]  }
 0x6d9   : > { %1597 = vmatprep.subr.bf16.mxu1 %v2439_v57 }
 0x6db   : > { %v1162_v62 = vpop.f32.mrb[20].mxu1 }
 0x6dc   : > { %v2245_v63 = vpop.f32.mrb[21].mxu1  ;;  %1598 = vmatpush1.bf16.msra.mxu1 %v2437_v58 }
 0x6dd   : > { %v1165_v3 = vpop.f32.mrb[22].mxu1  ;;  %1599 = vmatprep.subr.bf16.mxu1 %v2442_v59 }
 0x6de   : > { %v2371_v4 = vpack.i.bf16 %v1165_v3, %v1162_v62  ;;  %v2246_v5 = vpop.f32.mrb[23].mxu1  ;;  %v2443_v62 = vld [vmem:[%s3317_s7 + $0x70] ss:$8 sps:$4 sm:$0xff]  }
 0x6e0   : > { %2372 = vrot.lane.b32.xlu0 %v2371_v4, %s2745_s24  ;;  %1600 = vmatpush1.bf16.msra.mxu1 %v2440_v60 }
 0x6e1   : > { %1601 = vmatprep.subr.bf16.mxu1 %v2445_v61 }
 0x6e3   : > { %v1283_v6 = vpop.f32.mrb[24].mxu1 }
 0x6e4   : > { %v2257_v7 = vpop.f32.mrb[25].mxu1  ;;  %1602 = vmatpush1.bf16.msra.mxu1 %v2443_v62 }
 0x6e5   : > { %v1286_v8 = vpop.f32.mrb[26].mxu1 }
 0x6e6   : > { %v2376_v9 = vpack.i.bf16 %v1286_v8, %v1283_v6  ;;  %v2258_v10 = vpop.f32.mrb[27].mxu1 }
 0x6e8   : > { %2377 = vrot.lane.b32.xlu1 %v2376_v9, %s2743_s25  ;;  %v2085_v9 = vld [vmem:[#allocation4] ss:$0 sm:$0xff] }
 0x74a   : > { %v2368_v11 = vpop.permute.xlu1 %2367 }
 0x74b   : > { %v2370_v12 = vunpack.i.h.bf16 %v2368_v11  ;;  %v2369_v13 = vunpack.i.l.bf16 %v2368_v11 }
 0x74d   : > { %v1315_v17 = vsel %vm808_vm1, %v3169_v33, %v2370_v12  ;;  %v1314_v18 = vsel %vm808_vm1, %v3167_v27, %v2369_v13  ;;  %v2086_v12 = vld [vmem:[#allocation6] ss:$0 sm:$0xff] }
 0x752   : > { %v2373_v1 = vpop.permute.xlu0 %2372 }
 0x753   : > { %v2375_v14 = vunpack.i.h.bf16 %v2373_v1  ;;  %v2374_v15 = vunpack.i.l.bf16 %v2373_v1 }
 0x755   : > { %v1318_v21 = vsel %vm1316_vm3, %v1315_v17, %v2375_v14  ;;  %v1317_v22 = vsel %vm1316_vm3, %v1314_v18, %v2374_v15  ;;  %v2446_v17 = vld [vmem:[#allocation7 + $0x40] sm:$0xff]  }
 0x756   : > { %v2447_v18 = vld [vmem:[#allocation7] sm:$0xff]   ;;  %2169 = vmatprep.subr.bf16.mxu0 %v2446_v17 }
 0x75a   : > { %v2378_v16 = vpop.permute.xlu1 %2377 }
 0x75b   : > { %v2380_v19 = vunpack.i.h.bf16 %v2378_v16  ;;  %v2379_v20 = vunpack.i.l.bf16 %v2378_v16 }
 0x75d   : > { %v1321_v24 = vsel %vm1319_vm4, %v1318_v21, %v2380_v19  ;;  %v1320_v25 = vsel %vm1319_vm4, %v1317_v22, %v2379_v20  ;;  %v2448_v19 = vld [vmem:[#allocation7 + $0x48] sm:$0xff]   ;;  %v2450_v21 = vld [vmem:[#allocation7 + $0x50] sm:$0xff]  }
 0x75e   : > { %v1322_v26 = vpack.c.bf16 %v1321_v24, %v1320_v25  ;;  %v2449_v20 = vld [vmem:[#allocation7 + $0x8] sm:$0xff]   ;;  %v2451_v22 = vld [vmem:[#allocation7 + $0x10] sm:$0xff]   ;;  %v2452_v24 = vld [vmem:[#allocation7 + $0x58] sm:$0xff]  }
 0x75f   : > { %v2453_v25 = vld [vmem:[#allocation7 + $0x18] sm:$0xff]  }
 0x760   : > { %2276 = vmatmul.mubr.bf16.vlgmr.msra.gmra.mrb[12].mxu0 %v1322_v26  ;;  %v2454_v26 = vld [vmem:[#allocation7 + $0x60] sm:$0xff]  }
 0x761   : > { %2170 = vmatpush3.bf16.msra.mxu0 %v2447_v18 }
 0x762   : > { %2171 = vmatprep.subr.bf16.mxu0 %v2448_v19 }
 0x765   : > { %2172 = vmatpush3.bf16.msra.mxu0 %v2449_v20 }
 0x766   : > { %2173 = vmatprep.subr.bf16.mxu0 %v2450_v21  ;;  %v2103_v21 = vld [vmem:[#allocation9] ss:$0 sm:$0xff] }
 0x769   : > { %2174 = vmatpush3.bf16.msra.mxu0 %v2451_v22 }
 0x76a   : > { %2175 = vmatprep.subr.bf16.mxu0 %v2452_v24 }
 0x76d   : > { %2176 = vmatpush3.bf16.msra.mxu0 %v2453_v25 }
 0x76e   : > { %2177 = vmatprep.subr.bf16.mxu0 %v2454_v26 }
 0x833   : > { %v1428_v34 = vpop.f32.mrb[12].mxu0 }
 0x834   : > { %v1429_v35 = vadd.f32 %v2076_v30, %v1428_v34  ;;  %v2277_v36 = vpop.f32.mrb[13].mxu0  ;;  %v2457_v34 = vld [vmem:[#allocation7 + $0x28] sm:$0xff]  }
 0x835   : > { %v1431_v33 = vpop.f32.mrb[14].mxu0  ;;  %v2459_v36 = vld [vmem:[#allocation7 + $0x30] sm:$0xff]  }
 0x836   : > { %v1432_v55 = vadd.f32 %v2076_v30, %v1431_v33  ;;  %v2278_v38 = vpop.f32.mrb[15].mxu0  ;;  %v1435_v27 = vadd.f32 %v1429_v35, %v534_v32  ;;  %v2455_v30 = vld [vmem:[#allocation7 + $0x20] sm:$0xff]   ;;  %v2456_v32 = vld [vmem:[#allocation7 + $0x68] sm:$0xff]   ;;  %v2458_v35 = vld [vmem:[#allocation7 + $0x70] sm:$0xff]  }
 0x837   : > { %2178 = vmatpush3.bf16.msra.mxu0 %v2455_v30  ;;  %v2461_v33 = vld [vmem:[#allocation7 + $0x38] sm:$0xff]  }
 0x838   : > { %1439 = vadd.xlane.f32.xlu0 %v1435_v27  ;;  %v1436_v39 = vadd.f32 %v1432_v55, %v535_v37  ;;  %2179 = vmatprep.subr.bf16.mxu0 %v2456_v32  ;;  %v2460_v37 = vld [vmem:[#allocation7 + $0x78] sm:$0xff]  }
 0x839   : > { %v1495_v55 = vld [vmem:[%s3318_s8] sm:$0x3] }
 0x83a   : > { %1441 = vadd.xlane.f32.xlu1 %v1436_v39  ;;  %v1500_v38 = vrot.slane %v1495_v55, %v572_v29 }
 0x83b   : > { %2180 = vmatpush3.bf16.msra.mxu0 %v2457_v34 }
 0x83c   : > { %2181 = vmatprep.subr.bf16.mxu0 %v2458_v35 }
 0x83f   : > { %2182 = vmatpush3.bf16.msra.mxu0 %v2459_v36 }
 0x840   : > { %2183 = vmatprep.subr.bf16.mxu0 %v2460_v37 }
 0x843   : > { %2184 = vmatpush3.bf16.msra.mxu0 %v2461_v33 }
 0x8c5   : > { %v1440_v43 = vpop.xlane.xlu0 %1439 }
 0x8c6   : > { %v1444_v44 = vmul.f32 0.0078125, %v1440_v43 }
 0x8c7   : > { %v1442_v45 = vpop.xlane.xlu1 %1441 }
 0x8c8   : > { %v1446_v46 = vsub.f32 %v1435_v27, %v1444_v44  ;;  %v1445_v47 = vmul.f32 0.0078125, %v1442_v45  ;;  %v1504_v27 = vrot.slane %v1495_v55, %v576_v31 }
 0x8ca   : > { %v1447_v48 = vsub.f32 %v1436_v39, %v1445_v47  ;;  %v1448_v49 = vmul.f32 %v1446_v46, %v1446_v46 }
 0x8cc   : > { %1450 = vadd.xlane.f32.xlu0 %v1448_v49  ;;  %v1449_v50 = vmul.f32 %v1447_v48, %v1447_v48 }
 0x8d0   : > { %1452 = vadd.xlane.f32.xlu0 %v1449_v50 }
 0x959   : > { %v1451_v63 = vpop.xlane.xlu0 %1450 }
 0x95a   : > { %v1454_v2 = vmul.f32 0.0078125, %v1451_v63 }
 0x95c   : > { %v1456_v3 = vadd.f32 1e-05, %v1454_v2 }
 0x95d   : > { %v1453_v4 = vpop.xlane.xlu0 %1452 }
 0x95e   : > { %2495 = vrsqrt.f32 %v1456_v3  ;;  %v1455_v5 = vmul.f32 0.0078125, %v1453_v4 }
 0x960   : > { %v1457_v6 = vadd.f32 1e-05, %v1455_v5 }
 0x962   : > { %2497 = vrsqrt.f32 %v1457_v6 }
 0x968   : > { %v2496_v7 = vpop.eup %2495 }
 0x969   : > { %v1460_v8 = vmul.f32 %v2496_v7, %v1446_v46 }
 0x96b   : > { %v1468_v1 = vmul.f32 %v2085_v9, %v1460_v8 }
 0x96c   : > { %v2498_v10 = vpop.eup %2497 }
 0x96d   : > { %v1461_v11 = vmul.f32 %v2498_v10, %v1447_v48  ;;  %v3287_v14 = vadd.f32 %v2086_v12, %v1468_v1 }
 0x96f   : > { %v1469_v13 = vmul.f32 %v2085_v9, %v1461_v11 }
 0x971   : > { %v3289_v15 = vadd.f32 %v2086_v12, %v1469_v13 }
 0x973   : > { %v1478_v16 = vpack.c.bf16 %v3289_v15, %v3287_v14 }
 0x975   : > { %1620 = vmatmul.mubr.bf16.vlgmr.msra.gmra.mrb[28].mxu1 %v1478_v16 }
 0xa48   : > { %v1621_v39 = vpop.f32.mrb[28].mxu1 }
 0xa49   : > { %v1622_v40 = vadd.f32 %v1621_v39, %v1500_v38  ;;  %v1623_v41 = vpop.f32.mrb[29].mxu1 }
 0xa4a   : > { %v1624_v42 = vadd.f32 %v1623_v41, %v1504_v27  ;;  %v1625_v23 = vpop.f32.mrb[30].mxu1 }
 0xa4b   : > { %v1630_v43 = vmul.f32 %v1622_v40, %v1622_v40  ;;  %v1626_v44 = vadd.f32 %v1625_v23, %v1500_v38  ;;  %v1627_v45 = vpop.f32.mrb[31].mxu1 }
 0xa4c   : > { %v1631_v46 = vmul.f32 %v1624_v42, %v1624_v42  ;;  %v1628_v47 = vadd.f32 %v1627_v45, %v1504_v27 }
 0xa4d   : > { %v1634_v48 = vmul.f32 %v1630_v43, %v1622_v40  ;;  %v1632_v49 = vmul.f32 %v1626_v44, %v1626_v44 }
 0xa4e   : > { %v1635_v50 = vmul.f32 %v1631_v46, %v1624_v42  ;;  %v1633_v51 = vmul.f32 %v1628_v47, %v1628_v47  ;;  %v2120_v46 = vld [vmem:[#allocation10] ss:$0 sm:$0xff] }
 0xa4f   : > { %v1638_v52 = vmul.f32 0.044715, %v1634_v48  ;;  %v1636_v0 = vmul.f32 %v1632_v49, %v1626_v44 }
 0xa50   : > { %v1639_v29 = vmul.f32 0.044715, %v1635_v50  ;;  %v1637_v53 = vmul.f32 %v1633_v51, %v1628_v47  ;;  %v2121_v51 = vld [vmem:[#allocation12] ss:$0 sm:$0xff] }
 0xa51   : > { %v1642_v28 = vadd.f32 %v1638_v52, %v1622_v40  ;;  %v1640_v31 = vmul.f32 0.044715, %v1636_v0 }
 0xa52   : > { %v1643_v54 = vadd.f32 %v1639_v29, %v1624_v42  ;;  %v1641_v56 = vmul.f32 0.044715, %v1637_v53 }
 0xa53   : > { %v1646_v57 = vmul.f32 0.7978846, %v1642_v28  ;;  %v1644_v58 = vadd.f32 %v1640_v31, %v1626_v44 }
 0xa54   : > { %v1647_v59 = vmul.f32 0.7978846, %v1643_v54  ;;  %v1645_v60 = vadd.f32 %v1641_v56, %v1628_v47 }
 0xa55   : > { %2499 = vtanh.f32 %v1646_v57  ;;  %v1648_v61 = vmul.f32 0.7978846, %v1644_v58 }
 0xa56   : > { %2501 = vtanh.f32 %v1647_v59  ;;  %v1649_v62 = vmul.f32 0.7978846, %v1645_v60 }
 0xa57   : > { %2503 = vtanh.f32 %v1648_v61 }
 0xa58   : > { %2505 = vtanh.f32 %v1649_v62 }
 0xa5f   : > { %v2500_v63 = vpop.eup %2499 }
 0xa60   : > { %v2502_v2 = vpop.eup %2501  ;;  %v1654_v3 = vadd.f32 1.0, %v2500_v63 }
 0xa61   : > { %v2504_v4 = vpop.eup %2503  ;;  %v1655_v5 = vadd.f32 1.0, %v2502_v2 }
 0xa62   : > { %v2506_v6 = vpop.eup %2505  ;;  %v1658_v7 = vmul.f32 0.5, %v1654_v3  ;;  %v1656_v8 = vadd.f32 1.0, %v2504_v4 }
 0xa63   : > { %v1657_v9 = vadd.f32 1.0, %v2506_v6  ;;  %v1659_v10 = vmul.f32 0.5, %v1655_v5 }
 0xa64   : > { %v1660_v11 = vmul.f32 0.5, %v1656_v8  ;;  %v1662_v12 = vmul.f32 %v1658_v7, %v1622_v40 }
 0xa65   : > { %v1661_v1 = vmul.f32 0.5, %v1657_v9  ;;  %v1663_v16 = vmul.f32 %v1659_v10, %v1624_v42 }
 0xa66   : > { %v1664_v13 = vmul.f32 %v1660_v11, %v1626_v44 }
 0xa67   : > { %v1665_v17 = vmul.f32 %v1661_v1, %v1628_v47 }
 0xa68   : > { %v1666_v18 = vpack.c.bf16 %v1664_v13, %v1662_v12 }
 0xa69   : > { %v1667_v19 = vpack.c.bf16 %v1665_v17, %v1663_v16 }
 0xa6b   : > { %1835 = vmatprep.mubr.bf16.mxu0 %v1667_v19 }
 0xa6c   : > { %1836 = vmatmul.mubr.bf16.vlgmr.msra.gmra.mrb[16].mxu0 %v1666_v18 }
 0xb3f   : > { %v2185_v20 = vpop.f32.mrb[16].mxu0 }
 0xb40   : > { %v2186_v22 = vpop.f32.mrb[17].mxu0 }
 0xb41   : > { %v2187_v24 = vadd.f32 %v2186_v22, %v2185_v20  ;;  %v2188_v25 = vpop.f32.mrb[18].mxu0 }
 0xb42   : > { %v2189_v26 = vpop.f32.mrb[19].mxu0 }
 0xb43   : > { %v1838_v30 = vadd.f32 %v2187_v24, %v2103_v21  ;;  %v2190_v32 = vadd.f32 %v2189_v26, %v2188_v25 }
 0xb45   : > { %v1841_v34 = vadd.f32 %v2190_v32, %v2103_v21  ;;  %v1844_v35 = vadd.f32 %v1838_v30, %v3287_v14 }
 0xb47   : > { %1848 = vadd.xlane.f32.xlu0 %v1844_v35  ;;  %v1845_v36 = vadd.f32 %v1841_v34, %v3289_v15 }
 0xb49   : > { %1850 = vadd.xlane.f32.xlu1 %v1845_v36 }
 0xbd4   : > { %v1849_v37 = vpop.xlane.xlu0 %1848 }
 0xbd5   : > { %v1852_v33 = vmul.f32 0.0078125, %v1849_v37 }
 0xbd6   : > { %v1851_v55 = vpop.xlane.xlu1 %1850 }
 0xbd7   : > { %v1854_v38 = vsub.f32 %v1844_v35, %v1852_v33  ;;  %v1853_v27 = vmul.f32 0.0078125, %v1851_v55 }
 0xbd9   : > { %v1855_v39 = vsub.f32 %v1845_v36, %v1853_v27  ;;  %v1856_v40 = vmul.f32 %v1854_v38, %v1854_v38 }
 0xbdb   : > { %1858 = vadd.xlane.f32.xlu0 %v1856_v40  ;;  %v1857_v41 = vmul.f32 %v1855_v39, %v1855_v39 }
 0xbdd   : > { %1860 = vadd.xlane.f32.xlu1 %v1857_v41 }
 0xc68   : > { %v1859_v42 = vpop.xlane.xlu0 %1858 }
 0xc69   : > { %v1862_v23 = vmul.f32 0.0078125, %v1859_v42 }
 0xc6a   : > { %v1861_v43 = vpop.xlane.xlu1 %1860 }
 0xc6b   : > { %v1864_v44 = vadd.f32 1e-05, %v1862_v23  ;;  %v1863_v14 = vmul.f32 0.0078125, %v1861_v43 }
 0xc6d   : > { %2507 = vrsqrt.f32 %v1864_v44  ;;  %v1865_v45 = vadd.f32 1e-05, %v1863_v14 }
 0xc6f   : > { %2509 = vrsqrt.f32 %v1865_v45 }
 0xc77   : > { %v2508_v15 = vpop.eup %2507 }
 0xc78   : > { %v1868_v47 = vmul.f32 %v2508_v15, %v1854_v38 }
 0xc79   : > { %v2510_v48 = vpop.eup %2509 }
 0xc7a   : > { %v1876_v49 = vmul.f32 %v2120_v46, %v1868_v47  ;;  %v1869_v50 = vmul.f32 %v2510_v48, %v1855_v39 }
 0xc7c   : > { %v1877_v52 = vmul.f32 %v2120_v46, %v1869_v50  ;;  %v1884_v0 = vadd.f32 %v2121_v51, %v1876_v49 }
 0xc7e   : > { %v1885_v29 = vadd.f32 %v2121_v51, %v1877_v52 }
 0xc80   : > { %v2133_v53 = vpack.c.bf16 %v1885_v29, %v1884_v0 }
 0xc82   : > { %2134 = vst [vmem:[%s530_s27] sm:$0xff] %v2133_v53  }
 0xc83 PF: > { %s3342_s23 = sld [smem:[#allocation17_spill]] }
 0xc89   : > { %s27_s25 = sadd.s32 1, %s3342_s23  }
 0xc8a   : > { %p24_p9 = scmp.ge.s32.totalorder %s27_s25, 4  }
 0xc8c   :  { %26 = sbr.rel (!%p24_p9) target bundleno = 6 (0x6), region = 131 }
 0xc93   :  { %1917 = vsyncpa [#allocation3], 1 }
 0xc94   :  { %1919 = vsyncpa [#allocation3 + $0x1], 1 }
 0xc95   :  { %1920 = vsyncpa [#allocation5], 1 }
 0xc96   :  { %1921 = vsyncpa [#allocation8], 1 }
 0xc97   :  { %1922 = vsyncpa [#allocation11], 1 }

// kernel: bert_forward.4
= control target key start
LH: loop header
LB: loop body
LE: loop exit
PB: predicated region body
PF: predicated region fallthrough
CT: control target
= control target key end

     0   :  { %s2349_s25 = smov 0   ;;  %s2716_s0 = inlined_call_operand.vmem [shape: bf16[2,16,128], index: 0, kind: input, shape index: {}]   ;;  %s2717_s1 = inlined_call_operand.vmem [shape: bf16[128,384], index: 1, kind: input, shape index: {}]   ;;  %s2718_s2 = inlined_call_operand.vmem [shape: f32[1,384], index: 2, kind: input, shape index: {}]   ;;  %s2719_s3 = inlined_call_operand.vmem [shape: bf16[128,128], index: 3, kind: input, shape index: {}]   ;;  %s2720_s4 = inlined_call_operand.vmem [shape: f32[1,128], index: 4, kind: input, shape index: {}]   ;;  %s2721_s5 = inlined_call_operand.vmem [shape: f32[1,128], index: 5, kind: input, shape index: {}]   ;;  %s2722_s6 = inlined_call_operand.vmem [shape: f32[1,128], index: 6, kind: input, shape index: {}]   ;;  %s2723_s7 = inlined_call_operand.vmem [shape: bf16[128,256], index: 7, kind: input, shape index: {}]   ;;  %s2724_s8 = inlined_call_operand.vmem [shape: f32[1,256], index: 8, kind: input, shape index: {}]   ;;  %s2725_s9 = inlined_call_operand.vmem [shape: bf16[256,128], index: 9, kind: input, shape index: {}]   ;;  %s2726_s10 = inlined_call_operand.vmem [shape: f32[1,128], index: 10, kind: input, shape index: {}]   ;;  %s2727_s11 = inlined_call_operand.vmem [shape: f32[1,128], index: 11, kind: input, shape index: {}]   ;;  %s2728_s12 = inlined_call_operand.vmem [shape: f32[1,128], index: 12, kind: input, shape index: {}]   ;;  %s2729_s13 = inlined_call_operand.vmem [shape: bf16[2,16,128], index: 13, kind: output, shape index: {}]  }
   0x1 LB: > { %s1861_s26 = sadd.s32 4294967295, %s2271_s25   ;;  %p1865_p0 = scmp.ge.s32.totalorder %s2271_s25, 1  ;;  %s2271_s25 = sphi %s2349_s25, %s23_s25  }
   0x2   : > { %p387_p1 = scmp.lt.s32.totalorder %s2271_s25, 3 }
   0x4   : > { %p388_p2 = pnand %p1865_p0, %p387_p1 }
   0x5   : > { %v2135_v0 = vld [vmem:[%s2717_s1 + $0x4] ss:$12 sps:$4 sm:$0xff] (!%p388_p2)   ;;  %v2137_v1 = vld [vmem:[%s2717_s1] ss:$12 sps:$4 sm:$0xff] (!%p388_p2)   ;;  %v2273_v2 = vmov (!%p388_p2), 0   ;;  %v2274_v4 = vmov (!%p388_p2), 0.0   ;;  %v480_v27 = vlaneseq (!%p388_p2) }
   0x6   : > { %391 = sbr.rel (%p388_p2) target bundleno = 3017 (0xbc9), region = 72  ;;  %661 = vmatprep.mubr.bf16.mxu0 (!%p388_p2), %v2273_v2  ;;  %629 = vmatprep.subr.bf16.mxu0 (!%p388_p2), %v2135_v0  ;;  %v2138_v3 = vld [vmem:[%s2717_s1 + $0x1c] ss:$12 sps:$4 sm:$0xff] (!%p388_p2)   ;;  %v2140_v5 = vld [vmem:[%s2717_s1 + $0x18] ss:$12 sps:$4 sm:$0xff] (!%p388_p2)   ;;  %p431_p3 = scmp.lt.s32.totalorder (!%p388_p2), %s1861_s26, 1 }
   0x7   : > { %2018 = vmatprep.subr.bf16.mxu1 (!%p388_p2), %v2274_v4  ;;  %630 = vmatpush1.bf16.msra.mxu0 (!%p388_p2), %v2137_v1  ;;  %v2141_v6 = vld [vmem:[%s2717_s1 + $0x34] ss:$12 sps:$4 sm:$0xff] (!%p388_p2)   ;;  %v2143_v7 = vld [vmem:[%s2717_s1 + $0x30] ss:$12 sps:$4 sm:$0xff] (!%p388_p2)   ;;  %v2144_v8 = vld [vmem:[%s2717_s1 + $0x4c] ss:$12 sps:$4 sm:$0xff] (!%p388_p2)  }
   0x8   : > { %631 = vmatprep.subr.bf16.mxu0 (!%p388_p2), %v2138_v3  ;;  %v2146_v9 = vld [vmem:[%s2717_s1 + $0x48] ss:$12 sps:$4 sm:$0xff] (!%p388_p2)   ;;  %v2147_v11 = vld [vmem:[%s2717_s1 + $0x64] ss:$12 sps:$4 sm:$0xff] (!%p388_p2)   ;;  %v2161_v12 = vld [vmem:[%s2717_s1 + $0x20] ss:$12 sps:$4 sm:$0xff] (!%p388_p2)  }
   0x9   : > { %v2160_v10 = vld [vmem:[%s2717_s1 + $0x8] ss:$12 sps:$4 sm:$0xff] (!%p388_p2)   ;;  %v2149_v13 = vld [vmem:[%s2717_s1 + $0x60] ss:$12 sps:$4 sm:$0xff] (!%p388_p2)   ;;  %v2152_v15 = vld [vmem:[%s2717_s1 + $0x78] ss:$12 sps:$4 sm:$0xff] (!%p388_p2)  }
   0xa   : > { %2019 = vmatpush3.bf16.msra.mxu1 (!%p388_p2), %v2160_v10  ;;  %v2150_v14 = vld [vmem:[%s2717_s1 + $0x7c] ss:$12 sps:$4 sm:$0xff] (!%p388_p2)   ;;  %v2162_v16 = vld [vmem:[%s2717_s1 + $0x38] ss:$12 sps:$4 sm:$0xff] (!%p388_p2)   ;;  %v2153_v17 = vld [vmem:[%s2717_s1 + $0x94] ss:$12 sps:$4 sm:$0xff] (!%p388_p2)  }
   0xb   : > { %632 = vmatpush1.bf16.msra.mxu0 (!%p388_p2), %v2140_v5  ;;  %2020 = vmatprep.subr.bf16.mxu1 (!%p388_p2), %v2274_v4  ;;  %v2163_v18 = vld [vmem:[%s2717_s1 + $0x50] ss:$12 sps:$4 sm:$0xff] (!%p388_p2)   ;;  %v2156_v20 = vld [vmem:[%s2717_s1 + $0xac] ss:$12 sps:$4 sm:$0xff] (!%p388_p2)   ;;  %v2164_v21 = vld [vmem:[%s2717_s1 + $0x68] ss:$12 sps:$4 sm:$0xff] (!%p388_p2)  }
   0xc   : > { %633 = vmatprep.subr.bf16.mxu0 (!%p388_p2), %v2141_v6  ;;  %v2155_v19 = vld [vmem:[%s2717_s1 + $0x90] ss:$12 sps:$4 sm:$0xff] (!%p388_p2)   ;;  %v2158_v22 = vld [vmem:[%s2717_s1 + $0xa8] ss:$12 sps:$4 sm:$0xff] (!%p388_p2)   ;;  %v2165_v24 = vld [vmem:[%s2717_s1 + $0x80] ss:$12 sps:$4 sm:$0xff] (!%p388_p2)  }
   0xd   : > { %s2731_s26 = smov (!%p431_p3, %s1861_s26), 1  ;;  %v2166_v25 = vld [vmem:[%s2717_s1 + $0x98] ss:$12 sps:$4 sm:$0xff]   ;;  %v2167_v26 = vld [vmem:[%s2717_s1 + $0xb0] ss:$12 sps:$4 sm:$0xff]   ;;  %vm2275_vm0 = vmmov 0  }
   0xe   : > { %s1953_s17 = sshll.u32 %s2731_s26, 3  ;;  %2021 = vmatpush3.bf16.msra.mxu1 %v2161_v12  ;;  %2034 = vmatprep.mubr.msk.bf16.mxu1 %vm2275_vm0, %v2274_v4  ;;  %v2458_v28 = vshrl.u32 %v480_v27, 7  ;;  %v478_v30 = vld [vmem:[%s2718_s2] sm:$0x7]  ;;  %vm718_vm1 = vcmask 261120   ;;  %vm766_vm2 = vcmask 130048  }
   0xf   : > { %634 = vmatpush1.bf16.msra.mxu0 %v2143_v7  ;;  %2022 = vmatprep.subr.bf16.mxu1 %v2274_v4  ;;  %s435_s22 = scalar_lea.vmem %s2716_s0, %s1953_s17  ;;  %s2276_s21 = smov 96   ;;  %vm1226_vm3 = vcmask 523264   ;;  %vm1229_vm4 = vcmask 785408  }
  0x10   : > { %635 = vmatprep.subr.bf16.mxu0 %v2144_v8  ;;  %v2433_v23 = vld [vmem:[%s435_s22] sm:$0xff]   ;;  %v482_v29 = vsub.s32 0, %v2458_v28  ;;  %v486_v31 = vsub.s32 1, %v2458_v28  ;;  %v490_v47 = vsub.s32 2, %v2458_v28  ;;  %s2277_s22 = smov 32   ;;  %s2278_s23 = smov 64  }
  0x11   : > { %s440_s27 = scalar_lea.vmem %s2729_s13, %s1953_s17 }
  0x12   : > { %2023 = vmatpush3.bf16.msra.mxu1 %v2162_v16  ;;  %v483_v32 = vrot.slane %v478_v30, %v482_v29  ;;  %v487_v34 = vrot.slane %v478_v30, %v486_v31  ;;  %v491_v48 = vrot.slane %v478_v30, %v490_v47 }
  0x13   : > { %636 = vmatpush1.bf16.msra.mxu0 %v2146_v9  ;;  %2024 = vmatprep.subr.bf16.mxu1 %v2274_v4 }
  0x14   : > { %637 = vmatprep.subr.bf16.mxu0 %v2147_v11 }
  0x16   : > { %2025 = vmatpush3.bf16.msra.mxu1 %v2163_v18 }
  0x17   : > { %638 = vmatpush1.bf16.msra.mxu0 %v2149_v13  ;;  %2026 = vmatprep.subr.bf16.mxu1 %v2274_v4 }
  0x18   : > { %639 = vmatprep.subr.bf16.mxu0 %v2150_v14 }
  0x1a   : > { %2027 = vmatpush3.bf16.msra.mxu1 %v2164_v21 }
  0x1b   : > { %640 = vmatpush1.bf16.msra.mxu0 %v2152_v15  ;;  %2028 = vmatprep.subr.bf16.mxu1 %v2274_v4 }
  0x1c   : > { %641 = vmatprep.subr.bf16.mxu0 %v2153_v17 }
  0x1e   : > { %2029 = vmatpush3.bf16.msra.mxu1 %v2165_v24 }
  0x1f   : > { %642 = vmatpush1.bf16.msra.mxu0 %v2155_v19  ;;  %2030 = vmatprep.subr.bf16.mxu1 %v2274_v4 }
  0x20   : > { %643 = vmatprep.subr.bf16.mxu0 %v2156_v20 }
  0x22   : > { %2031 = vmatpush3.bf16.msra.mxu1 %v2166_v25 }
  0x23   : > { %644 = vmatpush1.bf16.msra.mxu0 %v2158_v22  ;;  %2032 = vmatprep.subr.bf16.mxu1 %v2274_v4 }
  0x24   : > { %2062 = vmatprep.subr.bf16.mxu0 %v2274_v4 }
  0x26   : > { %662 = vmatmul.mubr.bf16.vlgmr.msra.gmra.mrb[0].mxu0 %v2433_v23  ;;  %2033 = vmatpush3.bf16.msra.mxu1 %v2167_v26 }
  0x27   : > { %2038 = vmatprep.subr.bf16.mxu1 %v2274_v4  ;;  %2064 = vmatprep.mubr.msk.bf16.mxu0 %vm2275_vm0, %v2274_v4 }
  0x29   : > { %2035 = vmatmul.mubr.bf16.vlgmr.msra.gmra.mrb[0].mxu1 %v2433_v23 }
  0x2a   : > { %2040 = vmatprep.mubr.msk.bf16.mxu1 %vm2275_vm0, %v2274_v4 }
  0xf9   : > { %v663_v33 = vpop.f32.mrb[0].mxu0 }
  0xfa   : > { %v664_v35 = vadd.f32 %v663_v33, %v483_v32  ;;  %v665_v36 = vpop.f32.mrb[1].mxu0 }
  0xfb   : > { %v667_v37 = vpop.f32.mrb[2].mxu0  ;;  %v666_v40 = vadd.f32 %v665_v36, %v487_v34 }
  0xfc   : > { %v668_v38 = vadd.f32 %v667_v37, %v483_v32  ;;  %v669_v39 = vpop.f32.mrb[3].mxu0  ;;  %v713_v42 = vmul.f32 0.17677669, %v664_v35  ;;  %v706_v49 = vpop.f32.mrb[0].mxu1 }
  0xfd   : > { %v670_v41 = vadd.f32 %v669_v39, %v487_v34  ;;  %v707_v50 = vadd.f32 %v706_v49, %v491_v48  ;;  %v2036_v51 = vpop.f32.mrb[1].mxu1 }
  0xfe   : > { %v714_v43 = vmul.f32 0.17677669, %v668_v38  ;;  %v709_v52 = vpop.f32.mrb[2].mxu1 }
  0xff   : > { %v716_v44 = vpack.c.bf16 %v670_v41, %v666_v40  ;;  %v710_v53 = vadd.f32 %v709_v52, %v491_v48  ;;  %v2037_v54 = vpop.f32.mrb[3].mxu1 }
 0x100   : > { %v715_v45 = vpack.c.bf16 %v714_v43, %v713_v42 }
 0x101   : > { %v723_v46 = vsel %vm718_vm1, %v716_v44, 0  ;;  %v2475_v55 = vpack.c.bf16 %v710_v53, %v707_v50 }
 0x102   : > { %2039 = vmatpush3.bf16.xpose.msra.mxu1 %v723_v46 }
 0x103   : > { %2044 = vmatprep.subr.bf16.mxu1 %v2274_v4 }
 0x109   : > { %2041 = vmatmul.mubr.msk.bf16.vlgmr.msra.gmra.mrb[4].mxu1 %vm718_vm1, %v715_v45 }
 0x10a   : > { %2046 = vmatprep.mubr.msk.bf16.mxu1 %vm2275_vm0, %v2274_v4  ;;  %2045 = vmatpush3.bf16.msra.mxu1 %v2475_v55 }
 0x10b   : > { %2050 = vmatprep.subr.bf16.mxu1 %v2274_v4 }
 0x1dc   : > { %v759_v56 = vpop.f32.mrb[4].mxu1 }
 0x1dd   : > { %v2042_v57 = vpop.f32.mrb[5].mxu1  ;;  %v767_v58 = vsel %vm766_vm2, %v759_v56, -inf }
 0x1de   : > { %768 = vmax.xlane.f32.xlu0 %v767_v58  ;;  %v762_v59 = vpop.f32.mrb[6].mxu1 }
 0x1df   : > { %v2043_v60 = vpop.f32.mrb[7].mxu1  ;;  %v770_v61 = vsel %vm766_vm2, %v762_v59, -inf }
 0x1e2   : > { %771 = vmax.xlane.f32.xlu0 %v770_v61 }
 0x1f8   : > { %838 = vrot.lane.b32.xlu0 %v716_v44, %s2276_s21 }
 0x1fc   : > { %1081 = vrot.lane.b32.xlu0 %v716_v44, %s2277_s22 }
 0x26b   : > { %v769_v62 = vpop.xlane.xlu0 %768 }
 0x26c   : > { %v773_v63 = vsub.f32 %v759_v56, %v769_v62 }
 0x26e   : > { %v775_v0 = vmul.f32 1.442695, %v773_v63 }
 0x26f   : > { %v772_v1 = vpop.xlane.xlu0 %771 }
 0x270   : > { %2217 = vpow2.f32 %v775_v0  ;;  %v774_v3 = vsub.f32 %v762_v59, %v772_v1 }
 0x272   : > { %v777_v5 = vmul.f32 1.442695, %v774_v3 }
 0x273   : > { %v839_v13 = vpop.permute.xlu0 %838 }
 0x274   : > { %2219 = vpow2.f32 %v777_v5  ;;  %v844_v22 = vsel %vm718_vm1, %v839_v13, 0 }
 0x277   : > { %v1082_v20 = vpop.permute.xlu0 %1081 }
 0x278   : > { %v1087_v25 = vsel %vm718_vm1, %v1082_v20, 0 }
 0x27a   : > { %v2218_v6 = vpop.eup %2217 }
 0x27b   : > { %v779_v7 = vsel %vm766_vm2, %v2218_v6, 0.0 }
 0x27c   : > { %780 = vadd.xlane.f32.xlu1 %v779_v7 }
 0x27e   : > { %v2220_v8 = vpop.eup %2219 }
 0x27f   : > { %v782_v9 = vsel %vm766_vm2, %v2220_v8, 0.0 }
 0x280   : > { %783 = vadd.xlane.f32.xlu1 %v782_v9 }
 0x291   : > { %835 = vrot.lane.b32.xlu1 %v715_v45, %s2276_s21 }
 0x295   : > { %960 = vrot.lane.b32.xlu1 %v716_v44, %s2278_s23 }
 0x299   : > { %958 = vrot.lane.b32.xlu1 %v715_v45, %s2278_s23 }
 0x29d   : > { %1079 = vrot.lane.b32.xlu1 %v715_v45, %s2277_s22 }
 0x309   : > { %v781_v10 = vpop.xlane.xlu1 %780 }
 0x30a   : > { %2221 = vrcp.f32 %v781_v10 }
 0x30d   : > { %v784_v11 = vpop.xlane.xlu1 %783 }
 0x30e   : > { %2223 = vrcp.f32 %v784_v11 }
 0x311   : > { %v836_v12 = vpop.permute.xlu1 %835 }
 0x314   : > { %v2222_v15 = vpop.eup %2221 }
 0x315   : > { %v961_v14 = vpop.permute.xlu1 %960  ;;  %v787_v18 = vmul.f32 %v2222_v15, %v2218_v6 }
 0x316   : > { %v966_v16 = vsel %vm718_vm1, %v961_v14, 0 }
 0x317   : > { %2063 = vmatpush3.bf16.xpose.msra.mxu0 %v966_v16 }
 0x318   : > { %v2224_v17 = vpop.eup %2223  ;;  %2074 = vmatprep.subr.bf16.mxu0 %v2274_v4 }
 0x319   : > { %v788_v19 = vmul.f32 %v2224_v17, %v2220_v8  ;;  %v959_v24 = vpop.permute.xlu1 %958 }
 0x31b   : > { %v789_v21 = vpack.c.bf16 %v788_v19, %v787_v18 }
 0x31d   : > { %2047 = vmatmul.mubr.msk.bf16.vlgmr.msra.gmra.mrb[8].mxu1 %vm766_vm2, %v789_v21  ;;  %v1080_v26 = vpop.permute.xlu1 %1079 }
 0x31e   : > { %2051 = vmatpush3.bf16.xpose.msra.mxu1 %v844_v22  ;;  %2065 = vmatmul.mubr.msk.bf16.vlgmr.msra.gmra.mrb[4].mxu0 %vm718_vm1, %v959_v24 }
 0x31f   : > { %2075 = vmatpush3.bf16.xpose.msra.mxu0 %v1087_v25  ;;  %2052 = vmatprep.mubr.msk.bf16.mxu1 %vm2275_vm0, %v2274_v4 }
 0x320   : > { %2076 = vmatprep.mubr.msk.bf16.mxu0 %vm2275_vm0, %v2274_v4  ;;  %2056 = vmatprep.subr.bf16.mxu1 %v2274_v4 }
 0x321   : > { %2086 = vmatprep.subr.bf16.mxu0 %v2274_v4 }
 0x325   : > { %2053 = vmatmul.mubr.msk.bf16.vlgmr.msra.gmra.mrb[12].mxu1 %vm718_vm1, %v836_v12 }
 0x326   : > { %2077 = vmatmul.mubr.msk.bf16.vlgmr.msra.gmra.mrb[8].mxu0 %vm718_vm1, %v1080_v26  ;;  %2058 = vmatprep.mubr.msk.bf16.mxu1 %vm2275_vm0, %v2274_v4 }
 0x327   : > { %2102 = vmatprep.mubr.msk.bf16.mxu0 %vm2275_vm0, %v2274_v4 }
 0x3f0   : > { %v2507_v27 = vpop.f32.mrb[8].mxu1 }
 0x3f1   : > { %v2048_v30 = vpop.f32.mrb[9].mxu1  ;;  %v1002_v32 = vpop.f32.mrb[4].mxu0 }
 0x3f2   : > { %v2509_v33 = vpop.f32.mrb[10].mxu1  ;;  %v2066_v34 = vpop.f32.mrb[5].mxu0  ;;  %v1009_v48 = vsel %vm766_vm2, %v1002_v32, -inf }
 0x3f3   : > { %v2049_v35 = vpop.f32.mrb[11].mxu1  ;;  %v1005_v36 = vpop.f32.mrb[6].mxu0 }
 0x3f4   : > { %v2067_v37 = vpop.f32.mrb[7].mxu0  ;;  %v1012_v50 = vsel %vm766_vm2, %v1005_v36, -inf }
 0x3f8   : > { %v880_v38 = vpop.f32.mrb[12].mxu1 }
 0x3f9   : > { %v2054_v39 = vpop.f32.mrb[13].mxu1  ;;  %v1123_v40 = vpop.f32.mrb[8].mxu0  ;;  %v887_v41 = vsel %vm766_vm2, %v880_v38, -inf }
 0x3fa   : > { %v2078_v42 = vpop.f32.mrb[9].mxu0  ;;  %888 = vmax.xlane.f32.xlu0 %v887_v41  ;;  %v883_v43 = vpop.f32.mrb[14].mxu1  ;;  %v1130_v51 = vsel %vm766_vm2, %v1123_v40, -inf }
 0x3fb   : > { %v2055_v44 = vpop.f32.mrb[15].mxu1  ;;  %v1126_v45 = vpop.f32.mrb[10].mxu0  ;;  %v890_v46 = vsel %vm766_vm2, %v883_v43, -inf }
 0x3fc   : > { %v2079_v47 = vpop.f32.mrb[11].mxu0  ;;  %891 = vmax.xlane.f32.xlu1 %v890_v46  ;;  %v1133_v49 = vsel %vm766_vm2, %v1126_v45, -inf }
 0x3fe   : > { %1010 = vmax.xlane.f32.xlu0 %v1009_v48 }
 0x400   : > { %1134 = vmax.xlane.f32.xlu1 %v1133_v49 }
 0x402   : > { %1013 = vmax.xlane.f32.xlu0 %v1012_v50  ;;  %v2168_v50 = vld [vmem:[%s2719_s3] sm:$0xff]  }
 0x403   : > { %2087 = vmatpush3.bf16.msra.mxu0 %v2168_v50 }
 0x404   : > { %2088 = vmatprep.subr.bf16.mxu0 %v2274_v4 }
 0x406   : > { %1131 = vmax.xlane.f32.xlu0 %v1130_v51  ;;  %v2169_v51 = vld [vmem:[%s2719_s3 + $0x8] sm:$0xff]  }
 0x407   : > { %2089 = vmatpush3.bf16.msra.mxu0 %v2169_v51  ;;  %v2184_v51 = vld [vmem:[%s2723_s7 + $0x24] ss:$8 sps:$4 sm:$0xff]  }
 0x408   : > { %2090 = vmatprep.subr.bf16.mxu0 %v2274_v4 }
 0x487   : > { %v889_v52 = vpop.xlane.xlu0 %888 }
 0x488   : > { %v893_v62 = vsub.f32 %v880_v38, %v889_v52  ;;  %v2170_v52 = vld [vmem:[%s2719_s3 + $0x10] sm:$0xff]  }
 0x489   : > { %v892_v53 = vpop.xlane.xlu1 %891  ;;  %2091 = vmatpush3.bf16.msra.mxu0 %v2170_v52  ;;  %v2182_v52 = vld [vmem:[%s2723_s7 + $0x20] ss:$8 sps:$4 sm:$0xff]  }
 0x48a   : > { %v894_v63 = vsub.f32 %v883_v43, %v892_v53  ;;  %v895_v6 = vmul.f32 1.442695, %v893_v62  ;;  %2092 = vmatprep.subr.bf16.mxu0 %v2274_v4  ;;  %v2172_v53 = vld [vmem:[%s2719_s3 + $0x20] sm:$0xff]  }
 0x48b   : > { %v1011_v54 = vpop.xlane.xlu0 %1010 }
 0x48c   : > { %v1015_v56 = vsub.f32 %v1002_v32, %v1011_v54  ;;  %v897_v7 = vmul.f32 1.442695, %v894_v63 }
 0x48d   : > { %v1135_v57 = vpop.xlane.xlu1 %1134 }
 0x48e   : > { %v1017_v58 = vmul.f32 1.442695, %v1015_v56  ;;  %v1137_v59 = vsub.f32 %v1126_v45, %v1135_v57  ;;  %v2173_v57 = vld [vmem:[%s2719_s3 + $0x28] sm:$0xff]  }
 0x48f   : > { %v1014_v60 = vpop.xlane.xlu0 %1013 }
 0x490   : > { %2225 = vpow2.f32 %v1017_v58  ;;  %v1016_v61 = vsub.f32 %v1005_v36, %v1014_v60  ;;  %v1140_v0 = vmul.f32 1.442695, %v1137_v59 }
 0x492   : > { %v1019_v1 = vmul.f32 1.442695, %v1016_v61  ;;  %v2174_v61 = vld [vmem:[%s2719_s3 + $0x30] sm:$0xff]  }
 0x493   : > { %v1132_v3 = vpop.xlane.xlu0 %1131 }
 0x494   : > { %2227 = vpow2.f32 %v1019_v1  ;;  %v1136_v5 = vsub.f32 %v1123_v40, %v1132_v3 }
 0x495   : > { %2229 = vpow2.f32 %v1140_v0  ;;  %v2175_v0 = vld [vmem:[%s2719_s3 + $0x38] sm:$0xff]  }
 0x496   : > { %v1138_v8 = vmul.f32 1.442695, %v1136_v5 }
 0x498   : > { %2231 = vpow2.f32 %v1138_v8 }
 0x499   : > { %2233 = vpow2.f32 %v895_v6 }
 0x49a   : > { %v2226_v9 = vpop.eup %2225  ;;  %2235 = vpow2.f32 %v897_v7 }
 0x49b   : > { %v1021_v10 = vsel %vm766_vm2, %v2226_v9, 0.0 }
 0x49c   : > { %1022 = vadd.xlane.f32.xlu0 %v1021_v10 }
 0x49e   : > { %v2228_v11 = vpop.eup %2227 }
 0x49f   : > { %v1024_v12 = vsel %vm766_vm2, %v2228_v11, 0.0  ;;  %v2230_v13 = vpop.eup %2229 }
 0x4a0   : > { %1025 = vadd.xlane.f32.xlu1 %v1024_v12  ;;  %v1145_v17 = vsel %vm766_vm2, %v2230_v13, 0.0 }
 0x4a2   : > { %v2232_v14 = vpop.eup %2231 }
 0x4a3   : > { %v2234_v15 = vpop.eup %2233  ;;  %v1142_v16 = vsel %vm766_vm2, %v2232_v14, 0.0 }
 0x4a4   : > { %v2236_v18 = vpop.eup %2235  ;;  %1143 = vadd.xlane.f32.xlu0 %v1142_v16  ;;  %1146 = vadd.xlane.f32.xlu1 %v1145_v17  ;;  %v899_v19 = vsel %vm766_vm2, %v2234_v15, 0.0 }
 0x4a5   : > { %v902_v20 = vsel %vm766_vm2, %v2236_v18, 0.0 }
 0x4a8   : > { %900 = vadd.xlane.f32.xlu0 %v899_v19  ;;  %903 = vadd.xlane.f32.xlu1 %v902_v20 }
 0x4b9   : > { %1032 = vrot.lane.b32.xlu1 %v2475_v55, %s2278_s23 }
 0x4bd   : > { %1153 = vrot.lane.b32.xlu1 %v2475_v55, %s2277_s22 }
 0x4be   : > { %911 = vrot.lane.b32.xlu0 %v2475_v55, %s2276_s21 }
 0x529   : > { %v1023_v21 = vpop.xlane.xlu0 %1022 }
 0x52d   : > { %v1026_v22 = vpop.xlane.xlu1 %1025 }
 0x531   : > { %v1144_v24 = vpop.xlane.xlu0 %1143  ;;  %v1147_v25 = vpop.xlane.xlu1 %1146 }
 0x535   : > { %v901_v26 = vpop.xlane.xlu0 %900  ;;  %v904_v30 = vpop.xlane.xlu1 %903 }
 0x536   : > { %2237 = vrcp.f32 %v901_v26 }
 0x537   : > { %2239 = vrcp.f32 %v904_v30  ;;  %v1903_v30 = vld [vmem:[%s2720_s4] ss:$0 sm:$0xff] }
 0x538   : > { %2241 = vrcp.f32 %v1026_v22 }
 0x539   : > { %v912_v32 = vpop.permute.xlu0 %911  ;;  %2243 = vrcp.f32 %v1023_v21  ;;  %v1033_v39 = vpop.permute.xlu1 %1032 }
 0x53a   : > { %2057 = vmatpush3.bf16.msra.mxu1 %v912_v32  ;;  %2245 = vrcp.f32 %v1144_v24  ;;  %v444_v32 = vunpack.c.l.bf16 %v2433_v23 }
 0x53b   : > { %2068 = vmatprep.subr.bf16.mxu1 %v2274_v4  ;;  %2247 = vrcp.f32 %v1147_v25 }
 0x53d   : > { %v1154_v46 = vpop.permute.xlu1 %1153 }
 0x540   : > { %v2238_v34 = vpop.eup %2237 }
 0x541   : > { %v2240_v35 = vpop.eup %2239  ;;  %v907_v36 = vmul.f32 %v2238_v34, %v2234_v15 }
 0x542   : > { %v908_v37 = vmul.f32 %v2240_v35, %v2236_v18  ;;  %v2242_v38 = vpop.eup %2241 }
 0x543   : > { %v2244_v40 = vpop.eup %2243  ;;  %v1030_v41 = vmul.f32 %v2242_v38, %v2228_v11 }
 0x544   : > { %v909_v55 = vpack.c.bf16 %v908_v37, %v907_v36  ;;  %v1029_v42 = vmul.f32 %v2244_v40, %v2226_v9  ;;  %v2246_v43 = vpop.eup %2245  ;;  %v445_v36 = vunpack.c.h.bf16 %v2433_v23  ;;  %v2176_v40 = vld [vmem:[%s2723_s7] ss:$8 sps:$4 sm:$0xff]   ;;  %v2179_v23 = vld [vmem:[%s2723_s7 + $0x10] ss:$8 sps:$4 sm:$0xff]  }
 0x545   : > { %v2248_v45 = vpop.eup %2247  ;;  %v1150_v47 = vmul.f32 %v2246_v43, %v2232_v14 }
 0x546   : > { %2059 = vmatmul.mubr.msk.bf16.vlgmr.msra.gmra.mrb[16].mxu1 %vm766_vm2, %v909_v55  ;;  %v1031_v44 = vpack.c.bf16 %v1030_v41, %v1029_v42  ;;  %v1151_v48 = vmul.f32 %v2248_v45, %v2230_v13  ;;  %v2178_v41 = vld [vmem:[%s2723_s7 + $0x4] ss:$8 sps:$4 sm:$0xff]   ;;  %v2181_v42 = vld [vmem:[%s2723_s7 + $0x14] ss:$8 sps:$4 sm:$0xff]  }
 0x547   : > { %2069 = vmatpush3.bf16.msra.mxu1 %v1033_v39  ;;  %2070 = vmatprep.mubr.msk.bf16.mxu1 %vm2275_vm0, %v2274_v4 }
 0x548   : > { %2080 = vmatprep.subr.bf16.mxu1 %v2274_v4  ;;  %v1152_v49 = vpack.c.bf16 %v1151_v48, %v1150_v47 }
 0x54e   : > { %2071 = vmatmul.mubr.msk.bf16.vlgmr.msra.gmra.mrb[20].mxu1 %vm766_vm2, %v1031_v44 }
 0x54f   : > { %2081 = vmatpush3.bf16.msra.mxu1 %v1154_v46  ;;  %2082 = vmatprep.mubr.msk.bf16.mxu1 %vm2275_vm0, %v2274_v4 }
 0x550   : > { %1497 = vmatprep.subr.bf16.mxu1 %v2178_v41 }
 0x556   : > { %2083 = vmatmul.mubr.msk.bf16.vlgmr.msra.gmra.mrb[24].mxu1 %vm766_vm2, %v1152_v49 }
 0x557   : > { %1529 = vmatprep.mubr.bf16.mxu1 %v2273_v2  ;;  %v2171_v2 = vld [vmem:[%s2719_s3 + $0x18] sm:$0xff]   ;;  %1498 = vmatpush1.bf16.msra.mxu1 %v2176_v40 }
 0x558   : > { %2093 = vmatpush3.bf16.msra.mxu0 %v2171_v2  ;;  %1499 = vmatprep.subr.bf16.mxu1 %v2181_v42  ;;  %v2187_v2 = vld [vmem:[%s2723_s7 + $0x34] ss:$8 sps:$4 sm:$0xff]  }
 0x559   : > { %2094 = vmatprep.subr.bf16.mxu0 %v2274_v4 }
 0x55b   : > { %1500 = vmatpush1.bf16.msra.mxu1 %v2179_v23 }
 0x55c   : > { %2095 = vmatpush3.bf16.msra.mxu0 %v2172_v53  ;;  %1501 = vmatprep.subr.bf16.mxu1 %v2184_v51  ;;  %v2185_v53 = vld [vmem:[%s2723_s7 + $0x30] ss:$8 sps:$4 sm:$0xff]  }
 0x55d   : > { %2096 = vmatprep.subr.bf16.mxu0 %v2274_v4 }
 0x55f   : > { %1502 = vmatpush1.bf16.msra.mxu1 %v2182_v52 }
 0x560   : > { %2097 = vmatpush3.bf16.msra.mxu0 %v2173_v57  ;;  %1503 = vmatprep.subr.bf16.mxu1 %v2187_v2  ;;  %v2193_v57 = vld [vmem:[%s2723_s7 + $0x54] ss:$8 sps:$4 sm:$0xff]  }
 0x561   : > { %2098 = vmatprep.subr.bf16.mxu0 %v2274_v4 }
 0x563   : > { %1504 = vmatpush1.bf16.msra.mxu1 %v2185_v53 }
 0x564   : > { %2099 = vmatpush3.bf16.msra.mxu0 %v2174_v61  ;;  %v2199_v61 = vld [vmem:[%s2723_s7 + $0x74] ss:$8 sps:$4 sm:$0xff]  }
 0x565   : > { %2100 = vmatprep.subr.bf16.mxu0 %v2274_v4 }
 0x568   : > { %2101 = vmatpush3.bf16.msra.mxu0 %v2175_v0 }
 0x619   : > { %v951_v54 = vpop.f32.mrb[16].mxu1 }
 0x61a   : > { %v2060_v56 = vpop.f32.mrb[17].mxu1 }
 0x61b   : > { %v954_v58 = vpop.f32.mrb[18].mxu1  ;;  %v2188_v56 = vld [vmem:[%s2723_s7 + $0x40] ss:$8 sps:$4 sm:$0xff]  }
 0x61c   : > { %v2120_v59 = vpack.i.bf16 %v954_v58, %v951_v54  ;;  %v2061_v60 = vpop.f32.mrb[19].mxu1  ;;  %v2190_v54 = vld [vmem:[%s2723_s7 + $0x44] ss:$8 sps:$4 sm:$0xff]   ;;  %v2191_v58 = vld [vmem:[%s2723_s7 + $0x50] ss:$8 sps:$4 sm:$0xff]  }
 0x61d   : > { %1505 = vmatprep.subr.bf16.mxu1 %v2190_v54  ;;  %v2194_v60 = vld [vmem:[%s2723_s7 + $0x60] ss:$8 sps:$4 sm:$0xff]  }
 0x61e   : > { %2121 = vrot.lane.b32.xlu1 %v2120_v59, %s2277_s22  ;;  %1506 = vmatpush1.bf16.msra.mxu1 %v2188_v56  ;;  %v2196_v59 = vld [vmem:[%s2723_s7 + $0x64] ss:$8 sps:$4 sm:$0xff]  }
 0x61f   : > { %1507 = vmatprep.subr.bf16.mxu1 %v2193_v57 }
 0x621   : > { %v1072_v62 = vpop.f32.mrb[20].mxu1 }
 0x622   : > { %v2072_v63 = vpop.f32.mrb[21].mxu1  ;;  %1508 = vmatpush1.bf16.msra.mxu1 %v2191_v58 }
 0x623   : > { %v1075_v1 = vpop.f32.mrb[22].mxu1  ;;  %1509 = vmatprep.subr.bf16.mxu1 %v2196_v59 }
 0x624   : > { %v2125_v3 = vpack.i.bf16 %v1075_v1, %v1072_v62  ;;  %v2073_v5 = vpop.f32.mrb[23].mxu1  ;;  %v2197_v62 = vld [vmem:[%s2723_s7 + $0x70] ss:$8 sps:$4 sm:$0xff]  }
 0x626   : > { %2126 = vrot.lane.b32.xlu0 %v2125_v3, %s2278_s23  ;;  %1510 = vmatpush1.bf16.msra.mxu1 %v2194_v60 }
 0x627   : > { %1511 = vmatprep.subr.bf16.mxu1 %v2199_v61 }
 0x629   : > { %v1193_v6 = vpop.f32.mrb[24].mxu1 }
 0x62a   : > { %v2084_v7 = vpop.f32.mrb[25].mxu1  ;;  %1512 = vmatpush1.bf16.msra.mxu1 %v2197_v62 }
 0x62b   : > { %v1196_v8 = vpop.f32.mrb[26].mxu1 }
 0x62c   : > { %v2130_v9 = vpack.i.bf16 %v1196_v8, %v1193_v6  ;;  %v2085_v10 = vpop.f32.mrb[27].mxu1 }
 0x62e   : > { %2131 = vrot.lane.b32.xlu1 %v2130_v9, %s2276_s21  ;;  %v1912_v9 = vld [vmem:[%s2721_s5] ss:$0 sm:$0xff] }
 0x690   : > { %v2122_v11 = vpop.permute.xlu1 %2121 }
 0x691   : > { %v2124_v12 = vunpack.i.h.bf16 %v2122_v11  ;;  %v2123_v13 = vunpack.i.l.bf16 %v2122_v11 }
 0x693   : > { %v1225_v17 = vsel %vm718_vm1, %v2509_v33, %v2124_v12  ;;  %v1224_v18 = vsel %vm718_vm1, %v2507_v27, %v2123_v13  ;;  %v1913_v12 = vld [vmem:[%s2722_s6] ss:$0 sm:$0xff] }
 0x698   : > { %v2127_v4 = vpop.permute.xlu0 %2126 }
 0x699   : > { %v2129_v14 = vunpack.i.h.bf16 %v2127_v4  ;;  %v2128_v15 = vunpack.i.l.bf16 %v2127_v4 }
 0x69b   : > { %v1228_v21 = vsel %vm1226_vm3, %v1225_v17, %v2129_v14  ;;  %v1227_v22 = vsel %vm1226_vm3, %v1224_v18, %v2128_v15  ;;  %v2200_v17 = vld [vmem:[%s2725_s9 + $0x40] sm:$0xff]  }
 0x69c   : > { %v2201_v18 = vld [vmem:[%s2725_s9] sm:$0xff]   ;;  %1996 = vmatprep.subr.bf16.mxu0 %v2200_v17 }
 0x6a0   : > { %v2132_v16 = vpop.permute.xlu1 %2131 }
 0x6a1   : > { %v2134_v19 = vunpack.i.h.bf16 %v2132_v16  ;;  %v2133_v20 = vunpack.i.l.bf16 %v2132_v16 }
 0x6a3   : > { %v1231_v24 = vsel %vm1229_vm4, %v1228_v21, %v2134_v19  ;;  %v1230_v25 = vsel %vm1229_vm4, %v1227_v22, %v2133_v20  ;;  %v2202_v19 = vld [vmem:[%s2725_s9 + $0x48] sm:$0xff]   ;;  %v2204_v21 = vld [vmem:[%s2725_s9 + $0x50] sm:$0xff]  }
 0x6a4   : > { %v1232_v26 = vpack.c.bf16 %v1231_v24, %v1230_v25  ;;  %v2203_v20 = vld [vmem:[%s2725_s9 + $0x8] sm:$0xff]   ;;  %v2205_v22 = vld [vmem:[%s2725_s9 + $0x10] sm:$0xff]   ;;  %v2206_v24 = vld [vmem:[%s2725_s9 + $0x58] sm:$0xff]  }
 0x6a5   : > { %v2207_v25 = vld [vmem:[%s2725_s9 + $0x18] sm:$0xff]  }
 0x6a6   : > { %2103 = vmatmul.mubr.bf16.vlgmr.msra.gmra.mrb[12].mxu0 %v1232_v26  ;;  %v2208_v26 = vld [vmem:[%s2725_s9 + $0x60] sm:$0xff]  }
 0x6a7   : > { %1997 = vmatpush3.bf16.msra.mxu0 %v2201_v18 }
 0x6a8   : > { %1998 = vmatprep.subr.bf16.mxu0 %v2202_v19 }
 0x6ab   : > { %1999 = vmatpush3.bf16.msra.mxu0 %v2203_v20 }
 0x6ac   : > { %2000 = vmatprep.subr.bf16.mxu0 %v2204_v21  ;;  %v1930_v21 = vld [vmem:[%s2726_s10] ss:$0 sm:$0xff] }
 0x6af   : > { %2001 = vmatpush3.bf16.msra.mxu0 %v2205_v22 }
 0x6b0   : > { %2002 = vmatprep.subr.bf16.mxu0 %v2206_v24 }
 0x6b3   : > { %2003 = vmatpush3.bf16.msra.mxu0 %v2207_v25 }
 0x6b4   : > { %2004 = vmatprep.subr.bf16.mxu0 %v2208_v26 }
 0x779   : > { %v1338_v34 = vpop.f32.mrb[12].mxu0 }
 0x77a   : > { %v1339_v35 = vadd.f32 %v1903_v30, %v1338_v34  ;;  %v2104_v33 = vpop.f32.mrb[13].mxu0  ;;  %v2211_v34 = vld [vmem:[%s2725_s9 + $0x28] sm:$0xff]  }
 0x77b   : > { %v1341_v27 = vpop.f32.mrb[14].mxu0  ;;  %v2213_v33 = vld [vmem:[%s2725_s9 + $0x30] sm:$0xff]  }
 0x77c   : > { %v1342_v37 = vadd.f32 %v1903_v30, %v1341_v27  ;;  %v2105_v55 = vpop.f32.mrb[15].mxu0  ;;  %v1345_v38 = vadd.f32 %v1339_v35, %v444_v32  ;;  %v2209_v30 = vld [vmem:[%s2725_s9 + $0x20] sm:$0xff]   ;;  %v2210_v32 = vld [vmem:[%s2725_s9 + $0x68] sm:$0xff]   ;;  %v2212_v35 = vld [vmem:[%s2725_s9 + $0x70] sm:$0xff]  }
 0x77d   : > { %2005 = vmatpush3.bf16.msra.mxu0 %v2209_v30  ;;  %v2215_v27 = vld [vmem:[%s2725_s9 + $0x38] sm:$0xff]  }
 0x77e   : > { %1349 = vadd.xlane.f32.xlu0 %v1345_v38  ;;  %v1346_v39 = vadd.f32 %v1342_v37, %v445_v36  ;;  %2006 = vmatprep.subr.bf16.mxu0 %v2210_v32  ;;  %v2214_v36 = vld [vmem:[%s2725_s9 + $0x78] sm:$0xff]   ;;  %v1405_v37 = vld [vmem:[%s2724_s8] sm:$0x3] }
 0x77f   : > { %v1410_v55 = vrot.slane %v1405_v37, %v482_v29 }
 0x780   : > { %1351 = vadd.xlane.f32.xlu1 %v1346_v39 }
 0x781   : > { %2007 = vmatpush3.bf16.msra.mxu0 %v2211_v34 }
 0x782   : > { %2008 = vmatprep.subr.bf16.mxu0 %v2212_v35 }
 0x785   : > { %2009 = vmatpush3.bf16.msra.mxu0 %v2213_v33 }
 0x786   : > { %2010 = vmatprep.subr.bf16.mxu0 %v2214_v36 }
 0x789   : > { %2011 = vmatpush3.bf16.msra.mxu0 %v2215_v27 }
 0x80b   : > { %v1350_v43 = vpop.xlane.xlu0 %1349 }
 0x80c   : > { %v1354_v44 = vmul.f32 0.0078125, %v1350_v43 }
 0x80d   : > { %v1352_v45 = vpop.xlane.xlu1 %1351 }
 0x80e   : > { %v1356_v46 = vsub.f32 %v1345_v38, %v1354_v44  ;;  %v1355_v47 = vmul.f32 0.0078125, %v1352_v45  ;;  %v1414_v38 = vrot.slane %v1405_v37, %v486_v31 }
 0x810   : > { %v1357_v48 = vsub.f32 %v1346_v39, %v1355_v47  ;;  %v1358_v49 = vmul.f32 %v1356_v46, %v1356_v46 }
 0x812   : > { %1360 = vadd.xlane.f32.xlu0 %v1358_v49  ;;  %v1359_v50 = vmul.f32 %v1357_v48, %v1357_v48 }
 0x816   : > { %1362 = vadd.xlane.f32.xlu0 %v1359_v50 }
 0x89f   : > { %v1361_v63 = vpop.xlane.xlu0 %1360 }
 0x8a0   : > { %v1364_v0 = vmul.f32 0.0078125, %v1361_v63 }
 0x8a2   : > { %v1366_v1 = vadd.f32 1e-05, %v1364_v0 }
 0x8a3   : > { %v1363_v3 = vpop.xlane.xlu0 %1362 }
 0x8a4   : > { %2249 = vrsqrt.f32 %v1366_v1  ;;  %v1365_v5 = vmul.f32 0.0078125, %v1363_v3 }
 0x8a6   : > { %v1367_v6 = vadd.f32 1e-05, %v1365_v5 }
 0x8a8   : > { %2251 = vrsqrt.f32 %v1367_v6 }
 0x8ae   : > { %v2250_v7 = vpop.eup %2249 }
 0x8af   : > { %v1370_v8 = vmul.f32 %v2250_v7, %v1356_v46 }
 0x8b1   : > { %v1378_v4 = vmul.f32 %v1912_v9, %v1370_v8 }
 0x8b2   : > { %v2252_v10 = vpop.eup %2251 }
 0x8b3   : > { %v1371_v11 = vmul.f32 %v2252_v10, %v1357_v48  ;;  %v2636_v14 = vadd.f32 %v1913_v12, %v1378_v4 }
 0x8b5   : > { %v1379_v13 = vmul.f32 %v1912_v9, %v1371_v11 }
 0x8b7   : > { %v2638_v15 = vadd.f32 %v1913_v12, %v1379_v13 }
 0x8b9   : > { %v1388_v16 = vpack.c.bf16 %v2638_v15, %v2636_v14 }
 0x8bb   : > { %1530 = vmatmul.mubr.bf16.vlgmr.msra.gmra.mrb[28].mxu1 %v1388_v16 }
 0x98e   : > { %v1531_v39 = vpop.f32.mrb[28].mxu1 }
 0x98f   : > { %v1532_v40 = vadd.f32 %v1531_v39, %v1410_v55  ;;  %v1533_v41 = vpop.f32.mrb[29].mxu1 }
 0x990   : > { %v1534_v42 = vadd.f32 %v1533_v41, %v1414_v38  ;;  %v1535_v23 = vpop.f32.mrb[30].mxu1 }
 0x991   : > { %v1540_v43 = vmul.f32 %v1532_v40, %v1532_v40  ;;  %v1536_v44 = vadd.f32 %v1535_v23, %v1410_v55  ;;  %v1537_v45 = vpop.f32.mrb[31].mxu1 }
 0x992   : > { %v1541_v46 = vmul.f32 %v1534_v42, %v1534_v42  ;;  %v1538_v47 = vadd.f32 %v1537_v45, %v1414_v38 }
 0x993   : > { %v1544_v48 = vmul.f32 %v1540_v43, %v1532_v40  ;;  %v1542_v49 = vmul.f32 %v1536_v44, %v1536_v44 }
 0x994   : > { %v1545_v50 = vmul.f32 %v1541_v46, %v1534_v42  ;;  %v1543_v51 = vmul.f32 %v1538_v47, %v1538_v47  ;;  %v1947_v46 = vld [vmem:[%s2727_s11] ss:$0 sm:$0xff] }
 0x995   : > { %v1548_v52 = vmul.f32 0.044715, %v1544_v48  ;;  %v1546_v2 = vmul.f32 %v1542_v49, %v1536_v44 }
 0x996   : > { %v1549_v29 = vmul.f32 0.044715, %v1545_v50  ;;  %v1547_v53 = vmul.f32 %v1543_v51, %v1538_v47  ;;  %v1948_v51 = vld [vmem:[%s2728_s12] ss:$0 sm:$0xff] }
 0x997   : > { %v1552_v28 = vadd.f32 %v1548_v52, %v1532_v40  ;;  %v1550_v31 = vmul.f32 0.044715, %v1546_v2 }
 0x998   : > { %v1553_v54 = vadd.f32 %v1549_v29, %v1534_v42  ;;  %v1551_v56 = vmul.f32 0.044715, %v1547_v53 }
 0x999   : > { %v1556_v57 = vmul.f32 0.7978846, %v1552_v28  ;;  %v1554_v58 = vadd.f32 %v1550_v31, %v1536_v44 }
 0x99a   : > { %v1557_v59 = vmul.f32 0.7978846, %v1553_v54  ;;  %v1555_v60 = vadd.f32 %v1551_v56, %v1538_v47 }
 0x99b   : > { %2253 = vtanh.f32 %v1556_v57  ;;  %v1558_v61 = vmul.f32 0.7978846, %v1554_v58 }
 0x99c   : > { %2255 = vtanh.f32 %v1557_v59  ;;  %v1559_v62 = vmul.f32 0.7978846, %v1555_v60 }
 0x99d   : > { %2257 = vtanh.f32 %v1558_v61 }
 0x99e   : > { %2259 = vtanh.f32 %v1559_v62 }
 0x9a5   : > { %v2254_v63 = vpop.eup %2253 }
 0x9a6   : > { %v2256_v0 = vpop.eup %2255  ;;  %v1564_v1 = vadd.f32 1.0, %v2254_v63 }
 0x9a7   : > { %v2258_v3 = vpop.eup %2257  ;;  %v1565_v5 = vadd.f32 1.0, %v2256_v0 }
 0x9a8   : > { %v2260_v6 = vpop.eup %2259  ;;  %v1568_v7 = vmul.f32 0.5, %v1564_v1  ;;  %v1566_v8 = vadd.f32 1.0, %v2258_v3 }
 0x9a9   : > { %v1567_v9 = vadd.f32 1.0, %v2260_v6  ;;  %v1569_v10 = vmul.f32 0.5, %v1565_v5 }
 0x9aa   : > { %v1570_v11 = vmul.f32 0.5, %v1566_v8  ;;  %v1572_v12 = vmul.f32 %v1568_v7, %v1532_v40 }
 0x9ab   : > { %v1571_v4 = vmul.f32 0.5, %v1567_v9  ;;  %v1573_v16 = vmul.f32 %v1569_v10, %v1534_v42 }
 0x9ac   : > { %v1574_v13 = vmul.f32 %v1570_v11, %v1536_v44 }
 0x9ad   : > { %v1575_v17 = vmul.f32 %v1571_v4, %v1538_v47 }
 0x9ae   : > { %v1576_v18 = vpack.c.bf16 %v1574_v13, %v1572_v12 }
 0x9af   : > { %v1577_v19 = vpack.c.bf16 %v1575_v17, %v1573_v16 }
 0x9b1   : > { %1745 = vmatprep.mubr.bf16.mxu0 %v1577_v19 }
 0x9b2   : > { %1746 = vmatmul.mubr.bf16.vlgmr.msra.gmra.mrb[16].mxu0 %v1576_v18 }
 0xa85   : > { %v2012_v20 = vpop.f32.mrb[16].mxu0 }
 0xa86   : > { %v2013_v22 = vpop.f32.mrb[17].mxu0 }
 0xa87   : > { %v2014_v24 = vadd.f32 %v2013_v22, %v2012_v20  ;;  %v2015_v25 = vpop.f32.mrb[18].mxu0 }
 0xa88   : > { %v2016_v26 = vpop.f32.mrb[19].mxu0 }
 0xa89   : > { %v1748_v30 = vadd.f32 %v2014_v24, %v1930_v21  ;;  %v2017_v32 = vadd.f32 %v2016_v26, %v2015_v25 }
 0xa8b   : > { %v1751_v34 = vadd.f32 %v2017_v32, %v1930_v21  ;;  %v1754_v35 = vadd.f32 %v1748_v30, %v2636_v14 }
 0xa8d   : > { %1758 = vadd.xlane.f32.xlu0 %v1754_v35  ;;  %v1755_v33 = vadd.f32 %v1751_v34, %v2638_v15 }
 0xa8f   : > { %1760 = vadd.xlane.f32.xlu1 %v1755_v33 }
 0xb1a   : > { %v1759_v36 = vpop.xlane.xlu0 %1758 }
 0xb1b   : > { %v1762_v27 = vmul.f32 0.0078125, %v1759_v36 }
 0xb1c   : > { %v1761_v37 = vpop.xlane.xlu1 %1760 }
 0xb1d   : > { %v1764_v55 = vsub.f32 %v1754_v35, %v1762_v27  ;;  %v1763_v38 = vmul.f32 0.0078125, %v1761_v37 }
 0xb1f   : > { %v1765_v39 = vsub.f32 %v1755_v33, %v1763_v38  ;;  %v1766_v40 = vmul.f32 %v1764_v55, %v1764_v55 }
 0xb21   : > { %1768 = vadd.xlane.f32.xlu0 %v1766_v40  ;;  %v1767_v41 = vmul.f32 %v1765_v39, %v1765_v39 }
 0xb23   : > { %1770 = vadd.xlane.f32.xlu1 %v1767_v41 }
 0xbae   : > { %v1769_v42 = vpop.xlane.xlu0 %1768 }
 0xbaf   : > { %v1772_v23 = vmul.f32 0.0078125, %v1769_v42 }
 0xbb0   : > { %v1771_v43 = vpop.xlane.xlu1 %1770 }
 0xbb1   : > { %v1774_v44 = vadd.f32 1e-05, %v1772_v23  ;;  %v1773_v14 = vmul.f32 0.0078125, %v1771_v43 }
 0xbb3   : > { %2261 = vrsqrt.f32 %v1774_v44  ;;  %v1775_v45 = vadd.f32 1e-05, %v1773_v14 }
 0xbb5   : > { %2263 = vrsqrt.f32 %v1775_v45 }
 0xbbd   : > { %v2262_v15 = vpop.eup %2261 }
 0xbbe   : > { %v1778_v47 = vmul.f32 %v2262_v15, %v1764_v55 }
 0xbbf   : > { %v2264_v48 = vpop.eup %2263 }
 0xbc0   : > { %v1786_v49 = vmul.f32 %v1947_v46, %v1778_v47  ;;  %v1779_v50 = vmul.f32 %v2264_v48, %v1765_v39 }
 0xbc2   : > { %v1787_v52 = vmul.f32 %v1947_v46, %v1779_v50  ;;  %v1794_v2 = vadd.f32 %v1948_v51, %v1786_v49 }
 0xbc4   : > { %v1795_v29 = vadd.f32 %v1948_v51, %v1787_v52 }
 0xbc6   : > { %v1960_v53 = vpack.c.bf16 %v1795_v29, %v1794_v2 }
 0xbc8   : > { %1961 = vst [vmem:[%s440_s27] sm:$0xff] %v1960_v53  }
 0xbc9 PF: > { %s23_s25 = sadd.s32 1, %s2271_s25  }
 0xbca   : > { %p20_p4 = scmp.ge.s32.totalorder %s23_s25, 4  }
 0xbcc   :  { %22 = sbr.rel (!%p20_p4) target bundleno = 1 (0x1), region = 102 }

</bundles_post_ra>
